<compile_context>
chip_gen: v6e
topology: v6e:2x2x1
jax: 0.10.0
libtpu: 0.0.40
codegen_flags: <defaults>
</compile_context>

<pallas_src>
import math

import jax
import jax.numpy as jnp
from jax.experimental import pallas as pl
from jax.experimental.pallas import tpu as pltpu  # noqa: F401  (TPU backend assumed)


D_MODEL = 32
N_HEADS = 4
D_FF = 64
N_LAYERS = 2
HEAD_DIM = D_MODEL // N_HEADS
LN_EPS = 1e-5
NEG_INF = -1e9

# Fixed flattening order of the stacked per-layer parameters passed to the kernel.
ENC_KEYS = ("wqkv", "bqkv", "wo", "bo", "ln1_g", "ln1_b",
            "w1", "b1", "w2", "b2", "ln2_g", "ln2_b")
DEC_KEYS = ("s_wqkv", "s_bqkv", "s_wo", "s_bo", "ln1_g", "ln1_b",
            "c_wqkv", "c_bqkv", "c_wo", "c_bo", "ln2_g", "ln2_b",
            "w1", "b1", "w2", "b2", "ln3_g", "ln3_b")


# ----------------------------- in-kernel building blocks -----------------------------

def _layernorm(y, g, b, eps):
    mu = jnp.mean(y, axis=-1, keepdims=True)
    yc = y - mu
    var = jnp.mean(yc * yc, axis=-1, keepdims=True)
    return yc * jax.lax.rsqrt(var + eps) * g + b


def _attn_sublayer(xq, xkv, bias, wqkv, bqkv, wo, bo, g, b, *, self_attn):
    """Post-norm MHA sub-layer on flattened (B*L, D) activations.

    `bias` is an additive mask that is block-diagonal over batch, so all batch elements
    are handled in one pass.  1/sqrt(head_dim) is pre-folded into the Q columns of wqkv.
    """
    D = D_MODEL
    if self_attn:
        # one wide (D, 3D) projection; per-head use is via static lane slices
        qkv = jnp.dot(xq, wqkv, preferred_element_type=jnp.float32) + bqkv
        q, k, v = qkv[:, :D], qkv[:, D:2 * D], qkv[:, 2 * D:]
    else:
        q = jnp.dot(xq, wqkv[:, :D], preferred_element_type=jnp.float32) + bqkv[:, :D]
        kv = jnp.dot(xkv, wqkv[:, D:], preferred_element_type=jnp.float32) + bqkv[:, D:]
        k, v = kv[:, :D], kv[:, D:]

    acc = jnp.zeros((xq.shape[0], D), jnp.float32)
    for h in range(N_HEADS):                           # static unroll (H small)
        sl = slice(h * HEAD_DIM, (h + 1) * HEAD_DIM)
        # q @ k^T via NT dot_general (contract last dims) — no explicit transpose.
        s = jax.lax.dot_general(q[:, sl], k[:, sl], (((1,), (1,)), ((), ())),
                                preferred_element_type=jnp.float32) + bias
        s = s - jnp.max(s, axis=-1, keepdims=True)
        p = jnp.exp(s)
        p = p * pl.reciprocal(jnp.sum(p, axis=-1, keepdims=True), approx=True)
        oh = jnp.dot(p, v[:, sl], preferred_element_type=jnp.float32)
        # fold the output projection per head and accumulate over heads
        acc = acc + jnp.dot(oh, wo[sl, :], preferred_element_type=jnp.float32)

    return _layernorm(xq + acc + bo, g, b, LN_EPS)


def _ffn_sublayer(x, w1, b1, w2, b2, g, b):
    h = jnp.dot(x, w1, preferred_element_type=jnp.float32) + b1
    h = jnp.maximum(h, 0.0)
    y = jnp.dot(h, w2, preferred_element_type=jnp.float32) + b2
    return _layernorm(x + y, g, b, LN_EPS)


# ----------------------------- the single fused kernel -----------------------------

def _transformer_kernel(*refs):
    ne, nd = len(ENC_KEYS), len(DEC_KEYS)
    xs_ref, xt_ref, eb_ref, sb_ref, cb_ref = refs[:5]
    enc = dict(zip(ENC_KEYS, refs[5:5 + ne]))
    dec = dict(zip(DEC_KEYS, refs[5 + ne:5 + ne + nd]))
    o_ref = refs[5 + ne + nd]

    eb = eb_ref[...]     # (B*Ls, B*Ls) encoder self-attn additive bias (block-diag)
    sb = sb_ref[...]     # (B*Lt, B*Lt) decoder self-attn additive bias (block-diag causal)
    cb = cb_ref[...]     # (B*Lt, B*Ls) decoder cross-attn additive bias (block-diag)

    # -------- encoder stack (activations never leave VMEM/vregs) --------
    x = xs_ref[...].astype(jnp.float32)
    for l in range(N_LAYERS):                                    # static unroll
        x = _attn_sublayer(x, x, eb,
                           enc["wqkv"][l], enc["bqkv"][l], enc["wo"][l], enc["bo"][l],
                           enc["ln1_g"][l], enc["ln1_b"][l], self_attn=True)
        x = _ffn_sublayer(x, enc["w1"][l], enc["b1"][l], enc["w2"][l], enc["b2"][l],
                          enc["ln2_g"][l], enc["ln2_b"][l])
    x_en = x

    # -------- decoder stack --------
    y = xt_ref[...].astype(jnp.float32)
    for l in range(N_LAYERS):
        y = _attn_sublayer(y, y, sb,
                           dec["s_wqkv"][l], dec["s_bqkv"][l], dec["s_wo"][l], dec["s_bo"][l],
                           dec["ln1_g"][l], dec["ln1_b"][l], self_attn=True)
        y = _attn_sublayer(y, x_en, cb,
                           dec["c_wqkv"][l], dec["c_bqkv"][l], dec["c_wo"][l], dec["c_bo"][l],
                           dec["ln2_g"][l], dec["ln2_b"][l], self_attn=False)
        y = _ffn_sublayer(y, dec["w1"][l], dec["b1"][l], dec["w2"][l], dec["b2"][l],
                          dec["ln3_g"][l], dec["ln3_b"][l])

    o_ref[...] = y.astype(o_ref.dtype)        # single final HBM write


# ----------------------------- params (fused-QKV layout, scale folded in) -----------------------------

def _init_mha(key):
    ks = jax.random.split(key, 4)

    def w(k):
        return jax.random.normal(k, (D_MODEL, D_MODEL), jnp.float32) * 0.02

    scale = 1.0 / math.sqrt(HEAD_DIM)
    # Wq|Wk|Wv packed as one (D, 3D); 1/sqrt(head_dim) folded into Wq (q-bias is zero).
    return {"wqkv": jnp.concatenate([w(ks[0]) * scale, w(ks[1]), w(ks[2])], axis=1),
            "bqkv": jnp.zeros((1, 3 * D_MODEL), jnp.float32),
            "wo": w(ks[3]),
            "bo": jnp.zeros((1, D_MODEL), jnp.float32)}


def _init_ffn(key):
    k1, k2 = jax.random.split(key)
    return {"w1": jax.random.normal(k1, (D_MODEL, D_FF), jnp.float32) * 0.02,
            "b1": jnp.zeros((1, D_FF), jnp.float32),
            "w2": jax.random.normal(k2, (D_FF, D_MODEL), jnp.float32) * 0.02,
            "b2": jnp.zeros((1, D_MODEL), jnp.float32)}


def _ln_g():
    return jnp.ones((1, D_MODEL), jnp.float32)


def _ln_b():
    return jnp.zeros((1, D_MODEL), jnp.float32)


def _init_enc_layer(key):
    k1, k2 = jax.random.split(key)
    mha, ffn = _init_mha(k1), _init_ffn(k2)
    return {"wqkv": mha["wqkv"], "bqkv": mha["bqkv"], "wo": mha["wo"], "bo": mha["bo"],
            "ln1_g": _ln_g(), "ln1_b": _ln_b(),
            "w1": ffn["w1"], "b1": ffn["b1"], "w2": ffn["w2"], "b2": ffn["b2"],
            "ln2_g": _ln_g(), "ln2_b": _ln_b()}


def _init_dec_layer(key):
    k1, k2, k3 = jax.random.split(key, 3)
    s_mha, c_mha, ffn = _init_mha(k1), _init_mha(k2), _init_ffn(k3)
    return {"s_wqkv": s_mha["wqkv"], "s_bqkv": s_mha["bqkv"], "s_wo": s_mha["wo"], "s_bo": s_mha["bo"],
            "ln1_g": _ln_g(), "ln1_b": _ln_b(),
            "c_wqkv": c_mha["wqkv"], "c_bqkv": c_mha["bqkv"], "c_wo": c_mha["wo"], "c_bo": c_mha["bo"],
            "ln2_g": _ln_g(), "ln2_b": _ln_b(),
            "w1": ffn["w1"], "b1": ffn["b1"], "w2": ffn["w2"], "b2": ffn["b2"],
            "ln3_g": _ln_g(), "ln3_b": _ln_b()}


def _stack_layers(layers, keys):
    return {k: jnp.stack([lyr[k] for lyr in layers], axis=0) for k in keys}


def init_transformer(key):
    keys = jax.random.split(key, 2 * N_LAYERS)
    enc_layers = [_init_enc_layer(keys[i]) for i in range(N_LAYERS)]
    dec_layers = [_init_dec_layer(keys[N_LAYERS + i]) for i in range(N_LAYERS)]
    return {"enc": _stack_layers(enc_layers, ENC_KEYS),
            "dec": _stack_layers(dec_layers, DEC_KEYS)}


# ----------------------------- wrapper -----------------------------

def _block_diag_bias(mask):
    """mask: (B, Lq, Lk), 1.0 = attend, 0.0 = masked  ->  (B*Lq, B*Lk) additive bias
    that is block-diagonal over batch (cross-batch positions get NEG_INF)."""
    B, Lq, Lk = mask.shape
    eye = jnp.eye(B, dtype=jnp.float32)
    allowed = jnp.einsum("bc,bqk->bqck", eye, mask.astype(jnp.float32))
    allowed = allowed.reshape(B * Lq, B * Lk)
    return (1.0 - allowed) * NEG_INF


@jax.jit
def transformer(X_s, I_m, X_t, O_m, params):
    # mask convention: 1.0 = attend, 0.0 = masked; turned into additive block-diagonal
    # biases ONCE outside the kernel (cheap XLA ops, no per-layer mask work).
    B, Ls, D = X_s.shape
    Lt = X_t.shape[1]

    enc_bias = _block_diag_bias(jnp.broadcast_to(I_m, (B, Ls, Ls)))
    self_bias = _block_diag_bias(jnp.broadcast_to(O_m, (B, Lt, Lt)))
    cross_bias = _block_diag_bias(jnp.broadcast_to(I_m, (B, Lt, Ls)))

    enc_args = [params["enc"][k] for k in ENC_KEYS]
    dec_args = [params["dec"][k] for k in DEC_KEYS]

    # Single fused pallas_call: no grid, every operand fully resident in VMEM.
    out_flat = pl.pallas_call(
        _transformer_kernel,
        out_shape=jax.ShapeDtypeStruct((B * Lt, D), X_t.dtype),
    )(X_s.reshape(B * Ls, D), X_t.reshape(B * Lt, D),
      enc_bias, self_bias, cross_bias, *enc_args, *dec_args)

    return out_flat.reshape(B, Lt, D)


# ----------------------------- main -----------------------------

if __name__ == "__main__":
    key = jax.random.PRNGKey(0)
    k_param, k_xs, k_xt = jax.random.split(key, 3)

    B, Ls, Lt = 2, 8, 8
    params = init_transformer(k_param)

    X_s = jax.random.normal(k_xs, (B, Ls, D_MODEL), jnp.float32)
    X_t = jax.random.normal(k_xt, (B, Lt, D_MODEL), jnp.float32)

    # source padding mask: (B, 1, Ls); last 2 positions of batch 1 are padding
    I_m = jnp.ones((B, 1, Ls), jnp.float32)
    I_m = I_m.at[1, 0, Ls - 2:].set(0.0)
    # target mask: causal (B, Lt, Lt)
    O_m = jnp.broadcast_to(jnp.tril(jnp.ones((Lt, Lt), jnp.float32)), (B, Lt, Lt))

    out = transformer(X_s, I_m, X_t, O_m, params)
    out = jax.block_until_ready(out)
    assert out.shape == (B, Lt, D_MODEL)
    assert bool(jnp.all(jnp.isfinite(out)))
    print("KERNEL_OK")
</pallas_src>

<mosaic_0001>
module attributes {stable_mosaic.version = 11 : i64} {
  func.func @_transformer_kernel(%arg0: memref<16x32xf32, #tpu.memory_space<vmem>>, %arg1: memref<16x32xf32, #tpu.memory_space<vmem>>, %arg2: memref<16x16xf32, #tpu.memory_space<vmem>>, %arg3: memref<16x16xf32, #tpu.memory_space<vmem>>, %arg4: memref<16x16xf32, #tpu.memory_space<vmem>>, %arg5: memref<2x32x96xf32, #tpu.memory_space<vmem>>, %arg6: memref<2x1x96xf32, #tpu.memory_space<vmem>>, %arg7: memref<2x32x32xf32, #tpu.memory_space<vmem>>, %arg8: memref<2x1x32xf32, #tpu.memory_space<vmem>>, %arg9: memref<2x1x32xf32, #tpu.memory_space<vmem>>, %arg10: memref<2x1x32xf32, #tpu.memory_space<vmem>>, %arg11: memref<2x32x64xf32, #tpu.memory_space<vmem>>, %arg12: memref<2x1x64xf32, #tpu.memory_space<vmem>>, %arg13: memref<2x64x32xf32, #tpu.memory_space<vmem>>, %arg14: memref<2x1x32xf32, #tpu.memory_space<vmem>>, %arg15: memref<2x1x32xf32, #tpu.memory_space<vmem>>, %arg16: memref<2x1x32xf32, #tpu.memory_space<vmem>>, %arg17: memref<2x32x96xf32, #tpu.memory_space<vmem>>, %arg18: memref<2x1x96xf32, #tpu.memory_space<vmem>>, %arg19: memref<2x32x32xf32, #tpu.memory_space<vmem>>, %arg20: memref<2x1x32xf32, #tpu.memory_space<vmem>>, %arg21: memref<2x1x32xf32, #tpu.memory_space<vmem>>, %arg22: memref<2x1x32xf32, #tpu.memory_space<vmem>>, %arg23: memref<2x32x96xf32, #tpu.memory_space<vmem>>, %arg24: memref<2x1x96xf32, #tpu.memory_space<vmem>>, %arg25: memref<2x32x32xf32, #tpu.memory_space<vmem>>, %arg26: memref<2x1x32xf32, #tpu.memory_space<vmem>>, %arg27: memref<2x1x32xf32, #tpu.memory_space<vmem>>, %arg28: memref<2x1x32xf32, #tpu.memory_space<vmem>>, %arg29: memref<2x32x64xf32, #tpu.memory_space<vmem>>, %arg30: memref<2x1x64xf32, #tpu.memory_space<vmem>>, %arg31: memref<2x64x32xf32, #tpu.memory_space<vmem>>, %arg32: memref<2x1x32xf32, #tpu.memory_space<vmem>>, %arg33: memref<2x1x32xf32, #tpu.memory_space<vmem>>, %arg34: memref<2x1x32xf32, #tpu.memory_space<vmem>>, %arg35: memref<16x32xf32, #tpu.memory_space<vmem>>) attributes {dimension_semantics = [], scalar_prefetch = 0 : i64, scratch_operands = 0 : i64, tpu.core_type = #tpu.core_type<tc>} {
    %c0 = arith.constant 0 : index
    %c0_0 = arith.constant 0 : index
    %0 = vector.load %arg2[%c0, %c0_0] : memref<16x16xf32, #tpu.memory_space<vmem>>, vector<16x16xf32>
    %c0_1 = arith.constant 0 : index
    %c0_2 = arith.constant 0 : index
    %1 = vector.load %arg3[%c0_1, %c0_2] : memref<16x16xf32, #tpu.memory_space<vmem>>, vector<16x16xf32>
    %c0_3 = arith.constant 0 : index
    %c0_4 = arith.constant 0 : index
    %2 = vector.load %arg4[%c0_3, %c0_4] : memref<16x16xf32, #tpu.memory_space<vmem>>, vector<16x16xf32>
    %c0_5 = arith.constant 0 : index
    %c0_6 = arith.constant 0 : index
    %3 = vector.load %arg0[%c0_5, %c0_6] : memref<16x32xf32, #tpu.memory_space<vmem>>, vector<16x32xf32>
    %c0_7 = arith.constant 0 : index
    %c0_8 = arith.constant 0 : index
    %c0_9 = arith.constant 0 : index
    %4 = vector.load %arg5[%c0_7, %c0_8, %c0_9] : memref<2x32x96xf32, #tpu.memory_space<vmem>>, vector<1x32x96xf32>
    %5 = vector.shape_cast %4 : vector<1x32x96xf32> to vector<32x96xf32>
    %c0_10 = arith.constant 0 : index
    %c0_11 = arith.constant 0 : index
    %c0_12 = arith.constant 0 : index
    %6 = vector.load %arg6[%c0_10, %c0_11, %c0_12] : memref<2x1x96xf32, #tpu.memory_space<vmem>>, vector<1x1x96xf32>
    %7 = vector.shape_cast %6 : vector<1x1x96xf32> to vector<1x96xf32>
    %c0_13 = arith.constant 0 : index
    %c0_14 = arith.constant 0 : index
    %c0_15 = arith.constant 0 : index
    %8 = vector.load %arg7[%c0_13, %c0_14, %c0_15] : memref<2x32x32xf32, #tpu.memory_space<vmem>>, vector<1x32x32xf32>
    %9 = vector.shape_cast %8 : vector<1x32x32xf32> to vector<32x32xf32>
    %c0_16 = arith.constant 0 : index
    %c0_17 = arith.constant 0 : index
    %c0_18 = arith.constant 0 : index
    %10 = vector.load %arg8[%c0_16, %c0_17, %c0_18] : memref<2x1x32xf32, #tpu.memory_space<vmem>>, vector<1x1x32xf32>
    %11 = vector.shape_cast %10 : vector<1x1x32xf32> to vector<1x32xf32>
    %c0_19 = arith.constant 0 : index
    %c0_20 = arith.constant 0 : index
    %c0_21 = arith.constant 0 : index
    %12 = vector.load %arg9[%c0_19, %c0_20, %c0_21] : memref<2x1x32xf32, #tpu.memory_space<vmem>>, vector<1x1x32xf32>
    %13 = vector.shape_cast %12 : vector<1x1x32xf32> to vector<1x32xf32>
    %c0_22 = arith.constant 0 : index
    %c0_23 = arith.constant 0 : index
    %c0_24 = arith.constant 0 : index
    %14 = vector.load %arg10[%c0_22, %c0_23, %c0_24] : memref<2x1x32xf32, #tpu.memory_space<vmem>>, vector<1x1x32xf32>
    %15 = vector.shape_cast %14 : vector<1x1x32xf32> to vector<1x32xf32>
    %cst = arith.constant dense<0.000000e+00> : vector<16x96xf32>
    %16 = tpu.matmul %3, %5, %cst {dimension_numbers = #tpu.dot_dimension_numbers<[1], [0], [0], [1], [0, 0, 1, 1], [], []>} : vector<16x32xf32>, vector<32x96xf32>, vector<16x96xf32> -> vector<16x96xf32>
    %17 = vector.broadcast %7 : vector<1x96xf32> to vector<16x96xf32>
    %18 = arith.addf %16, %17 : vector<16x96xf32>
    %19 = vector.extract_strided_slice %18 {offsets = [0, 0], sizes = [16, 32], strides = [1, 1]} : vector<16x96xf32> to vector<16x32xf32>
    %20 = vector.extract_strided_slice %18 {offsets = [0, 32], sizes = [16, 32], strides = [1, 1]} : vector<16x96xf32> to vector<16x32xf32>
    %21 = vector.extract_strided_slice %18 {offsets = [0, 64], sizes = [16, 32], strides = [1, 1]} : vector<16x96xf32> to vector<16x32xf32>
    %cst_25 = arith.constant 0.000000e+00 : f32
    %22 = vector.broadcast %cst_25 : f32 to vector<16x32xf32>
    %23 = vector.extract_strided_slice %19 {offsets = [0, 0], sizes = [16, 8], strides = [1, 1]} : vector<16x32xf32> to vector<16x8xf32>
    %24 = vector.extract_strided_slice %20 {offsets = [0, 0], sizes = [16, 8], strides = [1, 1]} : vector<16x32xf32> to vector<16x8xf32>
    %cst_26 = arith.constant dense<0.000000e+00> : vector<16x16xf32>
    %25 = tpu.matmul %23, %24, %cst_26 {dimension_numbers = #tpu.dot_dimension_numbers<[1], [1], [0], [0], [0, 0, 1, 0], [], []>} : vector<16x8xf32>, vector<16x8xf32>, vector<16x16xf32> -> vector<16x16xf32>
    %26 = arith.addf %25, %0 : vector<16x16xf32>
    %cst_27 = arith.constant dense<0xFF800000> : vector<16xf32>
    %27 = vector.multi_reduction <maximumf>, %26, %cst_27 [1] : vector<16x16xf32> to vector<16xf32>
    %28 = vector.shape_cast %27 : vector<16xf32> to vector<16x1xf32>
    %29 = vector.broadcast %28 : vector<16x1xf32> to vector<16x16xf32>
    %30 = arith.subf %26, %29 : vector<16x16xf32>
    %31 = math.exp %30 : vector<16x16xf32>
    %cst_28 = arith.constant dense<0.000000e+00> : vector<16xf32>
    %32 = vector.multi_reduction <add>, %31, %cst_28 [1] : vector<16x16xf32> to vector<16xf32>
    %33 = vector.shape_cast %32 : vector<16xf32> to vector<16x1xf32>
    %34 = tpu.reciprocal %33 {approx = true} : vector<16x1xf32> -> vector<16x1xf32>
    %35 = vector.broadcast %34 : vector<16x1xf32> to vector<16x16xf32>
    %36 = arith.mulf %31, %35 : vector<16x16xf32>
    %37 = vector.extract_strided_slice %21 {offsets = [0, 0], sizes = [16, 8], strides = [1, 1]} : vector<16x32xf32> to vector<16x8xf32>
    %cst_29 = arith.constant dense<0.000000e+00> : vector<16x8xf32>
    %38 = tpu.matmul %36, %37, %cst_29 {dimension_numbers = #tpu.dot_dimension_numbers<[1], [0], [0], [1], [0, 0, 1, 1], [], []>} : vector<16x16xf32>, vector<16x8xf32>, vector<16x8xf32> -> vector<16x8xf32>
    %39 = vector.extract_strided_slice %9 {offsets = [0, 0], sizes = [8, 32], strides = [1, 1]} : vector<32x32xf32> to vector<8x32xf32>
    %cst_30 = arith.constant dense<0.000000e+00> : vector<16x32xf32>
    %40 = tpu.matmul %38, %39, %cst_30 {dimension_numbers = #tpu.dot_dimension_numbers<[1], [0], [0], [1], [0, 0, 1, 1], [], []>} : vector<16x8xf32>, vector<8x32xf32>, vector<16x32xf32> -> vector<16x32xf32>
    %41 = arith.addf %22, %40 : vector<16x32xf32>
    %42 = vector.extract_strided_slice %19 {offsets = [0, 8], sizes = [16, 8], strides = [1, 1]} : vector<16x32xf32> to vector<16x8xf32>
    %43 = vector.extract_strided_slice %20 {offsets = [0, 8], sizes = [16, 8], strides = [1, 1]} : vector<16x32xf32> to vector<16x8xf32>
    %cst_31 = arith.constant dense<0.000000e+00> : vector<16x16xf32>
    %44 = tpu.matmul %42, %43, %cst_31 {dimension_numbers = #tpu.dot_dimension_numbers<[1], [1], [0], [0], [0, 0, 1, 0], [], []>} : vector<16x8xf32>, vector<16x8xf32>, vector<16x16xf32> -> vector<16x16xf32>
    %45 = arith.addf %44, %0 : vector<16x16xf32>
    %cst_32 = arith.constant dense<0xFF800000> : vector<16xf32>
    %46 = vector.multi_reduction <maximumf>, %45, %cst_32 [1] : vector<16x16xf32> to vector<16xf32>
    %47 = vector.shape_cast %46 : vector<16xf32> to vector<16x1xf32>
    %48 = vector.broadcast %47 : vector<16x1xf32> to vector<16x16xf32>
    %49 = arith.subf %45, %48 : vector<16x16xf32>
    %50 = math.exp %49 : vector<16x16xf32>
    %cst_33 = arith.constant dense<0.000000e+00> : vector<16xf32>
    %51 = vector.multi_reduction <add>, %50, %cst_33 [1] : vector<16x16xf32> to vector<16xf32>
    %52 = vector.shape_cast %51 : vector<16xf32> to vector<16x1xf32>
    %53 = tpu.reciprocal %52 {approx = true} : vector<16x1xf32> -> vector<16x1xf32>
    %54 = vector.broadcast %53 : vector<16x1xf32> to vector<16x16xf32>
    %55 = arith.mulf %50, %54 : vector<16x16xf32>
    %56 = vector.extract_strided_slice %21 {offsets = [0, 8], sizes = [16, 8], strides = [1, 1]} : vector<16x32xf32> to vector<16x8xf32>
    %cst_34 = arith.constant dense<0.000000e+00> : vector<16x8xf32>
    %57 = tpu.matmul %55, %56, %cst_34 {dimension_numbers = #tpu.dot_dimension_numbers<[1], [0], [0], [1], [0, 0, 1, 1], [], []>} : vector<16x16xf32>, vector<16x8xf32>, vector<16x8xf32> -> vector<16x8xf32>
    %58 = vector.extract_strided_slice %9 {offsets = [8, 0], sizes = [8, 32], strides = [1, 1]} : vector<32x32xf32> to vector<8x32xf32>
    %cst_35 = arith.constant dense<0.000000e+00> : vector<16x32xf32>
    %59 = tpu.matmul %57, %58, %cst_35 {dimension_numbers = #tpu.dot_dimension_numbers<[1], [0], [0], [1], [0, 0, 1, 1], [], []>} : vector<16x8xf32>, vector<8x32xf32>, vector<16x32xf32> -> vector<16x32xf32>
    %60 = arith.addf %41, %59 : vector<16x32xf32>
    %61 = vector.extract_strided_slice %19 {offsets = [0, 16], sizes = [16, 8], strides = [1, 1]} : vector<16x32xf32> to vector<16x8xf32>
    %62 = vector.extract_strided_slice %20 {offsets = [0, 16], sizes = [16, 8], strides = [1, 1]} : vector<16x32xf32> to vector<16x8xf32>
    %cst_36 = arith.constant dense<0.000000e+00> : vector<16x16xf32>
    %63 = tpu.matmul %61, %62, %cst_36 {dimension_numbers = #tpu.dot_dimension_numbers<[1], [1], [0], [0], [0, 0, 1, 0], [], []>} : vector<16x8xf32>, vector<16x8xf32>, vector<16x16xf32> -> vector<16x16xf32>
    %64 = arith.addf %63, %0 : vector<16x16xf32>
    %cst_37 = arith.constant dense<0xFF800000> : vector<16xf32>
    %65 = vector.multi_reduction <maximumf>, %64, %cst_37 [1] : vector<16x16xf32> to vector<16xf32>
    %66 = vector.shape_cast %65 : vector<16xf32> to vector<16x1xf32>
    %67 = vector.broadcast %66 : vector<16x1xf32> to vector<16x16xf32>
    %68 = arith.subf %64, %67 : vector<16x16xf32>
    %69 = math.exp %68 : vector<16x16xf32>
    %cst_38 = arith.constant dense<0.000000e+00> : vector<16xf32>
    %70 = vector.multi_reduction <add>, %69, %cst_38 [1] : vector<16x16xf32> to vector<16xf32>
    %71 = vector.shape_cast %70 : vector<16xf32> to vector<16x1xf32>
    %72 = tpu.reciprocal %71 {approx = true} : vector<16x1xf32> -> vector<16x1xf32>
    %73 = vector.broadcast %72 : vector<16x1xf32> to vector<16x16xf32>
    %74 = arith.mulf %69, %73 : vector<16x16xf32>
    %75 = vector.extract_strided_slice %21 {offsets = [0, 16], sizes = [16, 8], strides = [1, 1]} : vector<16x32xf32> to vector<16x8xf32>
    %cst_39 = arith.constant dense<0.000000e+00> : vector<16x8xf32>
    %76 = tpu.matmul %74, %75, %cst_39 {dimension_numbers = #tpu.dot_dimension_numbers<[1], [0], [0], [1], [0, 0, 1, 1], [], []>} : vector<16x16xf32>, vector<16x8xf32>, vector<16x8xf32> -> vector<16x8xf32>
    %77 = vector.extract_strided_slice %9 {offsets = [16, 0], sizes = [8, 32], strides = [1, 1]} : vector<32x32xf32> to vector<8x32xf32>
    %cst_40 = arith.constant dense<0.000000e+00> : vector<16x32xf32>
    %78 = tpu.matmul %76, %77, %cst_40 {dimension_numbers = #tpu.dot_dimension_numbers<[1], [0], [0], [1], [0, 0, 1, 1], [], []>} : vector<16x8xf32>, vector<8x32xf32>, vector<16x32xf32> -> vector<16x32xf32>
    %79 = arith.addf %60, %78 : vector<16x32xf32>
    %80 = vector.extract_strided_slice %19 {offsets = [0, 24], sizes = [16, 8], strides = [1, 1]} : vector<16x32xf32> to vector<16x8xf32>
    %81 = vector.extract_strided_slice %20 {offsets = [0, 24], sizes = [16, 8], strides = [1, 1]} : vector<16x32xf32> to vector<16x8xf32>
    %cst_41 = arith.constant dense<0.000000e+00> : vector<16x16xf32>
    %82 = tpu.matmul %80, %81, %cst_41 {dimension_numbers = #tpu.dot_dimension_numbers<[1], [1], [0], [0], [0, 0, 1, 0], [], []>} : vector<16x8xf32>, vector<16x8xf32>, vector<16x16xf32> -> vector<16x16xf32>
    %83 = arith.addf %82, %0 : vector<16x16xf32>
    %cst_42 = arith.constant dense<0xFF800000> : vector<16xf32>
    %84 = vector.multi_reduction <maximumf>, %83, %cst_42 [1] : vector<16x16xf32> to vector<16xf32>
    %85 = vector.shape_cast %84 : vector<16xf32> to vector<16x1xf32>
    %86 = vector.broadcast %85 : vector<16x1xf32> to vector<16x16xf32>
    %87 = arith.subf %83, %86 : vector<16x16xf32>
    %88 = math.exp %87 : vector<16x16xf32>
    %cst_43 = arith.constant dense<0.000000e+00> : vector<16xf32>
    %89 = vector.multi_reduction <add>, %88, %cst_43 [1] : vector<16x16xf32> to vector<16xf32>
    %90 = vector.shape_cast %89 : vector<16xf32> to vector<16x1xf32>
    %91 = tpu.reciprocal %90 {approx = true} : vector<16x1xf32> -> vector<16x1xf32>
    %92 = vector.broadcast %91 : vector<16x1xf32> to vector<16x16xf32>
    %93 = arith.mulf %88, %92 : vector<16x16xf32>
    %94 = vector.extract_strided_slice %21 {offsets = [0, 24], sizes = [16, 8], strides = [1, 1]} : vector<16x32xf32> to vector<16x8xf32>
    %cst_44 = arith.constant dense<0.000000e+00> : vector<16x8xf32>
    %95 = tpu.matmul %93, %94, %cst_44 {dimension_numbers = #tpu.dot_dimension_numbers<[1], [0], [0], [1], [0, 0, 1, 1], [], []>} : vector<16x16xf32>, vector<16x8xf32>, vector<16x8xf32> -> vector<16x8xf32>
    %96 = vector.extract_strided_slice %9 {offsets = [24, 0], sizes = [8, 32], strides = [1, 1]} : vector<32x32xf32> to vector<8x32xf32>
    %cst_45 = arith.constant dense<0.000000e+00> : vector<16x32xf32>
    %97 = tpu.matmul %95, %96, %cst_45 {dimension_numbers = #tpu.dot_dimension_numbers<[1], [0], [0], [1], [0, 0, 1, 1], [], []>} : vector<16x8xf32>, vector<8x32xf32>, vector<16x32xf32> -> vector<16x32xf32>
    %98 = arith.addf %79, %97 : vector<16x32xf32>
    %99 = arith.addf %3, %98 : vector<16x32xf32>
    %100 = vector.broadcast %11 : vector<1x32xf32> to vector<16x32xf32>
    %101 = arith.addf %99, %100 : vector<16x32xf32>
    %cst_46 = arith.constant dense<0.000000e+00> : vector<16xf32>
    %102 = vector.multi_reduction <add>, %101, %cst_46 [1] : vector<16x32xf32> to vector<16xf32>
    %103 = vector.shape_cast %102 : vector<16xf32> to vector<16x1xf32>
    %cst_47 = arith.constant 3.200000e+01 : f32
    %104 = vector.broadcast %cst_47 : f32 to vector<16x1xf32>
    %105 = arith.divf %103, %104 : vector<16x1xf32>
    %106 = vector.broadcast %105 : vector<16x1xf32> to vector<16x32xf32>
    %107 = arith.subf %101, %106 : vector<16x32xf32>
    %108 = arith.mulf %107, %107 : vector<16x32xf32>
    %cst_48 = arith.constant dense<0.000000e+00> : vector<16xf32>
    %109 = vector.multi_reduction <add>, %108, %cst_48 [1] : vector<16x32xf32> to vector<16xf32>
    %110 = vector.shape_cast %109 : vector<16xf32> to vector<16x1xf32>
    %cst_49 = arith.constant 3.200000e+01 : f32
    %111 = vector.broadcast %cst_49 : f32 to vector<16x1xf32>
    %112 = arith.divf %110, %111 : vector<16x1xf32>
    %cst_50 = arith.constant 9.99999974E-6 : f32
    %113 = vector.broadcast %cst_50 : f32 to vector<16x1xf32>
    %114 = arith.addf %112, %113 : vector<16x1xf32>
    %115 = math.rsqrt %114 : vector<16x1xf32>
    %116 = vector.broadcast %115 : vector<16x1xf32> to vector<16x32xf32>
    %117 = arith.mulf %107, %116 : vector<16x32xf32>
    %118 = vector.broadcast %13 : vector<1x32xf32> to vector<16x32xf32>
    %119 = arith.mulf %117, %118 : vector<16x32xf32>
    %120 = vector.broadcast %15 : vector<1x32xf32> to vector<16x32xf32>
    %121 = arith.addf %119, %120 : vector<16x32xf32>
    %c0_51 = arith.constant 0 : index
    %c0_52 = arith.constant 0 : index
    %c0_53 = arith.constant 0 : index
    %122 = vector.load %arg11[%c0_51, %c0_52, %c0_53] : memref<2x32x64xf32, #tpu.memory_space<vmem>>, vector<1x32x64xf32>
    %123 = vector.shape_cast %122 : vector<1x32x64xf32> to vector<32x64xf32>
    %c0_54 = arith.constant 0 : index
    %c0_55 = arith.constant 0 : index
    %c0_56 = arith.constant 0 : index
    %124 = vector.load %arg12[%c0_54, %c0_55, %c0_56] : memref<2x1x64xf32, #tpu.memory_space<vmem>>, vector<1x1x64xf32>
    %125 = vector.shape_cast %124 : vector<1x1x64xf32> to vector<1x64xf32>
    %c0_57 = arith.constant 0 : index
    %c0_58 = arith.constant 0 : index
    %c0_59 = arith.constant 0 : index
    %126 = vector.load %arg13[%c0_57, %c0_58, %c0_59] : memref<2x64x32xf32, #tpu.memory_space<vmem>>, vector<1x64x32xf32>
    %127 = vector.shape_cast %126 : vector<1x64x32xf32> to vector<64x32xf32>
    %c0_60 = arith.constant 0 : index
    %c0_61 = arith.constant 0 : index
    %c0_62 = arith.constant 0 : index
    %128 = vector.load %arg14[%c0_60, %c0_61, %c0_62] : memref<2x1x32xf32, #tpu.memory_space<vmem>>, vector<1x1x32xf32>
    %129 = vector.shape_cast %128 : vector<1x1x32xf32> to vector<1x32xf32>
    %c0_63 = arith.constant 0 : index
    %c0_64 = arith.constant 0 : index
    %c0_65 = arith.constant 0 : index
    %130 = vector.load %arg15[%c0_63, %c0_64, %c0_65] : memref<2x1x32xf32, #tpu.memory_space<vmem>>, vector<1x1x32xf32>
    %131 = vector.shape_cast %130 : vector<1x1x32xf32> to vector<1x32xf32>
    %c0_66 = arith.constant 0 : index
    %c0_67 = arith.constant 0 : index
    %c0_68 = arith.constant 0 : index
    %132 = vector.load %arg16[%c0_66, %c0_67, %c0_68] : memref<2x1x32xf32, #tpu.memory_space<vmem>>, vector<1x1x32xf32>
    %133 = vector.shape_cast %132 : vector<1x1x32xf32> to vector<1x32xf32>
    %cst_69 = arith.constant dense<0.000000e+00> : vector<16x64xf32>
    %134 = tpu.matmul %121, %123, %cst_69 {dimension_numbers = #tpu.dot_dimension_numbers<[1], [0], [0], [1], [0, 0, 1, 1], [], []>} : vector<16x32xf32>, vector<32x64xf32>, vector<16x64xf32> -> vector<16x64xf32>
    %135 = vector.broadcast %125 : vector<1x64xf32> to vector<16x64xf32>
    %136 = arith.addf %134, %135 : vector<16x64xf32>
    %cst_70 = arith.constant 0.000000e+00 : f32
    %137 = vector.broadcast %cst_70 : f32 to vector<16x64xf32>
    %138 = arith.maximumf %136, %137 : vector<16x64xf32>
    %cst_71 = arith.constant dense<0.000000e+00> : vector<16x32xf32>
    %139 = tpu.matmul %138, %127, %cst_71 {dimension_numbers = #tpu.dot_dimension_numbers<[1], [0], [0], [1], [0, 0, 1, 1], [], []>} : vector<16x64xf32>, vector<64x32xf32>, vector<16x32xf32> -> vector<16x32xf32>
    %140 = vector.broadcast %129 : vector<1x32xf32> to vector<16x32xf32>
    %141 = arith.addf %139, %140 : vector<16x32xf32>
    %142 = arith.addf %121, %141 : vector<16x32xf32>
    %cst_72 = arith.constant dense<0.000000e+00> : vector<16xf32>
    %143 = vector.multi_reduction <add>, %142, %cst_72 [1] : vector<16x32xf32> to vector<16xf32>
    %144 = vector.shape_cast %143 : vector<16xf32> to vector<16x1xf32>
    %cst_73 = arith.constant 3.200000e+01 : f32
    %145 = vector.broadcast %cst_73 : f32 to vector<16x1xf32>
    %146 = arith.divf %144, %145 : vector<16x1xf32>
    %147 = vector.broadcast %146 : vector<16x1xf32> to vector<16x32xf32>
    %148 = arith.subf %142, %147 : vector<16x32xf32>
    %149 = arith.mulf %148, %148 : vector<16x32xf32>
    %cst_74 = arith.constant dense<0.000000e+00> : vector<16xf32>
    %150 = vector.multi_reduction <add>, %149, %cst_74 [1] : vector<16x32xf32> to vector<16xf32>
    %151 = vector.shape_cast %150 : vector<16xf32> to vector<16x1xf32>
    %cst_75 = arith.constant 3.200000e+01 : f32
    %152 = vector.broadcast %cst_75 : f32 to vector<16x1xf32>
    %153 = arith.divf %151, %152 : vector<16x1xf32>
    %cst_76 = arith.constant 9.99999974E-6 : f32
    %154 = vector.broadcast %cst_76 : f32 to vector<16x1xf32>
    %155 = arith.addf %153, %154 : vector<16x1xf32>
    %156 = math.rsqrt %155 : vector<16x1xf32>
    %157 = vector.broadcast %156 : vector<16x1xf32> to vector<16x32xf32>
    %158 = arith.mulf %148, %157 : vector<16x32xf32>
    %159 = vector.broadcast %131 : vector<1x32xf32> to vector<16x32xf32>
    %160 = arith.mulf %158, %159 : vector<16x32xf32>
    %161 = vector.broadcast %133 : vector<1x32xf32> to vector<16x32xf32>
    %162 = arith.addf %160, %161 : vector<16x32xf32>
    %c1 = arith.constant 1 : index
    %c0_77 = arith.constant 0 : index
    %c0_78 = arith.constant 0 : index
    %163 = vector.load %arg5[%c1, %c0_77, %c0_78] : memref<2x32x96xf32, #tpu.memory_space<vmem>>, vector<1x32x96xf32>
    %164 = vector.shape_cast %163 : vector<1x32x96xf32> to vector<32x96xf32>
    %c1_79 = arith.constant 1 : index
    %c0_80 = arith.constant 0 : index
    %c0_81 = arith.constant 0 : index
    %165 = vector.load %arg6[%c1_79, %c0_80, %c0_81] : memref<2x1x96xf32, #tpu.memory_space<vmem>>, vector<1x1x96xf32>
    %166 = vector.shape_cast %165 : vector<1x1x96xf32> to vector<1x96xf32>
    %c1_82 = arith.constant 1 : index
    %c0_83 = arith.constant 0 : index
    %c0_84 = arith.constant 0 : index
    %167 = vector.load %arg7[%c1_82, %c0_83, %c0_84] : memref<2x32x32xf32, #tpu.memory_space<vmem>>, vector<1x32x32xf32>
    %168 = vector.shape_cast %167 : vector<1x32x32xf32> to vector<32x32xf32>
    %c1_85 = arith.constant 1 : index
    %c0_86 = arith.constant 0 : index
    %c0_87 = arith.constant 0 : index
    %169 = vector.load %arg8[%c1_85, %c0_86, %c0_87] : memref<2x1x32xf32, #tpu.memory_space<vmem>>, vector<1x1x32xf32>
    %170 = vector.shape_cast %169 : vector<1x1x32xf32> to vector<1x32xf32>
    %c1_88 = arith.constant 1 : index
    %c0_89 = arith.constant 0 : index
    %c0_90 = arith.constant 0 : index
    %171 = vector.load %arg9[%c1_88, %c0_89, %c0_90] : memref<2x1x32xf32, #tpu.memory_space<vmem>>, vector<1x1x32xf32>
    %172 = vector.shape_cast %171 : vector<1x1x32xf32> to vector<1x32xf32>
    %c1_91 = arith.constant 1 : index
    %c0_92 = arith.constant 0 : index
    %c0_93 = arith.constant 0 : index
    %173 = vector.load %arg10[%c1_91, %c0_92, %c0_93] : memref<2x1x32xf32, #tpu.memory_space<vmem>>, vector<1x1x32xf32>
    %174 = vector.shape_cast %173 : vector<1x1x32xf32> to vector<1x32xf32>
    %cst_94 = arith.constant dense<0.000000e+00> : vector<16x96xf32>
    %175 = tpu.matmul %162, %164, %cst_94 {dimension_numbers = #tpu.dot_dimension_numbers<[1], [0], [0], [1], [0, 0, 1, 1], [], []>} : vector<16x32xf32>, vector<32x96xf32>, vector<16x96xf32> -> vector<16x96xf32>
    %176 = vector.broadcast %166 : vector<1x96xf32> to vector<16x96xf32>
    %177 = arith.addf %175, %176 : vector<16x96xf32>
    %178 = vector.extract_strided_slice %177 {offsets = [0, 0], sizes = [16, 32], strides = [1, 1]} : vector<16x96xf32> to vector<16x32xf32>
    %179 = vector.extract_strided_slice %177 {offsets = [0, 32], sizes = [16, 32], strides = [1, 1]} : vector<16x96xf32> to vector<16x32xf32>
    %180 = vector.extract_strided_slice %177 {offsets = [0, 64], sizes = [16, 32], strides = [1, 1]} : vector<16x96xf32> to vector<16x32xf32>
    %cst_95 = arith.constant 0.000000e+00 : f32
    %181 = vector.broadcast %cst_95 : f32 to vector<16x32xf32>
    %182 = vector.extract_strided_slice %178 {offsets = [0, 0], sizes = [16, 8], strides = [1, 1]} : vector<16x32xf32> to vector<16x8xf32>
    %183 = vector.extract_strided_slice %179 {offsets = [0, 0], sizes = [16, 8], strides = [1, 1]} : vector<16x32xf32> to vector<16x8xf32>
    %cst_96 = arith.constant dense<0.000000e+00> : vector<16x16xf32>
    %184 = tpu.matmul %182, %183, %cst_96 {dimension_numbers = #tpu.dot_dimension_numbers<[1], [1], [0], [0], [0, 0, 1, 0], [], []>} : vector<16x8xf32>, vector<16x8xf32>, vector<16x16xf32> -> vector<16x16xf32>
    %185 = arith.addf %184, %0 : vector<16x16xf32>
    %cst_97 = arith.constant dense<0xFF800000> : vector<16xf32>
    %186 = vector.multi_reduction <maximumf>, %185, %cst_97 [1] : vector<16x16xf32> to vector<16xf32>
    %187 = vector.shape_cast %186 : vector<16xf32> to vector<16x1xf32>
    %188 = vector.broadcast %187 : vector<16x1xf32> to vector<16x16xf32>
    %189 = arith.subf %185, %188 : vector<16x16xf32>
    %190 = math.exp %189 : vector<16x16xf32>
    %cst_98 = arith.constant dense<0.000000e+00> : vector<16xf32>
    %191 = vector.multi_reduction <add>, %190, %cst_98 [1] : vector<16x16xf32> to vector<16xf32>
    %192 = vector.shape_cast %191 : vector<16xf32> to vector<16x1xf32>
    %193 = tpu.reciprocal %192 {approx = true} : vector<16x1xf32> -> vector<16x1xf32>
    %194 = vector.broadcast %193 : vector<16x1xf32> to vector<16x16xf32>
    %195 = arith.mulf %190, %194 : vector<16x16xf32>
    %196 = vector.extract_strided_slice %180 {offsets = [0, 0], sizes = [16, 8], strides = [1, 1]} : vector<16x32xf32> to vector<16x8xf32>
    %cst_99 = arith.constant dense<0.000000e+00> : vector<16x8xf32>
    %197 = tpu.matmul %195, %196, %cst_99 {dimension_numbers = #tpu.dot_dimension_numbers<[1], [0], [0], [1], [0, 0, 1, 1], [], []>} : vector<16x16xf32>, vector<16x8xf32>, vector<16x8xf32> -> vector<16x8xf32>
    %198 = vector.extract_strided_slice %168 {offsets = [0, 0], sizes = [8, 32], strides = [1, 1]} : vector<32x32xf32> to vector<8x32xf32>
    %cst_100 = arith.constant dense<0.000000e+00> : vector<16x32xf32>
    %199 = tpu.matmul %197, %198, %cst_100 {dimension_numbers = #tpu.dot_dimension_numbers<[1], [0], [0], [1], [0, 0, 1, 1], [], []>} : vector<16x8xf32>, vector<8x32xf32>, vector<16x32xf32> -> vector<16x32xf32>
    %200 = arith.addf %181, %199 : vector<16x32xf32>
    %201 = vector.extract_strided_slice %178 {offsets = [0, 8], sizes = [16, 8], strides = [1, 1]} : vector<16x32xf32> to vector<16x8xf32>
    %202 = vector.extract_strided_slice %179 {offsets = [0, 8], sizes = [16, 8], strides = [1, 1]} : vector<16x32xf32> to vector<16x8xf32>
    %cst_101 = arith.constant dense<0.000000e+00> : vector<16x16xf32>
    %203 = tpu.matmul %201, %202, %cst_101 {dimension_numbers = #tpu.dot_dimension_numbers<[1], [1], [0], [0], [0, 0, 1, 0], [], []>} : vector<16x8xf32>, vector<16x8xf32>, vector<16x16xf32> -> vector<16x16xf32>
    %204 = arith.addf %203, %0 : vector<16x16xf32>
    %cst_102 = arith.constant dense<0xFF800000> : vector<16xf32>
    %205 = vector.multi_reduction <maximumf>, %204, %cst_102 [1] : vector<16x16xf32> to vector<16xf32>
    %206 = vector.shape_cast %205 : vector<16xf32> to vector<16x1xf32>
    %207 = vector.broadcast %206 : vector<16x1xf32> to vector<16x16xf32>
    %208 = arith.subf %204, %207 : vector<16x16xf32>
    %209 = math.exp %208 : vector<16x16xf32>
    %cst_103 = arith.constant dense<0.000000e+00> : vector<16xf32>
    %210 = vector.multi_reduction <add>, %209, %cst_103 [1] : vector<16x16xf32> to vector<16xf32>
    %211 = vector.shape_cast %210 : vector<16xf32> to vector<16x1xf32>
    %212 = tpu.reciprocal %211 {approx = true} : vector<16x1xf32> -> vector<16x1xf32>
    %213 = vector.broadcast %212 : vector<16x1xf32> to vector<16x16xf32>
    %214 = arith.mulf %209, %213 : vector<16x16xf32>
    %215 = vector.extract_strided_slice %180 {offsets = [0, 8], sizes = [16, 8], strides = [1, 1]} : vector<16x32xf32> to vector<16x8xf32>
    %cst_104 = arith.constant dense<0.000000e+00> : vector<16x8xf32>
    %216 = tpu.matmul %214, %215, %cst_104 {dimension_numbers = #tpu.dot_dimension_numbers<[1], [0], [0], [1], [0, 0, 1, 1], [], []>} : vector<16x16xf32>, vector<16x8xf32>, vector<16x8xf32> -> vector<16x8xf32>
    %217 = vector.extract_strided_slice %168 {offsets = [8, 0], sizes = [8, 32], strides = [1, 1]} : vector<32x32xf32> to vector<8x32xf32>
    %cst_105 = arith.constant dense<0.000000e+00> : vector<16x32xf32>
    %218 = tpu.matmul %216, %217, %cst_105 {dimension_numbers = #tpu.dot_dimension_numbers<[1], [0], [0], [1], [0, 0, 1, 1], [], []>} : vector<16x8xf32>, vector<8x32xf32>, vector<16x32xf32> -> vector<16x32xf32>
    %219 = arith.addf %200, %218 : vector<16x32xf32>
    %220 = vector.extract_strided_slice %178 {offsets = [0, 16], sizes = [16, 8], strides = [1, 1]} : vector<16x32xf32> to vector<16x8xf32>
    %221 = vector.extract_strided_slice %179 {offsets = [0, 16], sizes = [16, 8], strides = [1, 1]} : vector<16x32xf32> to vector<16x8xf32>
    %cst_106 = arith.constant dense<0.000000e+00> : vector<16x16xf32>
    %222 = tpu.matmul %220, %221, %cst_106 {dimension_numbers = #tpu.dot_dimension_numbers<[1], [1], [0], [0], [0, 0, 1, 0], [], []>} : vector<16x8xf32>, vector<16x8xf32>, vector<16x16xf32> -> vector<16x16xf32>
    %223 = arith.addf %222, %0 : vector<16x16xf32>
    %cst_107 = arith.constant dense<0xFF800000> : vector<16xf32>
    %224 = vector.multi_reduction <maximumf>, %223, %cst_107 [1] : vector<16x16xf32> to vector<16xf32>
    %225 = vector.shape_cast %224 : vector<16xf32> to vector<16x1xf32>
    %226 = vector.broadcast %225 : vector<16x1xf32> to vector<16x16xf32>
    %227 = arith.subf %223, %226 : vector<16x16xf32>
    %228 = math.exp %227 : vector<16x16xf32>
    %cst_108 = arith.constant dense<0.000000e+00> : vector<16xf32>
    %229 = vector.multi_reduction <add>, %228, %cst_108 [1] : vector<16x16xf32> to vector<16xf32>
    %230 = vector.shape_cast %229 : vector<16xf32> to vector<16x1xf32>
    %231 = tpu.reciprocal %230 {approx = true} : vector<16x1xf32> -> vector<16x1xf32>
    %232 = vector.broadcast %231 : vector<16x1xf32> to vector<16x16xf32>
    %233 = arith.mulf %228, %232 : vector<16x16xf32>
    %234 = vector.extract_strided_slice %180 {offsets = [0, 16], sizes = [16, 8], strides = [1, 1]} : vector<16x32xf32> to vector<16x8xf32>
    %cst_109 = arith.constant dense<0.000000e+00> : vector<16x8xf32>
    %235 = tpu.matmul %233, %234, %cst_109 {dimension_numbers = #tpu.dot_dimension_numbers<[1], [0], [0], [1], [0, 0, 1, 1], [], []>} : vector<16x16xf32>, vector<16x8xf32>, vector<16x8xf32> -> vector<16x8xf32>
    %236 = vector.extract_strided_slice %168 {offsets = [16, 0], sizes = [8, 32], strides = [1, 1]} : vector<32x32xf32> to vector<8x32xf32>
    %cst_110 = arith.constant dense<0.000000e+00> : vector<16x32xf32>
    %237 = tpu.matmul %235, %236, %cst_110 {dimension_numbers = #tpu.dot_dimension_numbers<[1], [0], [0], [1], [0, 0, 1, 1], [], []>} : vector<16x8xf32>, vector<8x32xf32>, vector<16x32xf32> -> vector<16x32xf32>
    %238 = arith.addf %219, %237 : vector<16x32xf32>
    %239 = vector.extract_strided_slice %178 {offsets = [0, 24], sizes = [16, 8], strides = [1, 1]} : vector<16x32xf32> to vector<16x8xf32>
    %240 = vector.extract_strided_slice %179 {offsets = [0, 24], sizes = [16, 8], strides = [1, 1]} : vector<16x32xf32> to vector<16x8xf32>
    %cst_111 = arith.constant dense<0.000000e+00> : vector<16x16xf32>
    %241 = tpu.matmul %239, %240, %cst_111 {dimension_numbers = #tpu.dot_dimension_numbers<[1], [1], [0], [0], [0, 0, 1, 0], [], []>} : vector<16x8xf32>, vector<16x8xf32>, vector<16x16xf32> -> vector<16x16xf32>
    %242 = arith.addf %241, %0 : vector<16x16xf32>
    %cst_112 = arith.constant dense<0xFF800000> : vector<16xf32>
    %243 = vector.multi_reduction <maximumf>, %242, %cst_112 [1] : vector<16x16xf32> to vector<16xf32>
    %244 = vector.shape_cast %243 : vector<16xf32> to vector<16x1xf32>
    %245 = vector.broadcast %244 : vector<16x1xf32> to vector<16x16xf32>
    %246 = arith.subf %242, %245 : vector<16x16xf32>
    %247 = math.exp %246 : vector<16x16xf32>
    %cst_113 = arith.constant dense<0.000000e+00> : vector<16xf32>
    %248 = vector.multi_reduction <add>, %247, %cst_113 [1] : vector<16x16xf32> to vector<16xf32>
    %249 = vector.shape_cast %248 : vector<16xf32> to vector<16x1xf32>
    %250 = tpu.reciprocal %249 {approx = true} : vector<16x1xf32> -> vector<16x1xf32>
    %251 = vector.broadcast %250 : vector<16x1xf32> to vector<16x16xf32>
    %252 = arith.mulf %247, %251 : vector<16x16xf32>
    %253 = vector.extract_strided_slice %180 {offsets = [0, 24], sizes = [16, 8], strides = [1, 1]} : vector<16x32xf32> to vector<16x8xf32>
    %cst_114 = arith.constant dense<0.000000e+00> : vector<16x8xf32>
    %254 = tpu.matmul %252, %253, %cst_114 {dimension_numbers = #tpu.dot_dimension_numbers<[1], [0], [0], [1], [0, 0, 1, 1], [], []>} : vector<16x16xf32>, vector<16x8xf32>, vector<16x8xf32> -> vector<16x8xf32>
    %255 = vector.extract_strided_slice %168 {offsets = [24, 0], sizes = [8, 32], strides = [1, 1]} : vector<32x32xf32> to vector<8x32xf32>
    %cst_115 = arith.constant dense<0.000000e+00> : vector<16x32xf32>
    %256 = tpu.matmul %254, %255, %cst_115 {dimension_numbers = #tpu.dot_dimension_numbers<[1], [0], [0], [1], [0, 0, 1, 1], [], []>} : vector<16x8xf32>, vector<8x32xf32>, vector<16x32xf32> -> vector<16x32xf32>
    %257 = arith.addf %238, %256 : vector<16x32xf32>
    %258 = arith.addf %162, %257 : vector<16x32xf32>
    %259 = vector.broadcast %170 : vector<1x32xf32> to vector<16x32xf32>
    %260 = arith.addf %258, %259 : vector<16x32xf32>
    %cst_116 = arith.constant dense<0.000000e+00> : vector<16xf32>
    %261 = vector.multi_reduction <add>, %260, %cst_116 [1] : vector<16x32xf32> to vector<16xf32>
    %262 = vector.shape_cast %261 : vector<16xf32> to vector<16x1xf32>
    %cst_117 = arith.constant 3.200000e+01 : f32
    %263 = vector.broadcast %cst_117 : f32 to vector<16x1xf32>
    %264 = arith.divf %262, %263 : vector<16x1xf32>
    %265 = vector.broadcast %264 : vector<16x1xf32> to vector<16x32xf32>
    %266 = arith.subf %260, %265 : vector<16x32xf32>
    %267 = arith.mulf %266, %266 : vector<16x32xf32>
    %cst_118 = arith.constant dense<0.000000e+00> : vector<16xf32>
    %268 = vector.multi_reduction <add>, %267, %cst_118 [1] : vector<16x32xf32> to vector<16xf32>
    %269 = vector.shape_cast %268 : vector<16xf32> to vector<16x1xf32>
    %cst_119 = arith.constant 3.200000e+01 : f32
    %270 = vector.broadcast %cst_119 : f32 to vector<16x1xf32>
    %271 = arith.divf %269, %270 : vector<16x1xf32>
    %cst_120 = arith.constant 9.99999974E-6 : f32
    %272 = vector.broadcast %cst_120 : f32 to vector<16x1xf32>
    %273 = arith.addf %271, %272 : vector<16x1xf32>
    %274 = math.rsqrt %273 : vector<16x1xf32>
    %275 = vector.broadcast %274 : vector<16x1xf32> to vector<16x32xf32>
    %276 = arith.mulf %266, %275 : vector<16x32xf32>
    %277 = vector.broadcast %172 : vector<1x32xf32> to vector<16x32xf32>
    %278 = arith.mulf %276, %277 : vector<16x32xf32>
    %279 = vector.broadcast %174 : vector<1x32xf32> to vector<16x32xf32>
    %280 = arith.addf %278, %279 : vector<16x32xf32>
    %c1_121 = arith.constant 1 : index
    %c0_122 = arith.constant 0 : index
    %c0_123 = arith.constant 0 : index
    %281 = vector.load %arg11[%c1_121, %c0_122, %c0_123] : memref<2x32x64xf32, #tpu.memory_space<vmem>>, vector<1x32x64xf32>
    %282 = vector.shape_cast %281 : vector<1x32x64xf32> to vector<32x64xf32>
    %c1_124 = arith.constant 1 : index
    %c0_125 = arith.constant 0 : index
    %c0_126 = arith.constant 0 : index
    %283 = vector.load %arg12[%c1_124, %c0_125, %c0_126] : memref<2x1x64xf32, #tpu.memory_space<vmem>>, vector<1x1x64xf32>
    %284 = vector.shape_cast %283 : vector<1x1x64xf32> to vector<1x64xf32>
    %c1_127 = arith.constant 1 : index
    %c0_128 = arith.constant 0 : index
    %c0_129 = arith.constant 0 : index
    %285 = vector.load %arg13[%c1_127, %c0_128, %c0_129] : memref<2x64x32xf32, #tpu.memory_space<vmem>>, vector<1x64x32xf32>
    %286 = vector.shape_cast %285 : vector<1x64x32xf32> to vector<64x32xf32>
    %c1_130 = arith.constant 1 : index
    %c0_131 = arith.constant 0 : index
    %c0_132 = arith.constant 0 : index
    %287 = vector.load %arg14[%c1_130, %c0_131, %c0_132] : memref<2x1x32xf32, #tpu.memory_space<vmem>>, vector<1x1x32xf32>
    %288 = vector.shape_cast %287 : vector<1x1x32xf32> to vector<1x32xf32>
    %c1_133 = arith.constant 1 : index
    %c0_134 = arith.constant 0 : index
    %c0_135 = arith.constant 0 : index
    %289 = vector.load %arg15[%c1_133, %c0_134, %c0_135] : memref<2x1x32xf32, #tpu.memory_space<vmem>>, vector<1x1x32xf32>
    %290 = vector.shape_cast %289 : vector<1x1x32xf32> to vector<1x32xf32>
    %c1_136 = arith.constant 1 : index
    %c0_137 = arith.constant 0 : index
    %c0_138 = arith.constant 0 : index
    %291 = vector.load %arg16[%c1_136, %c0_137, %c0_138] : memref<2x1x32xf32, #tpu.memory_space<vmem>>, vector<1x1x32xf32>
    %292 = vector.shape_cast %291 : vector<1x1x32xf32> to vector<1x32xf32>
    %cst_139 = arith.constant dense<0.000000e+00> : vector<16x64xf32>
    %293 = tpu.matmul %280, %282, %cst_139 {dimension_numbers = #tpu.dot_dimension_numbers<[1], [0], [0], [1], [0, 0, 1, 1], [], []>} : vector<16x32xf32>, vector<32x64xf32>, vector<16x64xf32> -> vector<16x64xf32>
    %294 = vector.broadcast %284 : vector<1x64xf32> to vector<16x64xf32>
    %295 = arith.addf %293, %294 : vector<16x64xf32>
    %cst_140 = arith.constant 0.000000e+00 : f32
    %296 = vector.broadcast %cst_140 : f32 to vector<16x64xf32>
    %297 = arith.maximumf %295, %296 : vector<16x64xf32>
    %cst_141 = arith.constant dense<0.000000e+00> : vector<16x32xf32>
    %298 = tpu.matmul %297, %286, %cst_141 {dimension_numbers = #tpu.dot_dimension_numbers<[1], [0], [0], [1], [0, 0, 1, 1], [], []>} : vector<16x64xf32>, vector<64x32xf32>, vector<16x32xf32> -> vector<16x32xf32>
    %299 = vector.broadcast %288 : vector<1x32xf32> to vector<16x32xf32>
    %300 = arith.addf %298, %299 : vector<16x32xf32>
    %301 = arith.addf %280, %300 : vector<16x32xf32>
    %cst_142 = arith.constant dense<0.000000e+00> : vector<16xf32>
    %302 = vector.multi_reduction <add>, %301, %cst_142 [1] : vector<16x32xf32> to vector<16xf32>
    %303 = vector.shape_cast %302 : vector<16xf32> to vector<16x1xf32>
    %cst_143 = arith.constant 3.200000e+01 : f32
    %304 = vector.broadcast %cst_143 : f32 to vector<16x1xf32>
    %305 = arith.divf %303, %304 : vector<16x1xf32>
    %306 = vector.broadcast %305 : vector<16x1xf32> to vector<16x32xf32>
    %307 = arith.subf %301, %306 : vector<16x32xf32>
    %308 = arith.mulf %307, %307 : vector<16x32xf32>
    %cst_144 = arith.constant dense<0.000000e+00> : vector<16xf32>
    %309 = vector.multi_reduction <add>, %308, %cst_144 [1] : vector<16x32xf32> to vector<16xf32>
    %310 = vector.shape_cast %309 : vector<16xf32> to vector<16x1xf32>
    %cst_145 = arith.constant 3.200000e+01 : f32
    %311 = vector.broadcast %cst_145 : f32 to vector<16x1xf32>
    %312 = arith.divf %310, %311 : vector<16x1xf32>
    %cst_146 = arith.constant 9.99999974E-6 : f32
    %313 = vector.broadcast %cst_146 : f32 to vector<16x1xf32>
    %314 = arith.addf %312, %313 : vector<16x1xf32>
    %315 = math.rsqrt %314 : vector<16x1xf32>
    %316 = vector.broadcast %315 : vector<16x1xf32> to vector<16x32xf32>
    %317 = arith.mulf %307, %316 : vector<16x32xf32>
    %318 = vector.broadcast %290 : vector<1x32xf32> to vector<16x32xf32>
    %319 = arith.mulf %317, %318 : vector<16x32xf32>
    %320 = vector.broadcast %292 : vector<1x32xf32> to vector<16x32xf32>
    %321 = arith.addf %319, %320 : vector<16x32xf32>
    %c0_147 = arith.constant 0 : index
    %c0_148 = arith.constant 0 : index
    %322 = vector.load %arg1[%c0_147, %c0_148] : memref<16x32xf32, #tpu.memory_space<vmem>>, vector<16x32xf32>
    %c0_149 = arith.constant 0 : index
    %c0_150 = arith.constant 0 : index
    %c0_151 = arith.constant 0 : index
    %323 = vector.load %arg17[%c0_149, %c0_150, %c0_151] : memref<2x32x96xf32, #tpu.memory_space<vmem>>, vector<1x32x96xf32>
    %324 = vector.shape_cast %323 : vector<1x32x96xf32> to vector<32x96xf32>
    %c0_152 = arith.constant 0 : index
    %c0_153 = arith.constant 0 : index
    %c0_154 = arith.constant 0 : index
    %325 = vector.load %arg18[%c0_152, %c0_153, %c0_154] : memref<2x1x96xf32, #tpu.memory_space<vmem>>, vector<1x1x96xf32>
    %326 = vector.shape_cast %325 : vector<1x1x96xf32> to vector<1x96xf32>
    %c0_155 = arith.constant 0 : index
    %c0_156 = arith.constant 0 : index
    %c0_157 = arith.constant 0 : index
    %327 = vector.load %arg19[%c0_155, %c0_156, %c0_157] : memref<2x32x32xf32, #tpu.memory_space<vmem>>, vector<1x32x32xf32>
    %328 = vector.shape_cast %327 : vector<1x32x32xf32> to vector<32x32xf32>
    %c0_158 = arith.constant 0 : index
    %c0_159 = arith.constant 0 : index
    %c0_160 = arith.constant 0 : index
    %329 = vector.load %arg20[%c0_158, %c0_159, %c0_160] : memref<2x1x32xf32, #tpu.memory_space<vmem>>, vector<1x1x32xf32>
    %330 = vector.shape_cast %329 : vector<1x1x32xf32> to vector<1x32xf32>
    %c0_161 = arith.constant 0 : index
    %c0_162 = arith.constant 0 : index
    %c0_163 = arith.constant 0 : index
    %331 = vector.load %arg21[%c0_161, %c0_162, %c0_163] : memref<2x1x32xf32, #tpu.memory_space<vmem>>, vector<1x1x32xf32>
    %332 = vector.shape_cast %331 : vector<1x1x32xf32> to vector<1x32xf32>
    %c0_164 = arith.constant 0 : index
    %c0_165 = arith.constant 0 : index
    %c0_166 = arith.constant 0 : index
    %333 = vector.load %arg22[%c0_164, %c0_165, %c0_166] : memref<2x1x32xf32, #tpu.memory_space<vmem>>, vector<1x1x32xf32>
    %334 = vector.shape_cast %333 : vector<1x1x32xf32> to vector<1x32xf32>
    %cst_167 = arith.constant dense<0.000000e+00> : vector<16x96xf32>
    %335 = tpu.matmul %322, %324, %cst_167 {dimension_numbers = #tpu.dot_dimension_numbers<[1], [0], [0], [1], [0, 0, 1, 1], [], []>} : vector<16x32xf32>, vector<32x96xf32>, vector<16x96xf32> -> vector<16x96xf32>
    %336 = vector.broadcast %326 : vector<1x96xf32> to vector<16x96xf32>
    %337 = arith.addf %335, %336 : vector<16x96xf32>
    %338 = vector.extract_strided_slice %337 {offsets = [0, 0], sizes = [16, 32], strides = [1, 1]} : vector<16x96xf32> to vector<16x32xf32>
    %339 = vector.extract_strided_slice %337 {offsets = [0, 32], sizes = [16, 32], strides = [1, 1]} : vector<16x96xf32> to vector<16x32xf32>
    %340 = vector.extract_strided_slice %337 {offsets = [0, 64], sizes = [16, 32], strides = [1, 1]} : vector<16x96xf32> to vector<16x32xf32>
    %cst_168 = arith.constant 0.000000e+00 : f32
    %341 = vector.broadcast %cst_168 : f32 to vector<16x32xf32>
    %342 = vector.extract_strided_slice %338 {offsets = [0, 0], sizes = [16, 8], strides = [1, 1]} : vector<16x32xf32> to vector<16x8xf32>
    %343 = vector.extract_strided_slice %339 {offsets = [0, 0], sizes = [16, 8], strides = [1, 1]} : vector<16x32xf32> to vector<16x8xf32>
    %cst_169 = arith.constant dense<0.000000e+00> : vector<16x16xf32>
    %344 = tpu.matmul %342, %343, %cst_169 {dimension_numbers = #tpu.dot_dimension_numbers<[1], [1], [0], [0], [0, 0, 1, 0], [], []>} : vector<16x8xf32>, vector<16x8xf32>, vector<16x16xf32> -> vector<16x16xf32>
    %345 = arith.addf %344, %1 : vector<16x16xf32>
    %cst_170 = arith.constant dense<0xFF800000> : vector<16xf32>
    %346 = vector.multi_reduction <maximumf>, %345, %cst_170 [1] : vector<16x16xf32> to vector<16xf32>
    %347 = vector.shape_cast %346 : vector<16xf32> to vector<16x1xf32>
    %348 = vector.broadcast %347 : vector<16x1xf32> to vector<16x16xf32>
    %349 = arith.subf %345, %348 : vector<16x16xf32>
    %350 = math.exp %349 : vector<16x16xf32>
    %cst_171 = arith.constant dense<0.000000e+00> : vector<16xf32>
    %351 = vector.multi_reduction <add>, %350, %cst_171 [1] : vector<16x16xf32> to vector<16xf32>
    %352 = vector.shape_cast %351 : vector<16xf32> to vector<16x1xf32>
    %353 = tpu.reciprocal %352 {approx = true} : vector<16x1xf32> -> vector<16x1xf32>
    %354 = vector.broadcast %353 : vector<16x1xf32> to vector<16x16xf32>
    %355 = arith.mulf %350, %354 : vector<16x16xf32>
    %356 = vector.extract_strided_slice %340 {offsets = [0, 0], sizes = [16, 8], strides = [1, 1]} : vector<16x32xf32> to vector<16x8xf32>
    %cst_172 = arith.constant dense<0.000000e+00> : vector<16x8xf32>
    %357 = tpu.matmul %355, %356, %cst_172 {dimension_numbers = #tpu.dot_dimension_numbers<[1], [0], [0], [1], [0, 0, 1, 1], [], []>} : vector<16x16xf32>, vector<16x8xf32>, vector<16x8xf32> -> vector<16x8xf32>
    %358 = vector.extract_strided_slice %328 {offsets = [0, 0], sizes = [8, 32], strides = [1, 1]} : vector<32x32xf32> to vector<8x32xf32>
    %cst_173 = arith.constant dense<0.000000e+00> : vector<16x32xf32>
    %359 = tpu.matmul %357, %358, %cst_173 {dimension_numbers = #tpu.dot_dimension_numbers<[1], [0], [0], [1], [0, 0, 1, 1], [], []>} : vector<16x8xf32>, vector<8x32xf32>, vector<16x32xf32> -> vector<16x32xf32>
    %360 = arith.addf %341, %359 : vector<16x32xf32>
    %361 = vector.extract_strided_slice %338 {offsets = [0, 8], sizes = [16, 8], strides = [1, 1]} : vector<16x32xf32> to vector<16x8xf32>
    %362 = vector.extract_strided_slice %339 {offsets = [0, 8], sizes = [16, 8], strides = [1, 1]} : vector<16x32xf32> to vector<16x8xf32>
    %cst_174 = arith.constant dense<0.000000e+00> : vector<16x16xf32>
    %363 = tpu.matmul %361, %362, %cst_174 {dimension_numbers = #tpu.dot_dimension_numbers<[1], [1], [0], [0], [0, 0, 1, 0], [], []>} : vector<16x8xf32>, vector<16x8xf32>, vector<16x16xf32> -> vector<16x16xf32>
    %364 = arith.addf %363, %1 : vector<16x16xf32>
    %cst_175 = arith.constant dense<0xFF800000> : vector<16xf32>
    %365 = vector.multi_reduction <maximumf>, %364, %cst_175 [1] : vector<16x16xf32> to vector<16xf32>
    %366 = vector.shape_cast %365 : vector<16xf32> to vector<16x1xf32>
    %367 = vector.broadcast %366 : vector<16x1xf32> to vector<16x16xf32>
    %368 = arith.subf %364, %367 : vector<16x16xf32>
    %369 = math.exp %368 : vector<16x16xf32>
    %cst_176 = arith.constant dense<0.000000e+00> : vector<16xf32>
    %370 = vector.multi_reduction <add>, %369, %cst_176 [1] : vector<16x16xf32> to vector<16xf32>
    %371 = vector.shape_cast %370 : vector<16xf32> to vector<16x1xf32>
    %372 = tpu.reciprocal %371 {approx = true} : vector<16x1xf32> -> vector<16x1xf32>
    %373 = vector.broadcast %372 : vector<16x1xf32> to vector<16x16xf32>
    %374 = arith.mulf %369, %373 : vector<16x16xf32>
    %375 = vector.extract_strided_slice %340 {offsets = [0, 8], sizes = [16, 8], strides = [1, 1]} : vector<16x32xf32> to vector<16x8xf32>
    %cst_177 = arith.constant dense<0.000000e+00> : vector<16x8xf32>
    %376 = tpu.matmul %374, %375, %cst_177 {dimension_numbers = #tpu.dot_dimension_numbers<[1], [0], [0], [1], [0, 0, 1, 1], [], []>} : vector<16x16xf32>, vector<16x8xf32>, vector<16x8xf32> -> vector<16x8xf32>
    %377 = vector.extract_strided_slice %328 {offsets = [8, 0], sizes = [8, 32], strides = [1, 1]} : vector<32x32xf32> to vector<8x32xf32>
    %cst_178 = arith.constant dense<0.000000e+00> : vector<16x32xf32>
    %378 = tpu.matmul %376, %377, %cst_178 {dimension_numbers = #tpu.dot_dimension_numbers<[1], [0], [0], [1], [0, 0, 1, 1], [], []>} : vector<16x8xf32>, vector<8x32xf32>, vector<16x32xf32> -> vector<16x32xf32>
    %379 = arith.addf %360, %378 : vector<16x32xf32>
    %380 = vector.extract_strided_slice %338 {offsets = [0, 16], sizes = [16, 8], strides = [1, 1]} : vector<16x32xf32> to vector<16x8xf32>
    %381 = vector.extract_strided_slice %339 {offsets = [0, 16], sizes = [16, 8], strides = [1, 1]} : vector<16x32xf32> to vector<16x8xf32>
    %cst_179 = arith.constant dense<0.000000e+00> : vector<16x16xf32>
    %382 = tpu.matmul %380, %381, %cst_179 {dimension_numbers = #tpu.dot_dimension_numbers<[1], [1], [0], [0], [0, 0, 1, 0], [], []>} : vector<16x8xf32>, vector<16x8xf32>, vector<16x16xf32> -> vector<16x16xf32>
    %383 = arith.addf %382, %1 : vector<16x16xf32>
    %cst_180 = arith.constant dense<0xFF800000> : vector<16xf32>
    %384 = vector.multi_reduction <maximumf>, %383, %cst_180 [1] : vector<16x16xf32> to vector<16xf32>
    %385 = vector.shape_cast %384 : vector<16xf32> to vector<16x1xf32>
    %386 = vector.broadcast %385 : vector<16x1xf32> to vector<16x16xf32>
    %387 = arith.subf %383, %386 : vector<16x16xf32>
    %388 = math.exp %387 : vector<16x16xf32>
    %cst_181 = arith.constant dense<0.000000e+00> : vector<16xf32>
    %389 = vector.multi_reduction <add>, %388, %cst_181 [1] : vector<16x16xf32> to vector<16xf32>
    %390 = vector.shape_cast %389 : vector<16xf32> to vector<16x1xf32>
    %391 = tpu.reciprocal %390 {approx = true} : vector<16x1xf32> -> vector<16x1xf32>
    %392 = vector.broadcast %391 : vector<16x1xf32> to vector<16x16xf32>
    %393 = arith.mulf %388, %392 : vector<16x16xf32>
    %394 = vector.extract_strided_slice %340 {offsets = [0, 16], sizes = [16, 8], strides = [1, 1]} : vector<16x32xf32> to vector<16x8xf32>
    %cst_182 = arith.constant dense<0.000000e+00> : vector<16x8xf32>
    %395 = tpu.matmul %393, %394, %cst_182 {dimension_numbers = #tpu.dot_dimension_numbers<[1], [0], [0], [1], [0, 0, 1, 1], [], []>} : vector<16x16xf32>, vector<16x8xf32>, vector<16x8xf32> -> vector<16x8xf32>
    %396 = vector.extract_strided_slice %328 {offsets = [16, 0], sizes = [8, 32], strides = [1, 1]} : vector<32x32xf32> to vector<8x32xf32>
    %cst_183 = arith.constant dense<0.000000e+00> : vector<16x32xf32>
    %397 = tpu.matmul %395, %396, %cst_183 {dimension_numbers = #tpu.dot_dimension_numbers<[1], [0], [0], [1], [0, 0, 1, 1], [], []>} : vector<16x8xf32>, vector<8x32xf32>, vector<16x32xf32> -> vector<16x32xf32>
    %398 = arith.addf %379, %397 : vector<16x32xf32>
    %399 = vector.extract_strided_slice %338 {offsets = [0, 24], sizes = [16, 8], strides = [1, 1]} : vector<16x32xf32> to vector<16x8xf32>
    %400 = vector.extract_strided_slice %339 {offsets = [0, 24], sizes = [16, 8], strides = [1, 1]} : vector<16x32xf32> to vector<16x8xf32>
    %cst_184 = arith.constant dense<0.000000e+00> : vector<16x16xf32>
    %401 = tpu.matmul %399, %400, %cst_184 {dimension_numbers = #tpu.dot_dimension_numbers<[1], [1], [0], [0], [0, 0, 1, 0], [], []>} : vector<16x8xf32>, vector<16x8xf32>, vector<16x16xf32> -> vector<16x16xf32>
    %402 = arith.addf %401, %1 : vector<16x16xf32>
    %cst_185 = arith.constant dense<0xFF800000> : vector<16xf32>
    %403 = vector.multi_reduction <maximumf>, %402, %cst_185 [1] : vector<16x16xf32> to vector<16xf32>
    %404 = vector.shape_cast %403 : vector<16xf32> to vector<16x1xf32>
    %405 = vector.broadcast %404 : vector<16x1xf32> to vector<16x16xf32>
    %406 = arith.subf %402, %405 : vector<16x16xf32>
    %407 = math.exp %406 : vector<16x16xf32>
    %cst_186 = arith.constant dense<0.000000e+00> : vector<16xf32>
    %408 = vector.multi_reduction <add>, %407, %cst_186 [1] : vector<16x16xf32> to vector<16xf32>
    %409 = vector.shape_cast %408 : vector<16xf32> to vector<16x1xf32>
    %410 = tpu.reciprocal %409 {approx = true} : vector<16x1xf32> -> vector<16x1xf32>
    %411 = vector.broadcast %410 : vector<16x1xf32> to vector<16x16xf32>
    %412 = arith.mulf %407, %411 : vector<16x16xf32>
    %413 = vector.extract_strided_slice %340 {offsets = [0, 24], sizes = [16, 8], strides = [1, 1]} : vector<16x32xf32> to vector<16x8xf32>
    %cst_187 = arith.constant dense<0.000000e+00> : vector<16x8xf32>
    %414 = tpu.matmul %412, %413, %cst_187 {dimension_numbers = #tpu.dot_dimension_numbers<[1], [0], [0], [1], [0, 0, 1, 1], [], []>} : vector<16x16xf32>, vector<16x8xf32>, vector<16x8xf32> -> vector<16x8xf32>
    %415 = vector.extract_strided_slice %328 {offsets = [24, 0], sizes = [8, 32], strides = [1, 1]} : vector<32x32xf32> to vector<8x32xf32>
    %cst_188 = arith.constant dense<0.000000e+00> : vector<16x32xf32>
    %416 = tpu.matmul %414, %415, %cst_188 {dimension_numbers = #tpu.dot_dimension_numbers<[1], [0], [0], [1], [0, 0, 1, 1], [], []>} : vector<16x8xf32>, vector<8x32xf32>, vector<16x32xf32> -> vector<16x32xf32>
    %417 = arith.addf %398, %416 : vector<16x32xf32>
    %418 = arith.addf %322, %417 : vector<16x32xf32>
    %419 = vector.broadcast %330 : vector<1x32xf32> to vector<16x32xf32>
    %420 = arith.addf %418, %419 : vector<16x32xf32>
    %cst_189 = arith.constant dense<0.000000e+00> : vector<16xf32>
    %421 = vector.multi_reduction <add>, %420, %cst_189 [1] : vector<16x32xf32> to vector<16xf32>
    %422 = vector.shape_cast %421 : vector<16xf32> to vector<16x1xf32>
    %cst_190 = arith.constant 3.200000e+01 : f32
    %423 = vector.broadcast %cst_190 : f32 to vector<16x1xf32>
    %424 = arith.divf %422, %423 : vector<16x1xf32>
    %425 = vector.broadcast %424 : vector<16x1xf32> to vector<16x32xf32>
    %426 = arith.subf %420, %425 : vector<16x32xf32>
    %427 = arith.mulf %426, %426 : vector<16x32xf32>
    %cst_191 = arith.constant dense<0.000000e+00> : vector<16xf32>
    %428 = vector.multi_reduction <add>, %427, %cst_191 [1] : vector<16x32xf32> to vector<16xf32>
    %429 = vector.shape_cast %428 : vector<16xf32> to vector<16x1xf32>
    %cst_192 = arith.constant 3.200000e+01 : f32
    %430 = vector.broadcast %cst_192 : f32 to vector<16x1xf32>
    %431 = arith.divf %429, %430 : vector<16x1xf32>
    %cst_193 = arith.constant 9.99999974E-6 : f32
    %432 = vector.broadcast %cst_193 : f32 to vector<16x1xf32>
    %433 = arith.addf %431, %432 : vector<16x1xf32>
    %434 = math.rsqrt %433 : vector<16x1xf32>
    %435 = vector.broadcast %434 : vector<16x1xf32> to vector<16x32xf32>
    %436 = arith.mulf %426, %435 : vector<16x32xf32>
    %437 = vector.broadcast %332 : vector<1x32xf32> to vector<16x32xf32>
    %438 = arith.mulf %436, %437 : vector<16x32xf32>
    %439 = vector.broadcast %334 : vector<1x32xf32> to vector<16x32xf32>
    %440 = arith.addf %438, %439 : vector<16x32xf32>
    %c0_194 = arith.constant 0 : index
    %c0_195 = arith.constant 0 : index
    %c0_196 = arith.constant 0 : index
    %441 = vector.load %arg23[%c0_194, %c0_195, %c0_196] : memref<2x32x96xf32, #tpu.memory_space<vmem>>, vector<1x32x96xf32>
    %442 = vector.shape_cast %441 : vector<1x32x96xf32> to vector<32x96xf32>
    %c0_197 = arith.constant 0 : index
    %c0_198 = arith.constant 0 : index
    %c0_199 = arith.constant 0 : index
    %443 = vector.load %arg24[%c0_197, %c0_198, %c0_199] : memref<2x1x96xf32, #tpu.memory_space<vmem>>, vector<1x1x96xf32>
    %444 = vector.shape_cast %443 : vector<1x1x96xf32> to vector<1x96xf32>
    %c0_200 = arith.constant 0 : index
    %c0_201 = arith.constant 0 : index
    %c0_202 = arith.constant 0 : index
    %445 = vector.load %arg25[%c0_200, %c0_201, %c0_202] : memref<2x32x32xf32, #tpu.memory_space<vmem>>, vector<1x32x32xf32>
    %446 = vector.shape_cast %445 : vector<1x32x32xf32> to vector<32x32xf32>
    %c0_203 = arith.constant 0 : index
    %c0_204 = arith.constant 0 : index
    %c0_205 = arith.constant 0 : index
    %447 = vector.load %arg26[%c0_203, %c0_204, %c0_205] : memref<2x1x32xf32, #tpu.memory_space<vmem>>, vector<1x1x32xf32>
    %448 = vector.shape_cast %447 : vector<1x1x32xf32> to vector<1x32xf32>
    %c0_206 = arith.constant 0 : index
    %c0_207 = arith.constant 0 : index
    %c0_208 = arith.constant 0 : index
    %449 = vector.load %arg27[%c0_206, %c0_207, %c0_208] : memref<2x1x32xf32, #tpu.memory_space<vmem>>, vector<1x1x32xf32>
    %450 = vector.shape_cast %449 : vector<1x1x32xf32> to vector<1x32xf32>
    %c0_209 = arith.constant 0 : index
    %c0_210 = arith.constant 0 : index
    %c0_211 = arith.constant 0 : index
    %451 = vector.load %arg28[%c0_209, %c0_210, %c0_211] : memref<2x1x32xf32, #tpu.memory_space<vmem>>, vector<1x1x32xf32>
    %452 = vector.shape_cast %451 : vector<1x1x32xf32> to vector<1x32xf32>
    %453 = vector.extract_strided_slice %442 {offsets = [0, 0], sizes = [32, 32], strides = [1, 1]} : vector<32x96xf32> to vector<32x32xf32>
    %cst_212 = arith.constant dense<0.000000e+00> : vector<16x32xf32>
    %454 = tpu.matmul %440, %453, %cst_212 {dimension_numbers = #tpu.dot_dimension_numbers<[1], [0], [0], [1], [0, 0, 1, 1], [], []>} : vector<16x32xf32>, vector<32x32xf32>, vector<16x32xf32> -> vector<16x32xf32>
    %455 = vector.extract_strided_slice %444 {offsets = [0, 0], sizes = [1, 32], strides = [1, 1]} : vector<1x96xf32> to vector<1x32xf32>
    %456 = vector.broadcast %455 : vector<1x32xf32> to vector<16x32xf32>
    %457 = arith.addf %454, %456 : vector<16x32xf32>
    %458 = vector.extract_strided_slice %442 {offsets = [0, 32], sizes = [32, 64], strides = [1, 1]} : vector<32x96xf32> to vector<32x64xf32>
    %cst_213 = arith.constant dense<0.000000e+00> : vector<16x64xf32>
    %459 = tpu.matmul %321, %458, %cst_213 {dimension_numbers = #tpu.dot_dimension_numbers<[1], [0], [0], [1], [0, 0, 1, 1], [], []>} : vector<16x32xf32>, vector<32x64xf32>, vector<16x64xf32> -> vector<16x64xf32>
    %460 = vector.extract_strided_slice %444 {offsets = [0, 32], sizes = [1, 64], strides = [1, 1]} : vector<1x96xf32> to vector<1x64xf32>
    %461 = vector.broadcast %460 : vector<1x64xf32> to vector<16x64xf32>
    %462 = arith.addf %459, %461 : vector<16x64xf32>
    %463 = vector.extract_strided_slice %462 {offsets = [0, 0], sizes = [16, 32], strides = [1, 1]} : vector<16x64xf32> to vector<16x32xf32>
    %464 = vector.extract_strided_slice %462 {offsets = [0, 32], sizes = [16, 32], strides = [1, 1]} : vector<16x64xf32> to vector<16x32xf32>
    %cst_214 = arith.constant 0.000000e+00 : f32
    %465 = vector.broadcast %cst_214 : f32 to vector<16x32xf32>
    %466 = vector.extract_strided_slice %457 {offsets = [0, 0], sizes = [16, 8], strides = [1, 1]} : vector<16x32xf32> to vector<16x8xf32>
    %467 = vector.extract_strided_slice %463 {offsets = [0, 0], sizes = [16, 8], strides = [1, 1]} : vector<16x32xf32> to vector<16x8xf32>
    %cst_215 = arith.constant dense<0.000000e+00> : vector<16x16xf32>
    %468 = tpu.matmul %466, %467, %cst_215 {dimension_numbers = #tpu.dot_dimension_numbers<[1], [1], [0], [0], [0, 0, 1, 0], [], []>} : vector<16x8xf32>, vector<16x8xf32>, vector<16x16xf32> -> vector<16x16xf32>
    %469 = arith.addf %468, %2 : vector<16x16xf32>
    %cst_216 = arith.constant dense<0xFF800000> : vector<16xf32>
    %470 = vector.multi_reduction <maximumf>, %469, %cst_216 [1] : vector<16x16xf32> to vector<16xf32>
    %471 = vector.shape_cast %470 : vector<16xf32> to vector<16x1xf32>
    %472 = vector.broadcast %471 : vector<16x1xf32> to vector<16x16xf32>
    %473 = arith.subf %469, %472 : vector<16x16xf32>
    %474 = math.exp %473 : vector<16x16xf32>
    %cst_217 = arith.constant dense<0.000000e+00> : vector<16xf32>
    %475 = vector.multi_reduction <add>, %474, %cst_217 [1] : vector<16x16xf32> to vector<16xf32>
    %476 = vector.shape_cast %475 : vector<16xf32> to vector<16x1xf32>
    %477 = tpu.reciprocal %476 {approx = true} : vector<16x1xf32> -> vector<16x1xf32>
    %478 = vector.broadcast %477 : vector<16x1xf32> to vector<16x16xf32>
    %479 = arith.mulf %474, %478 : vector<16x16xf32>
    %480 = vector.extract_strided_slice %464 {offsets = [0, 0], sizes = [16, 8], strides = [1, 1]} : vector<16x32xf32> to vector<16x8xf32>
    %cst_218 = arith.constant dense<0.000000e+00> : vector<16x8xf32>
    %481 = tpu.matmul %479, %480, %cst_218 {dimension_numbers = #tpu.dot_dimension_numbers<[1], [0], [0], [1], [0, 0, 1, 1], [], []>} : vector<16x16xf32>, vector<16x8xf32>, vector<16x8xf32> -> vector<16x8xf32>
    %482 = vector.extract_strided_slice %446 {offsets = [0, 0], sizes = [8, 32], strides = [1, 1]} : vector<32x32xf32> to vector<8x32xf32>
    %cst_219 = arith.constant dense<0.000000e+00> : vector<16x32xf32>
    %483 = tpu.matmul %481, %482, %cst_219 {dimension_numbers = #tpu.dot_dimension_numbers<[1], [0], [0], [1], [0, 0, 1, 1], [], []>} : vector<16x8xf32>, vector<8x32xf32>, vector<16x32xf32> -> vector<16x32xf32>
    %484 = arith.addf %465, %483 : vector<16x32xf32>
    %485 = vector.extract_strided_slice %457 {offsets = [0, 8], sizes = [16, 8], strides = [1, 1]} : vector<16x32xf32> to vector<16x8xf32>
    %486 = vector.extract_strided_slice %463 {offsets = [0, 8], sizes = [16, 8], strides = [1, 1]} : vector<16x32xf32> to vector<16x8xf32>
    %cst_220 = arith.constant dense<0.000000e+00> : vector<16x16xf32>
    %487 = tpu.matmul %485, %486, %cst_220 {dimension_numbers = #tpu.dot_dimension_numbers<[1], [1], [0], [0], [0, 0, 1, 0], [], []>} : vector<16x8xf32>, vector<16x8xf32>, vector<16x16xf32> -> vector<16x16xf32>
    %488 = arith.addf %487, %2 : vector<16x16xf32>
    %cst_221 = arith.constant dense<0xFF800000> : vector<16xf32>
    %489 = vector.multi_reduction <maximumf>, %488, %cst_221 [1] : vector<16x16xf32> to vector<16xf32>
    %490 = vector.shape_cast %489 : vector<16xf32> to vector<16x1xf32>
    %491 = vector.broadcast %490 : vector<16x1xf32> to vector<16x16xf32>
    %492 = arith.subf %488, %491 : vector<16x16xf32>
    %493 = math.exp %492 : vector<16x16xf32>
    %cst_222 = arith.constant dense<0.000000e+00> : vector<16xf32>
    %494 = vector.multi_reduction <add>, %493, %cst_222 [1] : vector<16x16xf32> to vector<16xf32>
    %495 = vector.shape_cast %494 : vector<16xf32> to vector<16x1xf32>
    %496 = tpu.reciprocal %495 {approx = true} : vector<16x1xf32> -> vector<16x1xf32>
    %497 = vector.broadcast %496 : vector<16x1xf32> to vector<16x16xf32>
    %498 = arith.mulf %493, %497 : vector<16x16xf32>
    %499 = vector.extract_strided_slice %464 {offsets = [0, 8], sizes = [16, 8], strides = [1, 1]} : vector<16x32xf32> to vector<16x8xf32>
    %cst_223 = arith.constant dense<0.000000e+00> : vector<16x8xf32>
    %500 = tpu.matmul %498, %499, %cst_223 {dimension_numbers = #tpu.dot_dimension_numbers<[1], [0], [0], [1], [0, 0, 1, 1], [], []>} : vector<16x16xf32>, vector<16x8xf32>, vector<16x8xf32> -> vector<16x8xf32>
    %501 = vector.extract_strided_slice %446 {offsets = [8, 0], sizes = [8, 32], strides = [1, 1]} : vector<32x32xf32> to vector<8x32xf32>
    %cst_224 = arith.constant dense<0.000000e+00> : vector<16x32xf32>
    %502 = tpu.matmul %500, %501, %cst_224 {dimension_numbers = #tpu.dot_dimension_numbers<[1], [0], [0], [1], [0, 0, 1, 1], [], []>} : vector<16x8xf32>, vector<8x32xf32>, vector<16x32xf32> -> vector<16x32xf32>
    %503 = arith.addf %484, %502 : vector<16x32xf32>
    %504 = vector.extract_strided_slice %457 {offsets = [0, 16], sizes = [16, 8], strides = [1, 1]} : vector<16x32xf32> to vector<16x8xf32>
    %505 = vector.extract_strided_slice %463 {offsets = [0, 16], sizes = [16, 8], strides = [1, 1]} : vector<16x32xf32> to vector<16x8xf32>
    %cst_225 = arith.constant dense<0.000000e+00> : vector<16x16xf32>
    %506 = tpu.matmul %504, %505, %cst_225 {dimension_numbers = #tpu.dot_dimension_numbers<[1], [1], [0], [0], [0, 0, 1, 0], [], []>} : vector<16x8xf32>, vector<16x8xf32>, vector<16x16xf32> -> vector<16x16xf32>
    %507 = arith.addf %506, %2 : vector<16x16xf32>
    %cst_226 = arith.constant dense<0xFF800000> : vector<16xf32>
    %508 = vector.multi_reduction <maximumf>, %507, %cst_226 [1] : vector<16x16xf32> to vector<16xf32>
    %509 = vector.shape_cast %508 : vector<16xf32> to vector<16x1xf32>
    %510 = vector.broadcast %509 : vector<16x1xf32> to vector<16x16xf32>
    %511 = arith.subf %507, %510 : vector<16x16xf32>
    %512 = math.exp %511 : vector<16x16xf32>
    %cst_227 = arith.constant dense<0.000000e+00> : vector<16xf32>
    %513 = vector.multi_reduction <add>, %512, %cst_227 [1] : vector<16x16xf32> to vector<16xf32>
    %514 = vector.shape_cast %513 : vector<16xf32> to vector<16x1xf32>
    %515 = tpu.reciprocal %514 {approx = true} : vector<16x1xf32> -> vector<16x1xf32>
    %516 = vector.broadcast %515 : vector<16x1xf32> to vector<16x16xf32>
    %517 = arith.mulf %512, %516 : vector<16x16xf32>
    %518 = vector.extract_strided_slice %464 {offsets = [0, 16], sizes = [16, 8], strides = [1, 1]} : vector<16x32xf32> to vector<16x8xf32>
    %cst_228 = arith.constant dense<0.000000e+00> : vector<16x8xf32>
    %519 = tpu.matmul %517, %518, %cst_228 {dimension_numbers = #tpu.dot_dimension_numbers<[1], [0], [0], [1], [0, 0, 1, 1], [], []>} : vector<16x16xf32>, vector<16x8xf32>, vector<16x8xf32> -> vector<16x8xf32>
    %520 = vector.extract_strided_slice %446 {offsets = [16, 0], sizes = [8, 32], strides = [1, 1]} : vector<32x32xf32> to vector<8x32xf32>
    %cst_229 = arith.constant dense<0.000000e+00> : vector<16x32xf32>
    %521 = tpu.matmul %519, %520, %cst_229 {dimension_numbers = #tpu.dot_dimension_numbers<[1], [0], [0], [1], [0, 0, 1, 1], [], []>} : vector<16x8xf32>, vector<8x32xf32>, vector<16x32xf32> -> vector<16x32xf32>
    %522 = arith.addf %503, %521 : vector<16x32xf32>
    %523 = vector.extract_strided_slice %457 {offsets = [0, 24], sizes = [16, 8], strides = [1, 1]} : vector<16x32xf32> to vector<16x8xf32>
    %524 = vector.extract_strided_slice %463 {offsets = [0, 24], sizes = [16, 8], strides = [1, 1]} : vector<16x32xf32> to vector<16x8xf32>
    %cst_230 = arith.constant dense<0.000000e+00> : vector<16x16xf32>
    %525 = tpu.matmul %523, %524, %cst_230 {dimension_numbers = #tpu.dot_dimension_numbers<[1], [1], [0], [0], [0, 0, 1, 0], [], []>} : vector<16x8xf32>, vector<16x8xf32>, vector<16x16xf32> -> vector<16x16xf32>
    %526 = arith.addf %525, %2 : vector<16x16xf32>
    %cst_231 = arith.constant dense<0xFF800000> : vector<16xf32>
    %527 = vector.multi_reduction <maximumf>, %526, %cst_231 [1] : vector<16x16xf32> to vector<16xf32>
    %528 = vector.shape_cast %527 : vector<16xf32> to vector<16x1xf32>
    %529 = vector.broadcast %528 : vector<16x1xf32> to vector<16x16xf32>
    %530 = arith.subf %526, %529 : vector<16x16xf32>
    %531 = math.exp %530 : vector<16x16xf32>
    %cst_232 = arith.constant dense<0.000000e+00> : vector<16xf32>
    %532 = vector.multi_reduction <add>, %531, %cst_232 [1] : vector<16x16xf32> to vector<16xf32>
    %533 = vector.shape_cast %532 : vector<16xf32> to vector<16x1xf32>
    %534 = tpu.reciprocal %533 {approx = true} : vector<16x1xf32> -> vector<16x1xf32>
    %535 = vector.broadcast %534 : vector<16x1xf32> to vector<16x16xf32>
    %536 = arith.mulf %531, %535 : vector<16x16xf32>
    %537 = vector.extract_strided_slice %464 {offsets = [0, 24], sizes = [16, 8], strides = [1, 1]} : vector<16x32xf32> to vector<16x8xf32>
    %cst_233 = arith.constant dense<0.000000e+00> : vector<16x8xf32>
    %538 = tpu.matmul %536, %537, %cst_233 {dimension_numbers = #tpu.dot_dimension_numbers<[1], [0], [0], [1], [0, 0, 1, 1], [], []>} : vector<16x16xf32>, vector<16x8xf32>, vector<16x8xf32> -> vector<16x8xf32>
    %539 = vector.extract_strided_slice %446 {offsets = [24, 0], sizes = [8, 32], strides = [1, 1]} : vector<32x32xf32> to vector<8x32xf32>
    %cst_234 = arith.constant dense<0.000000e+00> : vector<16x32xf32>
    %540 = tpu.matmul %538, %539, %cst_234 {dimension_numbers = #tpu.dot_dimension_numbers<[1], [0], [0], [1], [0, 0, 1, 1], [], []>} : vector<16x8xf32>, vector<8x32xf32>, vector<16x32xf32> -> vector<16x32xf32>
    %541 = arith.addf %522, %540 : vector<16x32xf32>
    %542 = arith.addf %440, %541 : vector<16x32xf32>
    %543 = vector.broadcast %448 : vector<1x32xf32> to vector<16x32xf32>
    %544 = arith.addf %542, %543 : vector<16x32xf32>
    %cst_235 = arith.constant dense<0.000000e+00> : vector<16xf32>
    %545 = vector.multi_reduction <add>, %544, %cst_235 [1] : vector<16x32xf32> to vector<16xf32>
    %546 = vector.shape_cast %545 : vector<16xf32> to vector<16x1xf32>
    %cst_236 = arith.constant 3.200000e+01 : f32
    %547 = vector.broadcast %cst_236 : f32 to vector<16x1xf32>
    %548 = arith.divf %546, %547 : vector<16x1xf32>
    %549 = vector.broadcast %548 : vector<16x1xf32> to vector<16x32xf32>
    %550 = arith.subf %544, %549 : vector<16x32xf32>
    %551 = arith.mulf %550, %550 : vector<16x32xf32>
    %cst_237 = arith.constant dense<0.000000e+00> : vector<16xf32>
    %552 = vector.multi_reduction <add>, %551, %cst_237 [1] : vector<16x32xf32> to vector<16xf32>
    %553 = vector.shape_cast %552 : vector<16xf32> to vector<16x1xf32>
    %cst_238 = arith.constant 3.200000e+01 : f32
    %554 = vector.broadcast %cst_238 : f32 to vector<16x1xf32>
    %555 = arith.divf %553, %554 : vector<16x1xf32>
    %cst_239 = arith.constant 9.99999974E-6 : f32
    %556 = vector.broadcast %cst_239 : f32 to vector<16x1xf32>
    %557 = arith.addf %555, %556 : vector<16x1xf32>
    %558 = math.rsqrt %557 : vector<16x1xf32>
    %559 = vector.broadcast %558 : vector<16x1xf32> to vector<16x32xf32>
    %560 = arith.mulf %550, %559 : vector<16x32xf32>
    %561 = vector.broadcast %450 : vector<1x32xf32> to vector<16x32xf32>
    %562 = arith.mulf %560, %561 : vector<16x32xf32>
    %563 = vector.broadcast %452 : vector<1x32xf32> to vector<16x32xf32>
    %564 = arith.addf %562, %563 : vector<16x32xf32>
    %c0_240 = arith.constant 0 : index
    %c0_241 = arith.constant 0 : index
    %c0_242 = arith.constant 0 : index
    %565 = vector.load %arg29[%c0_240, %c0_241, %c0_242] : memref<2x32x64xf32, #tpu.memory_space<vmem>>, vector<1x32x64xf32>
    %566 = vector.shape_cast %565 : vector<1x32x64xf32> to vector<32x64xf32>
    %c0_243 = arith.constant 0 : index
    %c0_244 = arith.constant 0 : index
    %c0_245 = arith.constant 0 : index
    %567 = vector.load %arg30[%c0_243, %c0_244, %c0_245] : memref<2x1x64xf32, #tpu.memory_space<vmem>>, vector<1x1x64xf32>
    %568 = vector.shape_cast %567 : vector<1x1x64xf32> to vector<1x64xf32>
    %c0_246 = arith.constant 0 : index
    %c0_247 = arith.constant 0 : index
    %c0_248 = arith.constant 0 : index
    %569 = vector.load %arg31[%c0_246, %c0_247, %c0_248] : memref<2x64x32xf32, #tpu.memory_space<vmem>>, vector<1x64x32xf32>
    %570 = vector.shape_cast %569 : vector<1x64x32xf32> to vector<64x32xf32>
    %c0_249 = arith.constant 0 : index
    %c0_250 = arith.constant 0 : index
    %c0_251 = arith.constant 0 : index
    %571 = vector.load %arg32[%c0_249, %c0_250, %c0_251] : memref<2x1x32xf32, #tpu.memory_space<vmem>>, vector<1x1x32xf32>
    %572 = vector.shape_cast %571 : vector<1x1x32xf32> to vector<1x32xf32>
    %c0_252 = arith.constant 0 : index
    %c0_253 = arith.constant 0 : index
    %c0_254 = arith.constant 0 : index
    %573 = vector.load %arg33[%c0_252, %c0_253, %c0_254] : memref<2x1x32xf32, #tpu.memory_space<vmem>>, vector<1x1x32xf32>
    %574 = vector.shape_cast %573 : vector<1x1x32xf32> to vector<1x32xf32>
    %c0_255 = arith.constant 0 : index
    %c0_256 = arith.constant 0 : index
    %c0_257 = arith.constant 0 : index
    %575 = vector.load %arg34[%c0_255, %c0_256, %c0_257] : memref<2x1x32xf32, #tpu.memory_space<vmem>>, vector<1x1x32xf32>
    %576 = vector.shape_cast %575 : vector<1x1x32xf32> to vector<1x32xf32>
    %cst_258 = arith.constant dense<0.000000e+00> : vector<16x64xf32>
    %577 = tpu.matmul %564, %566, %cst_258 {dimension_numbers = #tpu.dot_dimension_numbers<[1], [0], [0], [1], [0, 0, 1, 1], [], []>} : vector<16x32xf32>, vector<32x64xf32>, vector<16x64xf32> -> vector<16x64xf32>
    %578 = vector.broadcast %568 : vector<1x64xf32> to vector<16x64xf32>
    %579 = arith.addf %577, %578 : vector<16x64xf32>
    %cst_259 = arith.constant 0.000000e+00 : f32
    %580 = vector.broadcast %cst_259 : f32 to vector<16x64xf32>
    %581 = arith.maximumf %579, %580 : vector<16x64xf32>
    %cst_260 = arith.constant dense<0.000000e+00> : vector<16x32xf32>
    %582 = tpu.matmul %581, %570, %cst_260 {dimension_numbers = #tpu.dot_dimension_numbers<[1], [0], [0], [1], [0, 0, 1, 1], [], []>} : vector<16x64xf32>, vector<64x32xf32>, vector<16x32xf32> -> vector<16x32xf32>
    %583 = vector.broadcast %572 : vector<1x32xf32> to vector<16x32xf32>
    %584 = arith.addf %582, %583 : vector<16x32xf32>
    %585 = arith.addf %564, %584 : vector<16x32xf32>
    %cst_261 = arith.constant dense<0.000000e+00> : vector<16xf32>
    %586 = vector.multi_reduction <add>, %585, %cst_261 [1] : vector<16x32xf32> to vector<16xf32>
    %587 = vector.shape_cast %586 : vector<16xf32> to vector<16x1xf32>
    %cst_262 = arith.constant 3.200000e+01 : f32
    %588 = vector.broadcast %cst_262 : f32 to vector<16x1xf32>
    %589 = arith.divf %587, %588 : vector<16x1xf32>
    %590 = vector.broadcast %589 : vector<16x1xf32> to vector<16x32xf32>
    %591 = arith.subf %585, %590 : vector<16x32xf32>
    %592 = arith.mulf %591, %591 : vector<16x32xf32>
    %cst_263 = arith.constant dense<0.000000e+00> : vector<16xf32>
    %593 = vector.multi_reduction <add>, %592, %cst_263 [1] : vector<16x32xf32> to vector<16xf32>
    %594 = vector.shape_cast %593 : vector<16xf32> to vector<16x1xf32>
    %cst_264 = arith.constant 3.200000e+01 : f32
    %595 = vector.broadcast %cst_264 : f32 to vector<16x1xf32>
    %596 = arith.divf %594, %595 : vector<16x1xf32>
    %cst_265 = arith.constant 9.99999974E-6 : f32
    %597 = vector.broadcast %cst_265 : f32 to vector<16x1xf32>
    %598 = arith.addf %596, %597 : vector<16x1xf32>
    %599 = math.rsqrt %598 : vector<16x1xf32>
    %600 = vector.broadcast %599 : vector<16x1xf32> to vector<16x32xf32>
    %601 = arith.mulf %591, %600 : vector<16x32xf32>
    %602 = vector.broadcast %574 : vector<1x32xf32> to vector<16x32xf32>
    %603 = arith.mulf %601, %602 : vector<16x32xf32>
    %604 = vector.broadcast %576 : vector<1x32xf32> to vector<16x32xf32>
    %605 = arith.addf %603, %604 : vector<16x32xf32>
    %c1_266 = arith.constant 1 : index
    %c0_267 = arith.constant 0 : index
    %c0_268 = arith.constant 0 : index
    %606 = vector.load %arg17[%c1_266, %c0_267, %c0_268] : memref<2x32x96xf32, #tpu.memory_space<vmem>>, vector<1x32x96xf32>
    %607 = vector.shape_cast %606 : vector<1x32x96xf32> to vector<32x96xf32>
    %c1_269 = arith.constant 1 : index
    %c0_270 = arith.constant 0 : index
    %c0_271 = arith.constant 0 : index
    %608 = vector.load %arg18[%c1_269, %c0_270, %c0_271] : memref<2x1x96xf32, #tpu.memory_space<vmem>>, vector<1x1x96xf32>
    %609 = vector.shape_cast %608 : vector<1x1x96xf32> to vector<1x96xf32>
    %c1_272 = arith.constant 1 : index
    %c0_273 = arith.constant 0 : index
    %c0_274 = arith.constant 0 : index
    %610 = vector.load %arg19[%c1_272, %c0_273, %c0_274] : memref<2x32x32xf32, #tpu.memory_space<vmem>>, vector<1x32x32xf32>
    %611 = vector.shape_cast %610 : vector<1x32x32xf32> to vector<32x32xf32>
    %c1_275 = arith.constant 1 : index
    %c0_276 = arith.constant 0 : index
    %c0_277 = arith.constant 0 : index
    %612 = vector.load %arg20[%c1_275, %c0_276, %c0_277] : memref<2x1x32xf32, #tpu.memory_space<vmem>>, vector<1x1x32xf32>
    %613 = vector.shape_cast %612 : vector<1x1x32xf32> to vector<1x32xf32>
    %c1_278 = arith.constant 1 : index
    %c0_279 = arith.constant 0 : index
    %c0_280 = arith.constant 0 : index
    %614 = vector.load %arg21[%c1_278, %c0_279, %c0_280] : memref<2x1x32xf32, #tpu.memory_space<vmem>>, vector<1x1x32xf32>
    %615 = vector.shape_cast %614 : vector<1x1x32xf32> to vector<1x32xf32>
    %c1_281 = arith.constant 1 : index
    %c0_282 = arith.constant 0 : index
    %c0_283 = arith.constant 0 : index
    %616 = vector.load %arg22[%c1_281, %c0_282, %c0_283] : memref<2x1x32xf32, #tpu.memory_space<vmem>>, vector<1x1x32xf32>
    %617 = vector.shape_cast %616 : vector<1x1x32xf32> to vector<1x32xf32>
    %cst_284 = arith.constant dense<0.000000e+00> : vector<16x96xf32>
    %618 = tpu.matmul %605, %607, %cst_284 {dimension_numbers = #tpu.dot_dimension_numbers<[1], [0], [0], [1], [0, 0, 1, 1], [], []>} : vector<16x32xf32>, vector<32x96xf32>, vector<16x96xf32> -> vector<16x96xf32>
    %619 = vector.broadcast %609 : vector<1x96xf32> to vector<16x96xf32>
    %620 = arith.addf %618, %619 : vector<16x96xf32>
    %621 = vector.extract_strided_slice %620 {offsets = [0, 0], sizes = [16, 32], strides = [1, 1]} : vector<16x96xf32> to vector<16x32xf32>
    %622 = vector.extract_strided_slice %620 {offsets = [0, 32], sizes = [16, 32], strides = [1, 1]} : vector<16x96xf32> to vector<16x32xf32>
    %623 = vector.extract_strided_slice %620 {offsets = [0, 64], sizes = [16, 32], strides = [1, 1]} : vector<16x96xf32> to vector<16x32xf32>
    %cst_285 = arith.constant 0.000000e+00 : f32
    %624 = vector.broadcast %cst_285 : f32 to vector<16x32xf32>
    %625 = vector.extract_strided_slice %621 {offsets = [0, 0], sizes = [16, 8], strides = [1, 1]} : vector<16x32xf32> to vector<16x8xf32>
    %626 = vector.extract_strided_slice %622 {offsets = [0, 0], sizes = [16, 8], strides = [1, 1]} : vector<16x32xf32> to vector<16x8xf32>
    %cst_286 = arith.constant dense<0.000000e+00> : vector<16x16xf32>
    %627 = tpu.matmul %625, %626, %cst_286 {dimension_numbers = #tpu.dot_dimension_numbers<[1], [1], [0], [0], [0, 0, 1, 0], [], []>} : vector<16x8xf32>, vector<16x8xf32>, vector<16x16xf32> -> vector<16x16xf32>
    %628 = arith.addf %627, %1 : vector<16x16xf32>
    %cst_287 = arith.constant dense<0xFF800000> : vector<16xf32>
    %629 = vector.multi_reduction <maximumf>, %628, %cst_287 [1] : vector<16x16xf32> to vector<16xf32>
    %630 = vector.shape_cast %629 : vector<16xf32> to vector<16x1xf32>
    %631 = vector.broadcast %630 : vector<16x1xf32> to vector<16x16xf32>
    %632 = arith.subf %628, %631 : vector<16x16xf32>
    %633 = math.exp %632 : vector<16x16xf32>
    %cst_288 = arith.constant dense<0.000000e+00> : vector<16xf32>
    %634 = vector.multi_reduction <add>, %633, %cst_288 [1] : vector<16x16xf32> to vector<16xf32>
    %635 = vector.shape_cast %634 : vector<16xf32> to vector<16x1xf32>
    %636 = tpu.reciprocal %635 {approx = true} : vector<16x1xf32> -> vector<16x1xf32>
    %637 = vector.broadcast %636 : vector<16x1xf32> to vector<16x16xf32>
    %638 = arith.mulf %633, %637 : vector<16x16xf32>
    %639 = vector.extract_strided_slice %623 {offsets = [0, 0], sizes = [16, 8], strides = [1, 1]} : vector<16x32xf32> to vector<16x8xf32>
    %cst_289 = arith.constant dense<0.000000e+00> : vector<16x8xf32>
    %640 = tpu.matmul %638, %639, %cst_289 {dimension_numbers = #tpu.dot_dimension_numbers<[1], [0], [0], [1], [0, 0, 1, 1], [], []>} : vector<16x16xf32>, vector<16x8xf32>, vector<16x8xf32> -> vector<16x8xf32>
    %641 = vector.extract_strided_slice %611 {offsets = [0, 0], sizes = [8, 32], strides = [1, 1]} : vector<32x32xf32> to vector<8x32xf32>
    %cst_290 = arith.constant dense<0.000000e+00> : vector<16x32xf32>
    %642 = tpu.matmul %640, %641, %cst_290 {dimension_numbers = #tpu.dot_dimension_numbers<[1], [0], [0], [1], [0, 0, 1, 1], [], []>} : vector<16x8xf32>, vector<8x32xf32>, vector<16x32xf32> -> vector<16x32xf32>
    %643 = arith.addf %624, %642 : vector<16x32xf32>
    %644 = vector.extract_strided_slice %621 {offsets = [0, 8], sizes = [16, 8], strides = [1, 1]} : vector<16x32xf32> to vector<16x8xf32>
    %645 = vector.extract_strided_slice %622 {offsets = [0, 8], sizes = [16, 8], strides = [1, 1]} : vector<16x32xf32> to vector<16x8xf32>
    %cst_291 = arith.constant dense<0.000000e+00> : vector<16x16xf32>
    %646 = tpu.matmul %644, %645, %cst_291 {dimension_numbers = #tpu.dot_dimension_numbers<[1], [1], [0], [0], [0, 0, 1, 0], [], []>} : vector<16x8xf32>, vector<16x8xf32>, vector<16x16xf32> -> vector<16x16xf32>
    %647 = arith.addf %646, %1 : vector<16x16xf32>
    %cst_292 = arith.constant dense<0xFF800000> : vector<16xf32>
    %648 = vector.multi_reduction <maximumf>, %647, %cst_292 [1] : vector<16x16xf32> to vector<16xf32>
    %649 = vector.shape_cast %648 : vector<16xf32> to vector<16x1xf32>
    %650 = vector.broadcast %649 : vector<16x1xf32> to vector<16x16xf32>
    %651 = arith.subf %647, %650 : vector<16x16xf32>
    %652 = math.exp %651 : vector<16x16xf32>
    %cst_293 = arith.constant dense<0.000000e+00> : vector<16xf32>
    %653 = vector.multi_reduction <add>, %652, %cst_293 [1] : vector<16x16xf32> to vector<16xf32>
    %654 = vector.shape_cast %653 : vector<16xf32> to vector<16x1xf32>
    %655 = tpu.reciprocal %654 {approx = true} : vector<16x1xf32> -> vector<16x1xf32>
    %656 = vector.broadcast %655 : vector<16x1xf32> to vector<16x16xf32>
    %657 = arith.mulf %652, %656 : vector<16x16xf32>
    %658 = vector.extract_strided_slice %623 {offsets = [0, 8], sizes = [16, 8], strides = [1, 1]} : vector<16x32xf32> to vector<16x8xf32>
    %cst_294 = arith.constant dense<0.000000e+00> : vector<16x8xf32>
    %659 = tpu.matmul %657, %658, %cst_294 {dimension_numbers = #tpu.dot_dimension_numbers<[1], [0], [0], [1], [0, 0, 1, 1], [], []>} : vector<16x16xf32>, vector<16x8xf32>, vector<16x8xf32> -> vector<16x8xf32>
    %660 = vector.extract_strided_slice %611 {offsets = [8, 0], sizes = [8, 32], strides = [1, 1]} : vector<32x32xf32> to vector<8x32xf32>
    %cst_295 = arith.constant dense<0.000000e+00> : vector<16x32xf32>
    %661 = tpu.matmul %659, %660, %cst_295 {dimension_numbers = #tpu.dot_dimension_numbers<[1], [0], [0], [1], [0, 0, 1, 1], [], []>} : vector<16x8xf32>, vector<8x32xf32>, vector<16x32xf32> -> vector<16x32xf32>
    %662 = arith.addf %643, %661 : vector<16x32xf32>
    %663 = vector.extract_strided_slice %621 {offsets = [0, 16], sizes = [16, 8], strides = [1, 1]} : vector<16x32xf32> to vector<16x8xf32>
    %664 = vector.extract_strided_slice %622 {offsets = [0, 16], sizes = [16, 8], strides = [1, 1]} : vector<16x32xf32> to vector<16x8xf32>
    %cst_296 = arith.constant dense<0.000000e+00> : vector<16x16xf32>
    %665 = tpu.matmul %663, %664, %cst_296 {dimension_numbers = #tpu.dot_dimension_numbers<[1], [1], [0], [0], [0, 0, 1, 0], [], []>} : vector<16x8xf32>, vector<16x8xf32>, vector<16x16xf32> -> vector<16x16xf32>
    %666 = arith.addf %665, %1 : vector<16x16xf32>
    %cst_297 = arith.constant dense<0xFF800000> : vector<16xf32>
    %667 = vector.multi_reduction <maximumf>, %666, %cst_297 [1] : vector<16x16xf32> to vector<16xf32>
    %668 = vector.shape_cast %667 : vector<16xf32> to vector<16x1xf32>
    %669 = vector.broadcast %668 : vector<16x1xf32> to vector<16x16xf32>
    %670 = arith.subf %666, %669 : vector<16x16xf32>
    %671 = math.exp %670 : vector<16x16xf32>
    %cst_298 = arith.constant dense<0.000000e+00> : vector<16xf32>
    %672 = vector.multi_reduction <add>, %671, %cst_298 [1] : vector<16x16xf32> to vector<16xf32>
    %673 = vector.shape_cast %672 : vector<16xf32> to vector<16x1xf32>
    %674 = tpu.reciprocal %673 {approx = true} : vector<16x1xf32> -> vector<16x1xf32>
    %675 = vector.broadcast %674 : vector<16x1xf32> to vector<16x16xf32>
    %676 = arith.mulf %671, %675 : vector<16x16xf32>
    %677 = vector.extract_strided_slice %623 {offsets = [0, 16], sizes = [16, 8], strides = [1, 1]} : vector<16x32xf32> to vector<16x8xf32>
    %cst_299 = arith.constant dense<0.000000e+00> : vector<16x8xf32>
    %678 = tpu.matmul %676, %677, %cst_299 {dimension_numbers = #tpu.dot_dimension_numbers<[1], [0], [0], [1], [0, 0, 1, 1], [], []>} : vector<16x16xf32>, vector<16x8xf32>, vector<16x8xf32> -> vector<16x8xf32>
    %679 = vector.extract_strided_slice %611 {offsets = [16, 0], sizes = [8, 32], strides = [1, 1]} : vector<32x32xf32> to vector<8x32xf32>
    %cst_300 = arith.constant dense<0.000000e+00> : vector<16x32xf32>
    %680 = tpu.matmul %678, %679, %cst_300 {dimension_numbers = #tpu.dot_dimension_numbers<[1], [0], [0], [1], [0, 0, 1, 1], [], []>} : vector<16x8xf32>, vector<8x32xf32>, vector<16x32xf32> -> vector<16x32xf32>
    %681 = arith.addf %662, %680 : vector<16x32xf32>
    %682 = vector.extract_strided_slice %621 {offsets = [0, 24], sizes = [16, 8], strides = [1, 1]} : vector<16x32xf32> to vector<16x8xf32>
    %683 = vector.extract_strided_slice %622 {offsets = [0, 24], sizes = [16, 8], strides = [1, 1]} : vector<16x32xf32> to vector<16x8xf32>
    %cst_301 = arith.constant dense<0.000000e+00> : vector<16x16xf32>
    %684 = tpu.matmul %682, %683, %cst_301 {dimension_numbers = #tpu.dot_dimension_numbers<[1], [1], [0], [0], [0, 0, 1, 0], [], []>} : vector<16x8xf32>, vector<16x8xf32>, vector<16x16xf32> -> vector<16x16xf32>
    %685 = arith.addf %684, %1 : vector<16x16xf32>
    %cst_302 = arith.constant dense<0xFF800000> : vector<16xf32>
    %686 = vector.multi_reduction <maximumf>, %685, %cst_302 [1] : vector<16x16xf32> to vector<16xf32>
    %687 = vector.shape_cast %686 : vector<16xf32> to vector<16x1xf32>
    %688 = vector.broadcast %687 : vector<16x1xf32> to vector<16x16xf32>
    %689 = arith.subf %685, %688 : vector<16x16xf32>
    %690 = math.exp %689 : vector<16x16xf32>
    %cst_303 = arith.constant dense<0.000000e+00> : vector<16xf32>
    %691 = vector.multi_reduction <add>, %690, %cst_303 [1] : vector<16x16xf32> to vector<16xf32>
    %692 = vector.shape_cast %691 : vector<16xf32> to vector<16x1xf32>
    %693 = tpu.reciprocal %692 {approx = true} : vector<16x1xf32> -> vector<16x1xf32>
    %694 = vector.broadcast %693 : vector<16x1xf32> to vector<16x16xf32>
    %695 = arith.mulf %690, %694 : vector<16x16xf32>
    %696 = vector.extract_strided_slice %623 {offsets = [0, 24], sizes = [16, 8], strides = [1, 1]} : vector<16x32xf32> to vector<16x8xf32>
    %cst_304 = arith.constant dense<0.000000e+00> : vector<16x8xf32>
    %697 = tpu.matmul %695, %696, %cst_304 {dimension_numbers = #tpu.dot_dimension_numbers<[1], [0], [0], [1], [0, 0, 1, 1], [], []>} : vector<16x16xf32>, vector<16x8xf32>, vector<16x8xf32> -> vector<16x8xf32>
    %698 = vector.extract_strided_slice %611 {offsets = [24, 0], sizes = [8, 32], strides = [1, 1]} : vector<32x32xf32> to vector<8x32xf32>
    %cst_305 = arith.constant dense<0.000000e+00> : vector<16x32xf32>
    %699 = tpu.matmul %697, %698, %cst_305 {dimension_numbers = #tpu.dot_dimension_numbers<[1], [0], [0], [1], [0, 0, 1, 1], [], []>} : vector<16x8xf32>, vector<8x32xf32>, vector<16x32xf32> -> vector<16x32xf32>
    %700 = arith.addf %681, %699 : vector<16x32xf32>
    %701 = arith.addf %605, %700 : vector<16x32xf32>
    %702 = vector.broadcast %613 : vector<1x32xf32> to vector<16x32xf32>
    %703 = arith.addf %701, %702 : vector<16x32xf32>
    %cst_306 = arith.constant dense<0.000000e+00> : vector<16xf32>
    %704 = vector.multi_reduction <add>, %703, %cst_306 [1] : vector<16x32xf32> to vector<16xf32>
    %705 = vector.shape_cast %704 : vector<16xf32> to vector<16x1xf32>
    %cst_307 = arith.constant 3.200000e+01 : f32
    %706 = vector.broadcast %cst_307 : f32 to vector<16x1xf32>
    %707 = arith.divf %705, %706 : vector<16x1xf32>
    %708 = vector.broadcast %707 : vector<16x1xf32> to vector<16x32xf32>
    %709 = arith.subf %703, %708 : vector<16x32xf32>
    %710 = arith.mulf %709, %709 : vector<16x32xf32>
    %cst_308 = arith.constant dense<0.000000e+00> : vector<16xf32>
    %711 = vector.multi_reduction <add>, %710, %cst_308 [1] : vector<16x32xf32> to vector<16xf32>
    %712 = vector.shape_cast %711 : vector<16xf32> to vector<16x1xf32>
    %cst_309 = arith.constant 3.200000e+01 : f32
    %713 = vector.broadcast %cst_309 : f32 to vector<16x1xf32>
    %714 = arith.divf %712, %713 : vector<16x1xf32>
    %cst_310 = arith.constant 9.99999974E-6 : f32
    %715 = vector.broadcast %cst_310 : f32 to vector<16x1xf32>
    %716 = arith.addf %714, %715 : vector<16x1xf32>
    %717 = math.rsqrt %716 : vector<16x1xf32>
    %718 = vector.broadcast %717 : vector<16x1xf32> to vector<16x32xf32>
    %719 = arith.mulf %709, %718 : vector<16x32xf32>
    %720 = vector.broadcast %615 : vector<1x32xf32> to vector<16x32xf32>
    %721 = arith.mulf %719, %720 : vector<16x32xf32>
    %722 = vector.broadcast %617 : vector<1x32xf32> to vector<16x32xf32>
    %723 = arith.addf %721, %722 : vector<16x32xf32>
    %c1_311 = arith.constant 1 : index
    %c0_312 = arith.constant 0 : index
    %c0_313 = arith.constant 0 : index
    %724 = vector.load %arg23[%c1_311, %c0_312, %c0_313] : memref<2x32x96xf32, #tpu.memory_space<vmem>>, vector<1x32x96xf32>
    %725 = vector.shape_cast %724 : vector<1x32x96xf32> to vector<32x96xf32>
    %c1_314 = arith.constant 1 : index
    %c0_315 = arith.constant 0 : index
    %c0_316 = arith.constant 0 : index
    %726 = vector.load %arg24[%c1_314, %c0_315, %c0_316] : memref<2x1x96xf32, #tpu.memory_space<vmem>>, vector<1x1x96xf32>
    %727 = vector.shape_cast %726 : vector<1x1x96xf32> to vector<1x96xf32>
    %c1_317 = arith.constant 1 : index
    %c0_318 = arith.constant 0 : index
    %c0_319 = arith.constant 0 : index
    %728 = vector.load %arg25[%c1_317, %c0_318, %c0_319] : memref<2x32x32xf32, #tpu.memory_space<vmem>>, vector<1x32x32xf32>
    %729 = vector.shape_cast %728 : vector<1x32x32xf32> to vector<32x32xf32>
    %c1_320 = arith.constant 1 : index
    %c0_321 = arith.constant 0 : index
    %c0_322 = arith.constant 0 : index
    %730 = vector.load %arg26[%c1_320, %c0_321, %c0_322] : memref<2x1x32xf32, #tpu.memory_space<vmem>>, vector<1x1x32xf32>
    %731 = vector.shape_cast %730 : vector<1x1x32xf32> to vector<1x32xf32>
    %c1_323 = arith.constant 1 : index
    %c0_324 = arith.constant 0 : index
    %c0_325 = arith.constant 0 : index
    %732 = vector.load %arg27[%c1_323, %c0_324, %c0_325] : memref<2x1x32xf32, #tpu.memory_space<vmem>>, vector<1x1x32xf32>
    %733 = vector.shape_cast %732 : vector<1x1x32xf32> to vector<1x32xf32>
    %c1_326 = arith.constant 1 : index
    %c0_327 = arith.constant 0 : index
    %c0_328 = arith.constant 0 : index
    %734 = vector.load %arg28[%c1_326, %c0_327, %c0_328] : memref<2x1x32xf32, #tpu.memory_space<vmem>>, vector<1x1x32xf32>
    %735 = vector.shape_cast %734 : vector<1x1x32xf32> to vector<1x32xf32>
    %736 = vector.extract_strided_slice %725 {offsets = [0, 0], sizes = [32, 32], strides = [1, 1]} : vector<32x96xf32> to vector<32x32xf32>
    %cst_329 = arith.constant dense<0.000000e+00> : vector<16x32xf32>
    %737 = tpu.matmul %723, %736, %cst_329 {dimension_numbers = #tpu.dot_dimension_numbers<[1], [0], [0], [1], [0, 0, 1, 1], [], []>} : vector<16x32xf32>, vector<32x32xf32>, vector<16x32xf32> -> vector<16x32xf32>
    %738 = vector.extract_strided_slice %727 {offsets = [0, 0], sizes = [1, 32], strides = [1, 1]} : vector<1x96xf32> to vector<1x32xf32>
    %739 = vector.broadcast %738 : vector<1x32xf32> to vector<16x32xf32>
    %740 = arith.addf %737, %739 : vector<16x32xf32>
    %741 = vector.extract_strided_slice %725 {offsets = [0, 32], sizes = [32, 64], strides = [1, 1]} : vector<32x96xf32> to vector<32x64xf32>
    %cst_330 = arith.constant dense<0.000000e+00> : vector<16x64xf32>
    %742 = tpu.matmul %321, %741, %cst_330 {dimension_numbers = #tpu.dot_dimension_numbers<[1], [0], [0], [1], [0, 0, 1, 1], [], []>} : vector<16x32xf32>, vector<32x64xf32>, vector<16x64xf32> -> vector<16x64xf32>
    %743 = vector.extract_strided_slice %727 {offsets = [0, 32], sizes = [1, 64], strides = [1, 1]} : vector<1x96xf32> to vector<1x64xf32>
    %744 = vector.broadcast %743 : vector<1x64xf32> to vector<16x64xf32>
    %745 = arith.addf %742, %744 : vector<16x64xf32>
    %746 = vector.extract_strided_slice %745 {offsets = [0, 0], sizes = [16, 32], strides = [1, 1]} : vector<16x64xf32> to vector<16x32xf32>
    %747 = vector.extract_strided_slice %745 {offsets = [0, 32], sizes = [16, 32], strides = [1, 1]} : vector<16x64xf32> to vector<16x32xf32>
    %cst_331 = arith.constant 0.000000e+00 : f32
    %748 = vector.broadcast %cst_331 : f32 to vector<16x32xf32>
    %749 = vector.extract_strided_slice %740 {offsets = [0, 0], sizes = [16, 8], strides = [1, 1]} : vector<16x32xf32> to vector<16x8xf32>
    %750 = vector.extract_strided_slice %746 {offsets = [0, 0], sizes = [16, 8], strides = [1, 1]} : vector<16x32xf32> to vector<16x8xf32>
    %cst_332 = arith.constant dense<0.000000e+00> : vector<16x16xf32>
    %751 = tpu.matmul %749, %750, %cst_332 {dimension_numbers = #tpu.dot_dimension_numbers<[1], [1], [0], [0], [0, 0, 1, 0], [], []>} : vector<16x8xf32>, vector<16x8xf32>, vector<16x16xf32> -> vector<16x16xf32>
    %752 = arith.addf %751, %2 : vector<16x16xf32>
    %cst_333 = arith.constant dense<0xFF800000> : vector<16xf32>
    %753 = vector.multi_reduction <maximumf>, %752, %cst_333 [1] : vector<16x16xf32> to vector<16xf32>
    %754 = vector.shape_cast %753 : vector<16xf32> to vector<16x1xf32>
    %755 = vector.broadcast %754 : vector<16x1xf32> to vector<16x16xf32>
    %756 = arith.subf %752, %755 : vector<16x16xf32>
    %757 = math.exp %756 : vector<16x16xf32>
    %cst_334 = arith.constant dense<0.000000e+00> : vector<16xf32>
    %758 = vector.multi_reduction <add>, %757, %cst_334 [1] : vector<16x16xf32> to vector<16xf32>
    %759 = vector.shape_cast %758 : vector<16xf32> to vector<16x1xf32>
    %760 = tpu.reciprocal %759 {approx = true} : vector<16x1xf32> -> vector<16x1xf32>
    %761 = vector.broadcast %760 : vector<16x1xf32> to vector<16x16xf32>
    %762 = arith.mulf %757, %761 : vector<16x16xf32>
    %763 = vector.extract_strided_slice %747 {offsets = [0, 0], sizes = [16, 8], strides = [1, 1]} : vector<16x32xf32> to vector<16x8xf32>
    %cst_335 = arith.constant dense<0.000000e+00> : vector<16x8xf32>
    %764 = tpu.matmul %762, %763, %cst_335 {dimension_numbers = #tpu.dot_dimension_numbers<[1], [0], [0], [1], [0, 0, 1, 1], [], []>} : vector<16x16xf32>, vector<16x8xf32>, vector<16x8xf32> -> vector<16x8xf32>
    %765 = vector.extract_strided_slice %729 {offsets = [0, 0], sizes = [8, 32], strides = [1, 1]} : vector<32x32xf32> to vector<8x32xf32>
    %cst_336 = arith.constant dense<0.000000e+00> : vector<16x32xf32>
    %766 = tpu.matmul %764, %765, %cst_336 {dimension_numbers = #tpu.dot_dimension_numbers<[1], [0], [0], [1], [0, 0, 1, 1], [], []>} : vector<16x8xf32>, vector<8x32xf32>, vector<16x32xf32> -> vector<16x32xf32>
    %767 = arith.addf %748, %766 : vector<16x32xf32>
    %768 = vector.extract_strided_slice %740 {offsets = [0, 8], sizes = [16, 8], strides = [1, 1]} : vector<16x32xf32> to vector<16x8xf32>
    %769 = vector.extract_strided_slice %746 {offsets = [0, 8], sizes = [16, 8], strides = [1, 1]} : vector<16x32xf32> to vector<16x8xf32>
    %cst_337 = arith.constant dense<0.000000e+00> : vector<16x16xf32>
    %770 = tpu.matmul %768, %769, %cst_337 {dimension_numbers = #tpu.dot_dimension_numbers<[1], [1], [0], [0], [0, 0, 1, 0], [], []>} : vector<16x8xf32>, vector<16x8xf32>, vector<16x16xf32> -> vector<16x16xf32>
    %771 = arith.addf %770, %2 : vector<16x16xf32>
    %cst_338 = arith.constant dense<0xFF800000> : vector<16xf32>
    %772 = vector.multi_reduction <maximumf>, %771, %cst_338 [1] : vector<16x16xf32> to vector<16xf32>
    %773 = vector.shape_cast %772 : vector<16xf32> to vector<16x1xf32>
    %774 = vector.broadcast %773 : vector<16x1xf32> to vector<16x16xf32>
    %775 = arith.subf %771, %774 : vector<16x16xf32>
    %776 = math.exp %775 : vector<16x16xf32>
    %cst_339 = arith.constant dense<0.000000e+00> : vector<16xf32>
    %777 = vector.multi_reduction <add>, %776, %cst_339 [1] : vector<16x16xf32> to vector<16xf32>
    %778 = vector.shape_cast %777 : vector<16xf32> to vector<16x1xf32>
    %779 = tpu.reciprocal %778 {approx = true} : vector<16x1xf32> -> vector<16x1xf32>
    %780 = vector.broadcast %779 : vector<16x1xf32> to vector<16x16xf32>
    %781 = arith.mulf %776, %780 : vector<16x16xf32>
    %782 = vector.extract_strided_slice %747 {offsets = [0, 8], sizes = [16, 8], strides = [1, 1]} : vector<16x32xf32> to vector<16x8xf32>
    %cst_340 = arith.constant dense<0.000000e+00> : vector<16x8xf32>
    %783 = tpu.matmul %781, %782, %cst_340 {dimension_numbers = #tpu.dot_dimension_numbers<[1], [0], [0], [1], [0, 0, 1, 1], [], []>} : vector<16x16xf32>, vector<16x8xf32>, vector<16x8xf32> -> vector<16x8xf32>
    %784 = vector.extract_strided_slice %729 {offsets = [8, 0], sizes = [8, 32], strides = [1, 1]} : vector<32x32xf32> to vector<8x32xf32>
    %cst_341 = arith.constant dense<0.000000e+00> : vector<16x32xf32>
    %785 = tpu.matmul %783, %784, %cst_341 {dimension_numbers = #tpu.dot_dimension_numbers<[1], [0], [0], [1], [0, 0, 1, 1], [], []>} : vector<16x8xf32>, vector<8x32xf32>, vector<16x32xf32> -> vector<16x32xf32>
    %786 = arith.addf %767, %785 : vector<16x32xf32>
    %787 = vector.extract_strided_slice %740 {offsets = [0, 16], sizes = [16, 8], strides = [1, 1]} : vector<16x32xf32> to vector<16x8xf32>
    %788 = vector.extract_strided_slice %746 {offsets = [0, 16], sizes = [16, 8], strides = [1, 1]} : vector<16x32xf32> to vector<16x8xf32>
    %cst_342 = arith.constant dense<0.000000e+00> : vector<16x16xf32>
    %789 = tpu.matmul %787, %788, %cst_342 {dimension_numbers = #tpu.dot_dimension_numbers<[1], [1], [0], [0], [0, 0, 1, 0], [], []>} : vector<16x8xf32>, vector<16x8xf32>, vector<16x16xf32> -> vector<16x16xf32>
    %790 = arith.addf %789, %2 : vector<16x16xf32>
    %cst_343 = arith.constant dense<0xFF800000> : vector<16xf32>
    %791 = vector.multi_reduction <maximumf>, %790, %cst_343 [1] : vector<16x16xf32> to vector<16xf32>
    %792 = vector.shape_cast %791 : vector<16xf32> to vector<16x1xf32>
    %793 = vector.broadcast %792 : vector<16x1xf32> to vector<16x16xf32>
    %794 = arith.subf %790, %793 : vector<16x16xf32>
    %795 = math.exp %794 : vector<16x16xf32>
    %cst_344 = arith.constant dense<0.000000e+00> : vector<16xf32>
    %796 = vector.multi_reduction <add>, %795, %cst_344 [1] : vector<16x16xf32> to vector<16xf32>
    %797 = vector.shape_cast %796 : vector<16xf32> to vector<16x1xf32>
    %798 = tpu.reciprocal %797 {approx = true} : vector<16x1xf32> -> vector<16x1xf32>
    %799 = vector.broadcast %798 : vector<16x1xf32> to vector<16x16xf32>
    %800 = arith.mulf %795, %799 : vector<16x16xf32>
    %801 = vector.extract_strided_slice %747 {offsets = [0, 16], sizes = [16, 8], strides = [1, 1]} : vector<16x32xf32> to vector<16x8xf32>
    %cst_345 = arith.constant dense<0.000000e+00> : vector<16x8xf32>
    %802 = tpu.matmul %800, %801, %cst_345 {dimension_numbers = #tpu.dot_dimension_numbers<[1], [0], [0], [1], [0, 0, 1, 1], [], []>} : vector<16x16xf32>, vector<16x8xf32>, vector<16x8xf32> -> vector<16x8xf32>
    %803 = vector.extract_strided_slice %729 {offsets = [16, 0], sizes = [8, 32], strides = [1, 1]} : vector<32x32xf32> to vector<8x32xf32>
    %cst_346 = arith.constant dense<0.000000e+00> : vector<16x32xf32>
    %804 = tpu.matmul %802, %803, %cst_346 {dimension_numbers = #tpu.dot_dimension_numbers<[1], [0], [0], [1], [0, 0, 1, 1], [], []>} : vector<16x8xf32>, vector<8x32xf32>, vector<16x32xf32> -> vector<16x32xf32>
    %805 = arith.addf %786, %804 : vector<16x32xf32>
    %806 = vector.extract_strided_slice %740 {offsets = [0, 24], sizes = [16, 8], strides = [1, 1]} : vector<16x32xf32> to vector<16x8xf32>
    %807 = vector.extract_strided_slice %746 {offsets = [0, 24], sizes = [16, 8], strides = [1, 1]} : vector<16x32xf32> to vector<16x8xf32>
    %cst_347 = arith.constant dense<0.000000e+00> : vector<16x16xf32>
    %808 = tpu.matmul %806, %807, %cst_347 {dimension_numbers = #tpu.dot_dimension_numbers<[1], [1], [0], [0], [0, 0, 1, 0], [], []>} : vector<16x8xf32>, vector<16x8xf32>, vector<16x16xf32> -> vector<16x16xf32>
    %809 = arith.addf %808, %2 : vector<16x16xf32>
    %cst_348 = arith.constant dense<0xFF800000> : vector<16xf32>
    %810 = vector.multi_reduction <maximumf>, %809, %cst_348 [1] : vector<16x16xf32> to vector<16xf32>
    %811 = vector.shape_cast %810 : vector<16xf32> to vector<16x1xf32>
    %812 = vector.broadcast %811 : vector<16x1xf32> to vector<16x16xf32>
    %813 = arith.subf %809, %812 : vector<16x16xf32>
    %814 = math.exp %813 : vector<16x16xf32>
    %cst_349 = arith.constant dense<0.000000e+00> : vector<16xf32>
    %815 = vector.multi_reduction <add>, %814, %cst_349 [1] : vector<16x16xf32> to vector<16xf32>
    %816 = vector.shape_cast %815 : vector<16xf32> to vector<16x1xf32>
    %817 = tpu.reciprocal %816 {approx = true} : vector<16x1xf32> -> vector<16x1xf32>
    %818 = vector.broadcast %817 : vector<16x1xf32> to vector<16x16xf32>
    %819 = arith.mulf %814, %818 : vector<16x16xf32>
    %820 = vector.extract_strided_slice %747 {offsets = [0, 24], sizes = [16, 8], strides = [1, 1]} : vector<16x32xf32> to vector<16x8xf32>
    %cst_350 = arith.constant dense<0.000000e+00> : vector<16x8xf32>
    %821 = tpu.matmul %819, %820, %cst_350 {dimension_numbers = #tpu.dot_dimension_numbers<[1], [0], [0], [1], [0, 0, 1, 1], [], []>} : vector<16x16xf32>, vector<16x8xf32>, vector<16x8xf32> -> vector<16x8xf32>
    %822 = vector.extract_strided_slice %729 {offsets = [24, 0], sizes = [8, 32], strides = [1, 1]} : vector<32x32xf32> to vector<8x32xf32>
    %cst_351 = arith.constant dense<0.000000e+00> : vector<16x32xf32>
    %823 = tpu.matmul %821, %822, %cst_351 {dimension_numbers = #tpu.dot_dimension_numbers<[1], [0], [0], [1], [0, 0, 1, 1], [], []>} : vector<16x8xf32>, vector<8x32xf32>, vector<16x32xf32> -> vector<16x32xf32>
    %824 = arith.addf %805, %823 : vector<16x32xf32>
    %825 = arith.addf %723, %824 : vector<16x32xf32>
    %826 = vector.broadcast %731 : vector<1x32xf32> to vector<16x32xf32>
    %827 = arith.addf %825, %826 : vector<16x32xf32>
    %cst_352 = arith.constant dense<0.000000e+00> : vector<16xf32>
    %828 = vector.multi_reduction <add>, %827, %cst_352 [1] : vector<16x32xf32> to vector<16xf32>
    %829 = vector.shape_cast %828 : vector<16xf32> to vector<16x1xf32>
    %cst_353 = arith.constant 3.200000e+01 : f32
    %830 = vector.broadcast %cst_353 : f32 to vector<16x1xf32>
    %831 = arith.divf %829, %830 : vector<16x1xf32>
    %832 = vector.broadcast %831 : vector<16x1xf32> to vector<16x32xf32>
    %833 = arith.subf %827, %832 : vector<16x32xf32>
    %834 = arith.mulf %833, %833 : vector<16x32xf32>
    %cst_354 = arith.constant dense<0.000000e+00> : vector<16xf32>
    %835 = vector.multi_reduction <add>, %834, %cst_354 [1] : vector<16x32xf32> to vector<16xf32>
    %836 = vector.shape_cast %835 : vector<16xf32> to vector<16x1xf32>
    %cst_355 = arith.constant 3.200000e+01 : f32
    %837 = vector.broadcast %cst_355 : f32 to vector<16x1xf32>
    %838 = arith.divf %836, %837 : vector<16x1xf32>
    %cst_356 = arith.constant 9.99999974E-6 : f32
    %839 = vector.broadcast %cst_356 : f32 to vector<16x1xf32>
    %840 = arith.addf %838, %839 : vector<16x1xf32>
    %841 = math.rsqrt %840 : vector<16x1xf32>
    %842 = vector.broadcast %841 : vector<16x1xf32> to vector<16x32xf32>
    %843 = arith.mulf %833, %842 : vector<16x32xf32>
    %844 = vector.broadcast %733 : vector<1x32xf32> to vector<16x32xf32>
    %845 = arith.mulf %843, %844 : vector<16x32xf32>
    %846 = vector.broadcast %735 : vector<1x32xf32> to vector<16x32xf32>
    %847 = arith.addf %845, %846 : vector<16x32xf32>
    %c1_357 = arith.constant 1 : index
    %c0_358 = arith.constant 0 : index
    %c0_359 = arith.constant 0 : index
    %848 = vector.load %arg29[%c1_357, %c0_358, %c0_359] : memref<2x32x64xf32, #tpu.memory_space<vmem>>, vector<1x32x64xf32>
    %849 = vector.shape_cast %848 : vector<1x32x64xf32> to vector<32x64xf32>
    %c1_360 = arith.constant 1 : index
    %c0_361 = arith.constant 0 : index
    %c0_362 = arith.constant 0 : index
    %850 = vector.load %arg30[%c1_360, %c0_361, %c0_362] : memref<2x1x64xf32, #tpu.memory_space<vmem>>, vector<1x1x64xf32>
    %851 = vector.shape_cast %850 : vector<1x1x64xf32> to vector<1x64xf32>
    %c1_363 = arith.constant 1 : index
    %c0_364 = arith.constant 0 : index
    %c0_365 = arith.constant 0 : index
    %852 = vector.load %arg31[%c1_363, %c0_364, %c0_365] : memref<2x64x32xf32, #tpu.memory_space<vmem>>, vector<1x64x32xf32>
    %853 = vector.shape_cast %852 : vector<1x64x32xf32> to vector<64x32xf32>
    %c1_366 = arith.constant 1 : index
    %c0_367 = arith.constant 0 : index
    %c0_368 = arith.constant 0 : index
    %854 = vector.load %arg32[%c1_366, %c0_367, %c0_368] : memref<2x1x32xf32, #tpu.memory_space<vmem>>, vector<1x1x32xf32>
    %855 = vector.shape_cast %854 : vector<1x1x32xf32> to vector<1x32xf32>
    %c1_369 = arith.constant 1 : index
    %c0_370 = arith.constant 0 : index
    %c0_371 = arith.constant 0 : index
    %856 = vector.load %arg33[%c1_369, %c0_370, %c0_371] : memref<2x1x32xf32, #tpu.memory_space<vmem>>, vector<1x1x32xf32>
    %857 = vector.shape_cast %856 : vector<1x1x32xf32> to vector<1x32xf32>
    %c1_372 = arith.constant 1 : index
    %c0_373 = arith.constant 0 : index
    %c0_374 = arith.constant 0 : index
    %858 = vector.load %arg34[%c1_372, %c0_373, %c0_374] : memref<2x1x32xf32, #tpu.memory_space<vmem>>, vector<1x1x32xf32>
    %859 = vector.shape_cast %858 : vector<1x1x32xf32> to vector<1x32xf32>
    %cst_375 = arith.constant dense<0.000000e+00> : vector<16x64xf32>
    %860 = tpu.matmul %847, %849, %cst_375 {dimension_numbers = #tpu.dot_dimension_numbers<[1], [0], [0], [1], [0, 0, 1, 1], [], []>} : vector<16x32xf32>, vector<32x64xf32>, vector<16x64xf32> -> vector<16x64xf32>
    %861 = vector.broadcast %851 : vector<1x64xf32> to vector<16x64xf32>
    %862 = arith.addf %860, %861 : vector<16x64xf32>
    %cst_376 = arith.constant 0.000000e+00 : f32
    %863 = vector.broadcast %cst_376 : f32 to vector<16x64xf32>
    %864 = arith.maximumf %862, %863 : vector<16x64xf32>
    %cst_377 = arith.constant dense<0.000000e+00> : vector<16x32xf32>
    %865 = tpu.matmul %864, %853, %cst_377 {dimension_numbers = #tpu.dot_dimension_numbers<[1], [0], [0], [1], [0, 0, 1, 1], [], []>} : vector<16x64xf32>, vector<64x32xf32>, vector<16x32xf32> -> vector<16x32xf32>
    %866 = vector.broadcast %855 : vector<1x32xf32> to vector<16x32xf32>
    %867 = arith.addf %865, %866 : vector<16x32xf32>
    %868 = arith.addf %847, %867 : vector<16x32xf32>
    %cst_378 = arith.constant dense<0.000000e+00> : vector<16xf32>
    %869 = vector.multi_reduction <add>, %868, %cst_378 [1] : vector<16x32xf32> to vector<16xf32>
    %870 = vector.shape_cast %869 : vector<16xf32> to vector<16x1xf32>
    %cst_379 = arith.constant 3.200000e+01 : f32
    %871 = vector.broadcast %cst_379 : f32 to vector<16x1xf32>
    %872 = arith.divf %870, %871 : vector<16x1xf32>
    %873 = vector.broadcast %872 : vector<16x1xf32> to vector<16x32xf32>
    %874 = arith.subf %868, %873 : vector<16x32xf32>
    %875 = arith.mulf %874, %874 : vector<16x32xf32>
    %cst_380 = arith.constant dense<0.000000e+00> : vector<16xf32>
    %876 = vector.multi_reduction <add>, %875, %cst_380 [1] : vector<16x32xf32> to vector<16xf32>
    %877 = vector.shape_cast %876 : vector<16xf32> to vector<16x1xf32>
    %cst_381 = arith.constant 3.200000e+01 : f32
    %878 = vector.broadcast %cst_381 : f32 to vector<16x1xf32>
    %879 = arith.divf %877, %878 : vector<16x1xf32>
    %cst_382 = arith.constant 9.99999974E-6 : f32
    %880 = vector.broadcast %cst_382 : f32 to vector<16x1xf32>
    %881 = arith.addf %879, %880 : vector<16x1xf32>
    %882 = math.rsqrt %881 : vector<16x1xf32>
    %883 = vector.broadcast %882 : vector<16x1xf32> to vector<16x32xf32>
    %884 = arith.mulf %874, %883 : vector<16x32xf32>
    %885 = vector.broadcast %857 : vector<1x32xf32> to vector<16x32xf32>
    %886 = arith.mulf %884, %885 : vector<16x32xf32>
    %887 = vector.broadcast %859 : vector<1x32xf32> to vector<16x32xf32>
    %888 = arith.addf %886, %887 : vector<16x32xf32>
    %c0_383 = arith.constant 0 : index
    %c0_384 = arith.constant 0 : index
    %889 = vector.load %arg35[%c0_383, %c0_384] : memref<16x32xf32, #tpu.memory_space<vmem>>, vector<16x32xf32>
    tpu.vector_store %arg35[%c0_383, %c0_384], %888 {strides = array<i32>} : memref<16x32xf32, #tpu.memory_space<vmem>>, vector<16x32xf32>,
    return
  }
}

</mosaic_0001>

<bundles_post_ra>
// kernel: transformer.1
= control target key start
LH: loop header
LB: loop body
LE: loop exit
PB: predicated region body
PF: predicated region fallthrough
CT: control target
= control target key end

     0   :  { %s11180_s6 = smov 1   ;;  %s11181_s10 = smov 2   ;;  %s12511_s0 = inlined_call_operand.smem [shape: u32[36], index: -1, kind: input, shape index: {}] }
   0x1   :  { %s11252_s5 = sld [smem:[%s12511_s0]]   ;;  %s11182_s14 = smov 3  }
   0x2   :  { %s11257_s9 = sld [smem:[%s12511_s0 + %s11180_s6]]   ;;  %s11183_s18 = smov 4  }
   0x3   :  { %s11262_s13 = sld [smem:[%s12511_s0 + %s11181_s10]]   ;;  %s11184_s22 = smov 5  }
   0x4   :  { %s11267_s17 = sld [smem:[%s12511_s0 + %s11182_s14]]   ;;  %s11185_s26 = smov 6  }
   0x5   :  { %s11272_s21 = sld [smem:[%s12511_s0 + %s11183_s18]]   ;;  %s11186_s30 = smov 7  }
   0x6   :  { %s11277_s25 = sld [smem:[%s12511_s0 + %s11184_s22]]   ;;  %s11187_s4 = smov 8  }
   0x7   :  { %s11282_s29 = sld [smem:[%s12511_s0 + %s11185_s26]]   ;;  %s11188_s10 = smov 9  }
   0x8   :  { %s11287_s3 = sld [smem:[%s12511_s0 + %s11186_s30]]   ;;  %s11189_s15 = smov 10  }
   0x9   :  { %s11292_s8 = sld [smem:[%s12511_s0 + %s11187_s4]]   ;;  %s11190_s20 = smov 11  }
   0xa   :  { %12530 = sst [smem:[#allocation32_spill]] %s11267_s17  ;;  %s11191_s26 = smov 12  }
   0xb   :  { %12531 = sst [smem:[#allocation33_spill]] %s11272_s21  ;;  %s11192_s1 = smov 13  }
   0xc   :  { %s11297_s14 = sld [smem:[%s12511_s0 + %s11188_s10]]   ;;  %s11193_s7 = smov 14  }
   0xd   :  { %s11302_s19 = sld [smem:[%s12511_s0 + %s11189_s15]]   ;;  %s11194_s15 = smov 15  }
   0xe   :  { %s11307_s24 = sld [smem:[%s12511_s0 + %s11190_s20]]   ;;  %s11195_s22 = smov 16  }
   0xf   :  { %12532 = sst [smem:[#allocation34_spill]] %s11292_s8  ;;  %s11196_s28 = smov 17  }
  0x10   :  { %s11312_s30 = sld [smem:[%s12511_s0 + %s11191_s26]]  }
  0x11   :  { %s11317_s6 = sld [smem:[%s12511_s0 + %s11192_s1]]  }
  0x12   :  { %12533 = sst [smem:[#allocation35_spill]] %s11297_s14 }
  0x13   :  { %12534 = sst [smem:[#allocation36_spill]] %s11302_s19 }
  0x14   :  { %12535 = sst [smem:[#allocation37_spill]] %s11307_s24 }
  0x15   :  { %s11322_s12 = sld [smem:[%s12511_s0 + %s11193_s7]]   ;;  %s11197_s7 = smov 18  }
  0x16   :  { %12536 = sst [smem:[#allocation38_spill]] %s11312_s30 }
  0x17   :  { %12537 = sst [smem:[#allocation39_spill]] %s11317_s6 }
  0x18   :  { %s11327_s20 = sld [smem:[%s12511_s0 + %s11194_s15]]   ;;  %s11198_s15 = smov 19  }
  0x19   :  { %s11332_s27 = sld [smem:[%s12511_s0 + %s11195_s22]]   ;;  %s11199_s22 = smov 20  }
  0x1a   :  { %s11337_s4 = sld [smem:[%s12511_s0 + %s11196_s28]]   ;;  %s11200_s28 = smov 21  }
  0x1b   :  { %12538 = sst [smem:[#allocation40_spill]] %s11322_s12 }
  0x1c   :  { %s11342_s21 = sld [smem:[%s12511_s0 + %s11197_s7]]   ;;  %s11201_s7 = smov 22  }
  0x1d   :  { %s11347_s17 = sld [smem:[%s12511_s0 + %s11198_s15]]   ;;  %s11202_s15 = smov 23  }
  0x1e   :  { %12539 = sst [smem:[#allocation41_spill]] %s11327_s20 }
  0x1f   :  { %12540 = sst [smem:[#allocation42_spill]] %s11332_s27 }
  0x20   :  { %12541 = sst [smem:[#allocation43_spill]] %s11337_s4 }
  0x21   :  { %s11352_s27 = sld [smem:[%s12511_s0 + %s11199_s22]]   ;;  %s11203_s22 = smov 24  }
  0x22   :  { %12542 = sst [smem:[#allocation44_spill]] %s11342_s21 }
  0x23   :  { %12543 = sst [smem:[#allocation45_spill]] %s11347_s17 }
  0x24   :  { %s11357_s4 = sld [smem:[%s12511_s0 + %s11200_s28]]   ;;  %s11204_s28 = smov 25  }
  0x25   :  { %s11362_s21 = sld [smem:[%s12511_s0 + %s11201_s7]]   ;;  %s11205_s7 = smov 26  }
  0x26   :  { %s11367_s17 = sld [smem:[%s12511_s0 + %s11202_s15]]   ;;  %s11206_s15 = smov 27  }
  0x27   :  { %12544 = sst [smem:[#allocation46_spill]] %s11352_s27 }
  0x28   :  { %s11372_s27 = sld [smem:[%s12511_s0 + %s11203_s22]]   ;;  %s11207_s22 = smov 28  }
  0x29   :  { %s11377_s20 = sld [smem:[%s12511_s0 + %s11204_s28]]   ;;  %s11208_s28 = smov 29  }
  0x2a   :  { %s11382_s12 = sld [smem:[%s12511_s0 + %s11205_s7]]   ;;  %s11209_s7 = smov 30  }
  0x2b   :  { %s11392_s30 = sld [smem:[%s12511_s0 + %s11207_s22]]   ;;  %s11211_s22 = smov 32  }
  0x2c   :  { %12545 = sst [smem:[#allocation47_spill]] %s11367_s17 }
  0x2d   :  { %s11387_s17 = sld [smem:[%s12511_s0 + %s11206_s15]]   ;;  %s11210_s15 = smov 31  }
  0x2e   :  { %s11402_s19 = sld [smem:[%s12511_s0 + %s11209_s7]]   ;;  %s11213_s7 = smov 34  }
  0x2f   :  { %12546 = sst [smem:[#allocation48_spill]] %s11377_s20 }
  0x30   :  { %s11397_s20 = sld [smem:[%s12511_s0 + %s11208_s28]]   ;;  %s11212_s28 = smov 33  }
  0x31   :  { %s11407_s14 = sld [smem:[%s12511_s0 + %s11210_s15]]   ;;  %s11214_s15 = smov 35  }
  0x32   :  { %s11412_s6 = sld [smem:[%s12511_s0 + %s11211_s22]]  }
  0x33   :  { %s11417_s24 = sld [smem:[%s12511_s0 + %s11212_s28]]  }
  0x34   :  { %s11422_s8 = sld [smem:[%s12511_s0 + %s11213_s7]]  }
  0x37   :  { %12547 = sst [smem:[#allocation49_spill]] %s11407_s14 }
  0x38   :  { %s11427_s14 = sld [smem:[%s12511_s0 + %s11214_s15]]  }
  0x39   :  { %76 = vsyncpa [#allocation3], 0 }
  0x3a   :  { %77 = vsyncpa [#allocation6], 0 }
  0x3b   :  { %78 = vsyncpa [#allocation9], 0 }
  0x3c   :  { %79 = vsyncpa [#allocation12], 0 }
  0x3d   :  { %80 = vsyncpa [#allocation15], 0 }
  0x3e   :  { %81 = vsyncpa [#allocation18], 0 }
  0x3f   :  { %82 = vsyncpa [#allocation21], 0 }
  0x40   :  { %83 = vsyncpa [#allocation4], 0  ;;  %s11215_s22 = smov [#allocation5]  }
  0x41   :  { %s101_s23 = sshll.u32 %s11215_s22, 4  ;;  %s102_s23 = int_to_ptr.vmem [resolvable:$true] %s101_s23 }
  0x42   :  { %s10892_s26 = scalar_lea.vmem %s102_s23, 256  ;;  %p10897_p1 = scmp.lt.s32.totalorder %s102_s23, %s102_s23 }
  0x43   :  { %p10893_p0 = scmp.ne.s32.totalorder %s102_s23, %s10892_s26  ;;  %p10898_p2 = scmp.lt.s32.totalorder %s10892_s26, %s10892_s26 }
  0x45   :  { %p10899_p3 = por %p10898_p2, %p10897_p1 }
  0x47   :  { %p10900_p4 = pnand %p10899_p3, %p10893_p0 }
  0x49   :  { %10903 = shalt.err (!%p10900_p4)
}
  0x4a   :  { %s11216_s0 = smov 128   ;;  %s11217_s28 = smov 8  }
  0x4b   :  { %107 = dma.hbm_to_vmem [thread:$0]  %s11257_s9, 256, %s102_s23, [#allocation6], %s11216_s0, %s11216_s0, %s11217_s28  }
  0x4c   :  { %s11218_s1 = smov [#allocation8]   ;;  %s11219_s7 = smov [#allocation11]  }
  0x4d   :  { %s163_s2 = sshll.u32 %s11218_s1, 4  ;;  %s191_s10 = sshll.u32 %s11219_s7, 4  ;;  %s164_s2 = int_to_ptr.vmem [resolvable:$true] %s163_s2  ;;  %s192_s10 = int_to_ptr.vmem [resolvable:$true] %s191_s10 }
  0x4e   :  { %s10912_s11 = scalar_lea.vmem %s164_s2, 32  ;;  %p10917_p6 = scmp.lt.s32.totalorder %s164_s2, %s164_s2 }
  0x4f   :  { %p10913_p5 = scmp.ne.s32.totalorder %s164_s2, %s10912_s11  ;;  %p10918_p7 = scmp.lt.s32.totalorder %s10912_s11, %s10912_s11 }
  0x51   :  { %p10919_p8 = por %p10918_p7, %p10917_p6 }
  0x53   :  { %p10920_p9 = pnand %p10919_p8, %p10913_p5 }
  0x55   :  { %10923 = shalt.err (!%p10920_p9)
}
  0x56   :  { %s11220_s15 = smov 16   ;;  %s11221_s16 = smov 1  }
  0x57   :  { %169 = dma.hbm_to_vmem [thread:$0]  %s11362_s21, 32, %s164_s2, [#allocation9], %s11220_s15, %s11220_s15, %s11221_s16  }
  0x58   :  { %s10932_s9 = scalar_lea.vmem %s192_s10, 32  ;;  %p10937_p11 = scmp.lt.s32.totalorder %s192_s10, %s192_s10 }
  0x59   :  { %p10933_p10 = scmp.ne.s32.totalorder %s192_s10, %s10932_s9  ;;  %p10938_p12 = scmp.lt.s32.totalorder %s10932_s9, %s10932_s9 }
  0x5b   :  { %p10939_p13 = por %p10938_p12, %p10937_p11 }
  0x5d   :  { %p10940_p0 = pnand %p10939_p13, %p10933_p10 }
  0x5f   :  { %10943 = shalt.err (!%p10940_p0)
}
  0x60   :  { %197 = dma.hbm_to_vmem [thread:$0]  %s11382_s12, 32, %s192_s10, [#allocation12], %s11220_s15, %s11220_s15, %s11221_s16  }
  0x61   :  { %s11222_s18 = smov [#allocation14]   ;;  %s11223_s23 = smov [#allocation17]  }
  0x62   :  { %s215_s22 = sshll.u32 %s11222_s18, 4  ;;  %s239_s26 = sshll.u32 %s11223_s23, 4  ;;  %s216_s22 = int_to_ptr.vmem [resolvable:$true] %s215_s22  ;;  %s240_s26 = int_to_ptr.vmem [resolvable:$true] %s239_s26 }
  0x63   :  { %s10952_s1 = scalar_lea.vmem %s216_s22, 32  ;;  %p10957_p2 = scmp.lt.s32.totalorder %s216_s22, %s216_s22 }
  0x64   :  { %p10953_p1 = scmp.ne.s32.totalorder %s216_s22, %s10952_s1  ;;  %p10958_p3 = scmp.lt.s32.totalorder %s10952_s1, %s10952_s1 }
  0x66   :  { %p10959_p4 = por %p10958_p3, %p10957_p2 }
  0x68   :  { %p10960_p5 = pnand %p10959_p4, %p10953_p1 }
  0x6a   :  { %10963 = shalt.err (!%p10960_p5)
}
  0x6b   :  { %221 = dma.hbm_to_vmem [thread:$0]  %s11392_s30, 32, %s216_s22, [#allocation15], %s11220_s15, %s11220_s15, %s11221_s16  }
  0x6c   :  { %s10972_s21 = scalar_lea.vmem %s240_s26, 32  ;;  %p10977_p7 = scmp.lt.s32.totalorder %s240_s26, %s240_s26 }
  0x6d   :  { %p10973_p6 = scmp.ne.s32.totalorder %s240_s26, %s10972_s21  ;;  %p10978_p8 = scmp.lt.s32.totalorder %s10972_s21, %s10972_s21 }
  0x6f   :  { %p10979_p9 = por %p10978_p8, %p10977_p7 }
  0x71   :  { %p10980_p10 = pnand %p10979_p9, %p10973_p6 }
  0x73   :  { %10983 = shalt.err (!%p10980_p10)
}
  0x74   :  { %245 = dma.hbm_to_vmem [thread:$0]  %s11402_s19, 32, %s240_s26, [#allocation18], %s11220_s15, %s11220_s15, %s11221_s16  }
  0x75   :  { %s11224_s12 = smov [#allocation20]   ;;  %s11225_s7 = smov [#allocation2]  }
  0x76   :  { %s265_s2 = sshll.u32 %s11224_s12, 4  ;;  %s89_s10 = sshll.u32 %s11225_s7, 4  ;;  %s266_s2 = int_to_ptr.vmem [resolvable:$true] %s265_s2  ;;  %s90_s10 = int_to_ptr.vmem [resolvable:$true] %s89_s10 }
  0x77   :  { %s10992_s11 = scalar_lea.vmem %s266_s2, 32  ;;  %p10997_p12 = scmp.lt.s32.totalorder %s266_s2, %s266_s2 }
  0x78   :  { %p10993_p11 = scmp.ne.s32.totalorder %s266_s2, %s10992_s11  ;;  %p10998_p13 = scmp.lt.s32.totalorder %s10992_s11, %s10992_s11 }
  0x7a   :  { %p10999_p0 = por %p10998_p13, %p10997_p12 }
  0x7c   :  { %p11000_p1 = pnand %p10999_p0, %p10993_p11 }
  0x7e   :  { %11003 = shalt.err (!%p11000_p1)
}
  0x7f   :  { %271 = dma.hbm_to_vmem [thread:$0]  %s11417_s24, 32, %s266_s2, [#allocation21], %s11220_s15, %s11220_s15, %s11221_s16  }
  0x80   :  { %s11012_s30 = scalar_lea.vmem %s90_s10, 256  ;;  %p11017_p3 = scmp.lt.s32.totalorder %s90_s10, %s90_s10 }
  0x81   :  { %p11013_p2 = scmp.ne.s32.totalorder %s90_s10, %s11012_s30  ;;  %p11018_p4 = scmp.lt.s32.totalorder %s11012_s30, %s11012_s30 }
  0x83   :  { %p11019_p5 = por %p11018_p4, %p11017_p3 }
  0x85   :  { %p11020_p6 = pnand %p11019_p5, %p11013_p2 }
  0x87   :  { %11023 = shalt.err (!%p11020_p6)
}
  0x88   :  { %95 = dma.hbm_to_vmem [thread:$0]  %s11252_s5, 256, %s90_s10, [#allocation3], %s11216_s0, %s11216_s0, %s11217_s28  }
  0x89   :  { %s11226_s19 = smov [#allocation7]   ;;  %s11227_s18 = smov [#allocation10]  }
  0x8a   :  { %s151_s9 = sshll.u32 %s11226_s19, 4  ;;  %s177_s22 = sshll.u32 %s11227_s18, 4  ;;  %s152_s9 = int_to_ptr.vmem [resolvable:$true] %s151_s9  ;;  %s178_s22 = int_to_ptr.vmem [resolvable:$true] %s177_s22 }
  0x8b   :  { %s11032_s23 = scalar_lea.vmem %s152_s9, 32  ;;  %p11037_p8 = scmp.lt.s32.totalorder %s152_s9, %s152_s9 }
  0x8c   :  { %p11033_p7 = scmp.ne.s32.totalorder %s152_s9, %s11032_s23  ;;  %p11038_p9 = scmp.lt.s32.totalorder %s11032_s23, %s11032_s23 }
  0x8e   :  { %p11039_p10 = por %p11038_p9, %p11037_p8 }
  0x90   :  { %p11040_p11 = pnand %p11039_p10, %p11033_p7 }
  0x92   :  { %11043 = shalt.err (!%p11040_p11)
}
  0x93   :  { %157 = dma.hbm_to_vmem [thread:$0]  %s11357_s4, 32, %s152_s9, [#allocation6], %s11220_s15, %s11220_s15, %s11221_s16  }
  0x94   :  { %s11052_s24 = scalar_lea.vmem %s178_s22, 32  ;;  %p11057_p13 = scmp.lt.s32.totalorder %s178_s22, %s178_s22 }
  0x95   :  { %p11053_p12 = scmp.ne.s32.totalorder %s178_s22, %s11052_s24  ;;  %p11058_p0 = scmp.lt.s32.totalorder %s11052_s24, %s11052_s24 }
  0x97   :  { %p11059_p1 = por %p11058_p0, %p11057_p13 }
  0x99   :  { %p11060_p2 = pnand %p11059_p1, %p11053_p12 }
  0x9b   :  { %11063 = shalt.err (!%p11060_p2)
}
  0x9c   :  { %183 = dma.hbm_to_vmem [thread:$0]  %s11372_s27, 32, %s178_s22, [#allocation9], %s11220_s15, %s11220_s15, %s11221_s16  }
  0x9d   :  { %s11228_s5 = smov [#allocation13]   ;;  %s11229_s1 = smov [#allocation16]  }
  0x9e   :  { %s203_s26 = sshll.u32 %s11228_s5, 4  ;;  %s227_s21 = sshll.u32 %s11229_s1, 4  ;;  %s204_s26 = int_to_ptr.vmem [resolvable:$true] %s203_s26  ;;  %s228_s21 = int_to_ptr.vmem [resolvable:$true] %s227_s21 }
  0x9f   :  { %s11072_s12 = scalar_lea.vmem %s204_s26, 32  ;;  %p11077_p4 = scmp.lt.s32.totalorder %s204_s26, %s204_s26 }
  0xa0   :  { %p11073_p3 = scmp.ne.s32.totalorder %s204_s26, %s11072_s12  ;;  %p11078_p5 = scmp.lt.s32.totalorder %s11072_s12, %s11072_s12 }
  0xa2   :  { %p11079_p6 = por %p11078_p5, %p11077_p4 }
  0xa4   :  { %p11080_p7 = pnand %p11079_p6, %p11073_p3 }
  0xa6   :  { %11083 = shalt.err (!%p11080_p7)
}
  0xa7   :  { %209 = dma.hbm_to_vmem [thread:$0]  %s11387_s17, 32, %s204_s26, [#allocation12], %s11220_s15, %s11220_s15, %s11221_s16  }
  0xa8   :  { %s11092_s4 = scalar_lea.vmem %s228_s21, 1024  ;;  %p11097_p9 = scmp.lt.s32.totalorder %s228_s21, %s228_s21 }
  0xa9   :  { %p11093_p8 = scmp.ne.s32.totalorder %s228_s21, %s11092_s4  ;;  %p11098_p10 = scmp.lt.s32.totalorder %s11092_s4, %s11092_s4 }
  0xab   :  { %p11099_p11 = por %p11098_p10, %p11097_p9 }
  0xad   :  { %p11100_p12 = pnand %p11099_p11, %p11093_p8 }
  0xaf   :  { %11103 = shalt.err (!%p11100_p12)
}
  0xb0   :  { %233 = dma.hbm_to_vmem [thread:$0]  %s11397_s20, 1024, %s228_s21, [#allocation15], %s11216_s0, %s11216_s0, %s11217_s28  }
  0xb1   :  { %s11230_s27 = smov [#allocation19]   ;;  %s11231_s7 = smov [#allocation22]  }
  0xb2   :  { %s253_s2 = sshll.u32 %s11230_s27, 4  ;;  %s277_s10 = sshll.u32 %s11231_s7, 4  ;;  %s254_s2 = int_to_ptr.vmem [resolvable:$true] %s253_s2  ;;  %s278_s10 = int_to_ptr.vmem [resolvable:$true] %s277_s10 }
  0xb3   :  { %s11112_s11 = scalar_lea.vmem %s254_s2, 32  ;;  %p11117_p0 = scmp.lt.s32.totalorder %s254_s2, %s254_s2 }
  0xb4   :  { %p11113_p13 = scmp.ne.s32.totalorder %s254_s2, %s11112_s11  ;;  %p11118_p1 = scmp.lt.s32.totalorder %s11112_s11, %s11112_s11 }
  0xb6   :  { %p11119_p2 = por %p11118_p1, %p11117_p0 }
  0xb8   :  { %p11120_p3 = pnand %p11119_p2, %p11113_p13 }
  0xba   :  { %11123 = shalt.err (!%p11120_p3)
}
  0xbb   :  { %259 = dma.hbm_to_vmem [thread:$0]  %s11412_s6, 32, %s254_s2, [#allocation18], %s11220_s15, %s11220_s15, %s11221_s16  }
  0xbc   :  { %s11132_s17 = scalar_lea.vmem %s278_s10, 32  ;;  %p11137_p5 = scmp.lt.s32.totalorder %s278_s10, %s278_s10 }
  0xbd   :  { %p11133_p4 = scmp.ne.s32.totalorder %s278_s10, %s11132_s17  ;;  %p11138_p6 = scmp.lt.s32.totalorder %s11132_s17, %s11132_s17 }
  0xbf   :  { %p11139_p7 = por %p11138_p6, %p11137_p5 }
  0xc1   :  { %p11140_p8 = pnand %p11139_p7, %p11133_p4 }
  0xc3   :  { %11143 = shalt.err (!%p11140_p8)
}
  0xc4   :  { %283 = dma.hbm_to_vmem [thread:$0]  %s11422_s8, 32, %s278_s10, [#allocation21], %s11220_s15, %s11220_s15, %s11221_s16  }
  0xc5   :  { %11164 = dma.done.wait [#allocation3], 256  }
  0xc6   :  { %11165 = vsyncadd [#allocation3], 4294967040 }
  0xc7   :  { %11166 = dma.done.wait [#allocation6], 288  }
  0xc8   :  { %11167 = vsyncadd [#allocation6], 4294967008 }
  0xc9   :  { %11168 = dma.done.wait [#allocation9], 64  }
  0xca   :  { %11169 = vsyncadd [#allocation9], 4294967232 }
  0xcb   :  { %11170 = dma.done.wait [#allocation12], 64  }
  0xcc   :  { %11171 = vsyncadd [#allocation12], 4294967232 }
  0xcd   :  { %11172 = dma.done.wait [#allocation15], 1056  }
  0xce   :  { %11173 = vsyncadd [#allocation15], 4294966240 }
  0xcf   :  { %11174 = dma.done.wait [#allocation18], 64  }
  0xd0   :  { %11175 = vsyncadd [#allocation18], 4294967232 }
  0xd1   :  { %11176 = dma.done.wait [#allocation21], 64  }
  0xd2   :  { %11177 = vsyncadd [#allocation21], 4294967232  ;;  %vm349_vm0 = vcmask 261120   ;;  %v334_v0 = vld [vmem:[%s11277_s25 + $0x18] sm:$0xff]  ;;  %v333_v1 = vld [vmem:[%s11277_s25 + $0x10] sm:$0xff]  ;;  %vm437_vm1 = vcmask 64512  }
  0xd3   :  { %9918 = vmatprep.subr.mxu0 %v334_v0  ;;  %v11483_v2 = vld [vmem:[#allocation2] sm:$0xff]  ;;  %v332_v3 = vld [vmem:[%s11277_s25 + $0x8] sm:$0xff]  ;;  %s11232_s8 = smov 88   ;;  %s11233_s6 = smov 96   ;;  %vm521_vm2 = vcmask 130048   ;;  %vm1723_vm3 = vcmask 523264  }
  0xd4   :  { %9919 = vmatpush3.msra.mxu0 %v334_v0  ;;  %9926 = vmatprep.mubr.msk.f32.mxu0 %vm349_vm0, %v11483_v2  ;;  %v331_v4 = vld [vmem:[%s11277_s25] sm:$0xff]  ;;  %v11489_v5 = vld [vmem:[#allocation2 + $0x8] sm:$0xff]  ;;  %s11234_s20 = smov 120   ;;  %s11235_s15 = smov 64  }
  0xd5   :  { %9920 = vmatprep.subr.mxu0 %v333_v1  ;;  %v9224_v6 = vld [vmem:[%s11282_s29] ss:$0 sm:$0xff]  ;;  %v11525_v17 = vld [vmem:[%s11262_s13 + $0x8] sm:$0xff]  ;;  %s11236_s16 = smov 56   ;;  %s11237_s30 = smov 80  }
  0xd6   :  { %9921 = vmatpush3.msra.mxu0 %v333_v1  ;;  %v11528_v19 = vld [vmem:[%s11262_s13] sm:$0xff]  ;;  %s11238_s19 = smov 112   ;;  %s11239_s9 = smov 72  }
  0xd7   :  { %9922 = vmatprep.subr.mxu0 %v332_v3  ;;  %s11240_s18 = smov 104   ;;  %s11241_s22 = smov 48  }
  0xd8   :  { %9923 = vmatpush3.msra.mxu0 %v332_v3  ;;  %s11242_s23 = smov 40   ;;  %s12548_s24 = sld [smem:[#allocation34_spill]] }
  0xd9   :  { %9924 = vmatprep.subr.mxu0 %v331_v4  ;;  %s12549_s5 = sld [smem:[#allocation37_spill]] }
  0xda   :  { %9925 = vmatpush3.msra.mxu0 %v331_v4  ;;  %v337_v4 = vld [vmem:[%s11287_s3 + $0x8] sm:$0xff]  ;;  %s12550_s26 = sld [smem:[#allocation39_spill]] }
  0xdb   :  { %9927 = vmatmul.mubr.msk.f32.vlgmr.msra.gmra.mxu0 %vm349_vm0, %v11489_v5  ;;  %s12551_s1 = sld [smem:[#allocation35_spill]] }
  0xdc   :  { %s12552_s21 = sld [smem:[#allocation36_spill]] }
  0xdd   :  { %s12553_s12 = sld [smem:[#allocation38_spill]] }
  0xde   :  { %s12554_s4 = sld [smem:[#allocation40_spill]] }
  0xdf   :  { %s12555_s27 = sld [smem:[#allocation41_spill]] }
  0xe0   :  { %s12556_s2 = sld [smem:[#allocation42_spill]] }
  0xe1   :  { %s12561_s7 = sld [smem:[#allocation47_spill]] }
  0xe2   :  { %s12562_s10 = sld [smem:[#allocation46_spill]] }
  0xe3   :  { %s12563_s11 = sld [smem:[#allocation33_spill]] }
  0xe4   :  { %s12564_s17 = sld [smem:[#allocation48_spill]] }
 0x19b   :  { %v9928_v7 = vpop.f32.mrf.mxu0 }
 0x19c   :  { %v11494_v8 = vadd.f32 %v9928_v7, %v9224_v6 }
 0x19d   :  { %v422_v9 = vpop.f32.mrf.mxu0 }
 0x19e   :  { %v11496_v10 = vadd.f32 %v9224_v6, %v422_v9  ;;  %637 = vrot.lane.b32.xlu1 %v11494_v8, %s11232_s8  ;;  %435 = vrot.lane.b32.xlu0 %v11494_v8, %s11233_s6  ;;  %v336_v6 = vld [vmem:[%s11287_s3] sm:$0xff] }
 0x1a0   :  { %9933 = vmatprep.mubr.msk.f32.mxu1 %vm437_vm1, %v11496_v10 }
 0x1a2   :  { %635 = vrot.lane.b32.xlu1 %v11496_v10, %s11232_s8  ;;  %433 = vrot.lane.b32.xlu0 %v11496_v10, %s11233_s6 }
 0x1a6   :  { %633 = vrot.lane.b32.xlu1 %v11494_v8, %s11234_s20  ;;  %631 = vrot.lane.b32.xlu0 %v11496_v10, %s11234_s20 }
 0x210   :  { %v436_v11 = vpop.permute.xlu0 %435  ;;  %v638_v12 = vpop.permute.xlu1 %637 }
 0x211   :  { %9929 = vmatprep.subr.msk.mxu1 %vm437_vm1, %v436_v11 }
 0x212   :  { %9930 = vmatpush3.xpose.msk.msra.mxu1 %vm437_vm1, %v436_v11 }
 0x214   :  { %v434_v13 = vpop.permute.xlu0 %433  ;;  %v636_v15 = vpop.permute.xlu1 %635 }
 0x215   :  { %9931 = vmatprep.subr.msk.mxu1 %vm437_vm1, %v434_v13 }
 0x216   :  { %9932 = vmatpush3.xpose.msk.msra.mxu1 %vm437_vm1, %v434_v13 }
 0x217   :  { %9943 = vmatprep.subr.msk.mxu1 %vm437_vm1, %v638_v12 }
 0x218   :  { %v632_v14 = vpop.permute.xlu0 %631  ;;  %v634_v16 = vpop.permute.xlu1 %633 }
 0x219   :  { %9934 = vmatmul.mubr.msk.f32.vlgmr.msra.gmra.mxu1 %vm437_vm1, %v11494_v8 }
 0x21a   :  { %9944 = vmatpush3.xpose.msk.msra.mxu1 %vm437_vm1, %v638_v12  ;;  %9947 = vmatprep.mubr.msk.f32.mxu1 %vm437_vm1, %v632_v14 }
 0x21b   :  { %9945 = vmatprep.subr.msk.mxu1 %vm437_vm1, %v636_v15 }
 0x21e   :  { %9946 = vmatpush3.xpose.msk.msra.mxu1 %vm437_vm1, %v636_v15 }
 0x221   :  { %9948 = vmatmul.mubr.msk.f32.vlgmr.msra.gmra.mxu1 %vm437_vm1, %v634_v16 }
 0x2d9   :  { %v9935_v18 = vpop.f32.mrf.mxu1 }
 0x2da   :  { %v518_v20 = vadd.f32 %v9935_v18, %v11525_v17 }
 0x2db   :  { %v512_v21 = vpop.f32.mrf.mxu1 }
 0x2dc   :  { %v513_v22 = vadd.f32 %v512_v21, %v11528_v19  ;;  %v525_v23 = vsel %vm521_vm2, %v518_v20, -inf }
 0x2dd   :  { %526 = vmax.xlane.f32.xlu1 %v525_v23 }
 0x2de   :  { %v522_v24 = vsel %vm521_vm2, %v513_v22, -inf }
 0x2df   :  { %523 = vmax.xlane.f32.xlu0 %v522_v24 }
 0x2e1   :  { %v9949_v25 = vpop.f32.mrf.mxu1 }
 0x2e2   :  { %v719_v28 = vadd.f32 %v9949_v25, %v11525_v17 }
 0x2e3   :  { %v713_v26 = vpop.f32.mrf.mxu1 }
 0x2e4   :  { %v714_v27 = vadd.f32 %v713_v26, %v11528_v19  ;;  %v725_v30 = vsel %vm521_vm2, %v719_v28, -inf }
 0x2e6   :  { %v722_v29 = vsel %vm521_vm2, %v714_v27, -inf }
 0x2e7   :  { %723 = vmax.xlane.f32.xlu0 %v722_v29 }
 0x2eb   :  { %726 = vmax.xlane.f32.xlu0 %v725_v30 }
 0x2ee   :  { %546 = vrot.lane.b32.xlu1 %v11494_v8, %s11235_s15 }
 0x366   :  { %v527_v31 = vpop.xlane.xlu1 %526 }
 0x367   :  { %v529_v32 = vsub.f32 %v518_v20, %v527_v31 }
 0x368   :  { %v524_v33 = vpop.xlane.xlu0 %523 }
 0x369   :  { %v532_v34 = vmul.f32 1.442695, %v529_v32  ;;  %v528_v35 = vsub.f32 %v513_v22, %v524_v33 }
 0x36a   :  { %v547_v36 = vpop.permute.xlu1 %546 }
 0x36b   :  { %10646 = vpow2.f32 %v532_v34  ;;  %v530_v37 = vmul.f32 1.442695, %v528_v35  ;;  %9936 = vmatprep.subr.mxu0 %v547_v36 }
 0x36c   :  { %9937 = vmatpush3.msra.mxu0 %v547_v36 }
 0x36d   :  { %10648 = vpow2.f32 %v530_v37 }
 0x370   :  { %v724_v38 = vpop.xlane.xlu0 %723 }
 0x371   :  { %v728_v48 = vsub.f32 %v714_v27, %v724_v38 }
 0x373   :  { %v730_v49 = vmul.f32 1.442695, %v728_v48 }
 0x374   :  { %v727_v39 = vpop.xlane.xlu0 %726 }
 0x375   :  { %v729_v40 = vsub.f32 %v719_v28, %v727_v39 }
 0x377   :  { %v732_v41 = vmul.f32 1.442695, %v729_v40 }
 0x378   :  { %v10647_v42 = vpop.eup %10646 }
 0x379   :  { %10650 = vpow2.f32 %v732_v41  ;;  %v537_v43 = vsel %vm521_vm2, %v10647_v42, 0.0 }
 0x37a   :  { %v10649_v44 = vpop.eup %10648  ;;  %538 = vadd.xlane.f32.xlu0 %v537_v43  ;;  %10652 = vpow2.f32 %v730_v49 }
 0x37b   :  { %v534_v45 = vsel %vm521_vm2, %v10649_v44, 0.0 }
 0x37c   :  { %535 = vadd.xlane.f32.xlu1 %v534_v45 }
 0x386   :  { %v10651_v46 = vpop.eup %10650 }
 0x387   :  { %v737_v47 = vsel %vm521_vm2, %v10651_v46, 0.0  ;;  %v10653_v50 = vpop.eup %10652 }
 0x388   :  { %738 = vadd.xlane.f32.xlu0 %v737_v47  ;;  %v734_v51 = vsel %vm521_vm2, %v10653_v50, 0.0 }
 0x38d   :  { %746 = vrot.lane.b32.xlu1 %v11494_v8, %s11236_s16 }
 0x39e   :  { %544 = vrot.lane.b32.xlu0 %v11496_v10, %s11235_s15 }
 0x3a2   :  { %999 = vrot.lane.b32.xlu0 %v11494_v8, %s11237_s30 }
 0x3a6   :  { %993 = vrot.lane.b32.xlu0 %v11496_v10, %s11238_s19 }
 0x3aa   :  { %1282 = vrot.lane.b32.xlu0 %v11494_v8, %s11239_s9 }
 0x3ae   :  { %1276 = vrot.lane.b32.xlu0 %v11496_v10, %s11240_s18 }
 0x3b1   :  { %735 = vadd.xlane.f32.xlu1 %v734_v51 }
 0x3c2   :  { %744 = vrot.lane.b32.xlu1 %v11496_v10, %s11236_s16 }
 0x3c6   :  { %997 = vrot.lane.b32.xlu1 %v11496_v10, %s11237_s30 }
 0x3ca   :  { %995 = vrot.lane.b32.xlu1 %v11494_v8, %s11238_s19 }
 0x3ce   :  { %1280 = vrot.lane.b32.xlu1 %v11496_v10, %s11239_s9 }
 0x3d2   :  { %1278 = vrot.lane.b32.xlu1 %v11494_v8, %s11240_s18 }
 0x403   :  { %v539_v52 = vpop.xlane.xlu0 %538 }
 0x404   :  { %10654 = vrcp.f32 %v539_v52 }
 0x405   :  { %v536_v53 = vpop.xlane.xlu1 %535 }
 0x406   :  { %10656 = vrcp.f32 %v536_v53 }
 0x409   :  { %v747_v60 = vpop.permute.xlu1 %746 }
 0x411   :  { %v739_v54 = vpop.xlane.xlu0 %738  ;;  %v10655_v55 = vpop.eup %10654 }
 0x412   :  { %v543_v59 = vmul.f32 %v10655_v55, %v10647_v42  ;;  %10658 = vrcp.f32 %v739_v54 }
 0x413   :  { %v10657_v56 = vpop.eup %10656 }
 0x414   :  { %v542_v57 = vmul.f32 %v10657_v56, %v10649_v44 }
 0x415   :  { %v545_v58 = vpop.permute.xlu0 %544 }
 0x416   :  { %9938 = vmatprep.subr.mxu0 %v545_v58  ;;  %9940 = vmatprep.mubr.msk.f32.mxu0 %vm521_vm2, %v542_v57 }
 0x417   :  { %9939 = vmatpush3.msra.mxu0 %v545_v58 }
 0x418   :  { %9941 = vmatmul.mubr.msk.f32.vlgmr.msra.gmra.mxu0 %vm521_vm2, %v543_v59  ;;  %9950 = vmatprep.subr.mxu0 %v747_v60 }
 0x419   :  { %9951 = vmatpush3.msra.mxu0 %v747_v60  ;;  %v1000_v9 = vpop.permute.xlu0 %999  ;;  %v338_v60 = vld [vmem:[%s11287_s3 + $0x10] sm:$0xff] }
 0x41d   :  { %v994_v14 = vpop.permute.xlu0 %993 }
 0x41f   :  { %v10659_v63 = vpop.eup %10658 }
 0x420   :  { %v743_v3 = vmul.f32 %v10659_v63, %v10651_v46 }
 0x421   :  { %v1283_v16 = vpop.permute.xlu0 %1282 }
 0x425   :  { %v1277_v20 = vpop.permute.xlu0 %1276 }
 0x43a   :  { %v736_v61 = vpop.xlane.xlu1 %735 }
 0x43b   :  { %10660 = vrcp.f32 %v736_v61 }
 0x43e   :  { %v745_v62 = vpop.permute.xlu1 %744 }
 0x43f   :  { %9952 = vmatprep.subr.mxu0 %v745_v62 }
 0x440   :  { %9953 = vmatpush3.msra.mxu0 %v745_v62 }
 0x441   :  { %9957 = vmatprep.subr.mxu0 %v337_v4 }
 0x442   :  { %v998_v15 = vpop.permute.xlu1 %997 }
 0x446   :  { %v996_v18 = vpop.permute.xlu1 %995 }
 0x448   :  { %v10661_v0 = vpop.eup %10660 }
 0x449   :  { %v742_v1 = vmul.f32 %v10661_v0, %v10653_v50 }
 0x44a   :  { %v1281_v21 = vpop.permute.xlu1 %1280 }
 0x44b   :  { %9954 = vmatprep.mubr.msk.f32.mxu0 %vm521_vm2, %v742_v1 }
 0x44c   :  { %9955 = vmatmul.mubr.msk.f32.vlgmr.msra.gmra.mxu0 %vm521_vm2, %v743_v3 }
 0x44d   :  { %9958 = vmatpush3.msra.mxu0 %v337_v4 }
 0x44e   :  { %9962 = vmatprep.subr.mxu0 %v336_v6  ;;  %v1279_v22 = vpop.permute.xlu1 %1278 }
 0x4d8   :  { %v9942_v7 = vpop.f32.mrf.mxu0 }
 0x4da   :  { %v622_v11 = vpop.f32.mrf.mxu0 }
 0x50c   :  { %v9956_v12 = vpop.f32.mrf.mxu0 }
 0x50e   :  { %v822_v13 = vpop.f32.mrf.mxu0 }
 0x50f   :  { %9959 = vmatprep.mubr.msk.f32.mxu0 %vm437_vm1, %v822_v13 }
 0x510   :  { %9960 = vmatmul.mubr.msk.f32.vlgmr.msra.gmra.mxu0 %vm437_vm1, %v9956_v12 }
 0x511   :  { %9963 = vmatpush3.msra.mxu0 %v336_v6  ;;  %9964 = vmatprep.mubr.msk.f32.mxu0 %vm437_vm1, %v622_v11 }
 0x512   :  { %9967 = vmatprep.subr.msk.mxu0 %vm437_vm1, %v1000_v9 }
 0x514   :  { %9965 = vmatmul.mubr.msk.f32.vlgmr.msra.gmra.mxu0 %vm437_vm1, %v9942_v7 }
 0x515   :  { %9968 = vmatpush3.xpose.msk.msra.mxu0 %vm437_vm1, %v1000_v9  ;;  %9971 = vmatprep.mubr.msk.f32.mxu0 %vm437_vm1, %v994_v14 }
 0x516   :  { %9969 = vmatprep.subr.msk.mxu0 %vm437_vm1, %v998_v15 }
 0x519   :  { %9970 = vmatpush3.xpose.msk.msra.mxu0 %vm437_vm1, %v998_v15 }
 0x51a   :  { %9986 = vmatprep.subr.msk.mxu0 %vm437_vm1, %v1283_v16 }
 0x51c   :  { %9972 = vmatmul.mubr.msk.f32.vlgmr.msra.gmra.mxu0 %vm437_vm1, %v996_v18 }
 0x51d   :  { %9987 = vmatpush3.xpose.msk.msra.mxu0 %vm437_vm1, %v1283_v16  ;;  %9990 = vmatprep.mubr.msk.f32.mxu0 %vm437_vm1, %v1277_v20  ;;  %v339_v20 = vld [vmem:[%s11287_s3 + $0x18] sm:$0xff] }
 0x51e   :  { %9988 = vmatprep.subr.msk.mxu0 %vm437_vm1, %v1281_v21 }
 0x521   :  { %9989 = vmatpush3.xpose.msk.msra.mxu0 %vm437_vm1, %v1281_v21 }
 0x524   :  { %9991 = vmatmul.mubr.msk.f32.vlgmr.msra.gmra.mxu0 %vm437_vm1, %v1279_v22 }
 0x5d0   :  { %v9961_v23 = vpop.f32.mrf.mxu0 }
 0x5d2   :  { %v903_v24 = vpop.f32.mrf.mxu0 }
 0x5d4   :  { %v9966_v25 = vpop.f32.mrf.mxu0 }
 0x5d5   :  { %v11588_v26 = vadd.f32 %v9966_v25, %v9961_v23 }
 0x5d6   :  { %v984_v27 = vpop.f32.mrf.mxu0 }
 0x5d7   :  { %v11590_v28 = vadd.f32 %v984_v27, %v903_v24 }
 0x5dc   :  { %v9973_v29 = vpop.f32.mrf.mxu0 }
 0x5dd   :  { %v1081_v30 = vadd.f32 %v9973_v29, %v11525_v17 }
 0x5de   :  { %v1075_v31 = vpop.f32.mrf.mxu0 }
 0x5df   :  { %v1076_v32 = vadd.f32 %v1075_v31, %v11528_v19  ;;  %v1087_v33 = vsel %vm521_vm2, %v1081_v30, -inf }
 0x5e0   :  { %1088 = vmax.xlane.f32.xlu1 %v1087_v33 }
 0x5e1   :  { %v1084_v34 = vsel %vm521_vm2, %v1076_v32, -inf }
 0x5e2   :  { %1085 = vmax.xlane.f32.xlu0 %v1084_v34 }
 0x5e4   :  { %v9992_v35 = vpop.f32.mrf.mxu0 }
 0x5e5   :  { %v1364_v54 = vadd.f32 %v9992_v35, %v11525_v17 }
 0x5e6   :  { %v1358_v36 = vpop.f32.mrf.mxu0 }
 0x5e7   :  { %v1359_v37 = vadd.f32 %v1358_v36, %v11528_v19  ;;  %v1370_v56 = vsel %vm521_vm2, %v1364_v54, -inf }
 0x5e9   :  { %v1367_v38 = vsel %vm521_vm2, %v1359_v37, -inf }
 0x5f1   :  { %1108 = vrot.lane.b32.xlu1 %v11494_v8, %s11241_s22 }
 0x615   :  { %1368 = vmax.xlane.f32.xlu1 %v1367_v38 }
 0x669   :  { %v1089_v39 = vpop.xlane.xlu1 %1088 }
 0x66a   :  { %v1091_v40 = vsub.f32 %v1081_v30, %v1089_v39 }
 0x66b   :  { %v1086_v41 = vpop.xlane.xlu0 %1085 }
 0x66c   :  { %v1094_v42 = vmul.f32 1.442695, %v1091_v40  ;;  %v1090_v43 = vsub.f32 %v1076_v32, %v1086_v41  ;;  %v9259_v32 = vld [vmem:[%s12548_s24] ss:$0 sm:$0xff] }
 0x66d   :  { %v1109_v44 = vpop.permute.xlu1 %1108 }
 0x66e   :  { %10662 = vpow2.f32 %v1094_v42  ;;  %v1092_v45 = vmul.f32 1.442695, %v1090_v43  ;;  %9974 = vmatprep.subr.mxu1 %v1109_v44 }
 0x66f   :  { %9975 = vmatpush3.msra.mxu1 %v1109_v44 }
 0x670   :  { %10664 = vpow2.f32 %v1092_v45 }
 0x67b   :  { %v10663_v46 = vpop.eup %10662 }
 0x67c   :  { %v1099_v47 = vsel %vm521_vm2, %v10663_v46, 0.0 }
 0x67d   :  { %v10665_v48 = vpop.eup %10664  ;;  %1100 = vadd.xlane.f32.xlu0 %v1099_v47  ;;  %v1614_v47 = vld [vmem:[%s12549_s5 + $0x10] sm:$0xff] }
 0x67e   :  { %v1096_v49 = vsel %vm521_vm2, %v10665_v48, 0.0 }
 0x681   :  { %1097 = vadd.xlane.f32.xlu0 %v1096_v49  ;;  %v1612_v49 = vld [vmem:[%s12549_s5] sm:$0xff] }
 0x697   :  { %1106 = vrot.lane.b32.xlu0 %v11496_v10, %s11241_s22 }
 0x69e   :  { %v1369_v50 = vpop.xlane.xlu1 %1368 }
 0x69f   :  { %v1373_v51 = vsub.f32 %v1359_v37, %v1369_v50  ;;  %v1624_v50 = vld [vmem:[%s12550_s26 + $0x38] sm:$0xff] }
 0x6a1   :  { %v1375_v52 = vmul.f32 1.442695, %v1373_v51  ;;  %v1623_v51 = vld [vmem:[%s12550_s26 + $0x30] sm:$0xff] }
 0x6a3   :  { %10666 = vpow2.f32 %v1375_v52  ;;  %v1622_v52 = vld [vmem:[%s12550_s26 + $0x28] sm:$0xff] }
 0x6b0   :  { %v10667_v53 = vpop.eup %10666 }
 0x6b1   :  { %v1379_v55 = vsel %vm521_vm2, %v10667_v53, 0.0 }
 0x6b2   :  { %1380 = vadd.xlane.f32.xlu1 %v1379_v55 }
 0x6b6   :  { %1371 = vmax.xlane.f32.xlu0 %v1370_v56 }
 0x6c3   :  { %1391 = vrot.lane.b32.xlu1 %v11494_v8, %s11242_s23 }
 0x706   :  { %v1101_v57 = vpop.xlane.xlu0 %1100 }
 0x707   :  { %10668 = vrcp.f32 %v1101_v57 }
 0x70a   :  { %v1098_v58 = vpop.xlane.xlu0 %1097 }
 0x70b   :  { %10670 = vrcp.f32 %v1098_v58 }
 0x70e   :  { %v1107_v59 = vpop.permute.xlu0 %1106 }
 0x70f   :  { %9976 = vmatprep.subr.mxu1 %v1107_v59 }
 0x710   :  { %9977 = vmatpush3.msra.mxu1 %v1107_v59 }
 0x711   :  { %9981 = vmatprep.subr.mxu1 %v338_v60 }
 0x714   :  { %v10669_v61 = vpop.eup %10668 }
 0x715   :  { %v1105_v0 = vmul.f32 %v10669_v61, %v10663_v46  ;;  %v1615_v46 = vld [vmem:[%s12549_s5 + $0x18] sm:$0xff]  ;;  %v9260_v61 = vld [vmem:[%s12551_s1] ss:$0 sm:$0xff] }
 0x716   :  { %10005 = vmatprep.subr.mxu0 %v1615_v46 }
 0x717   :  { %10006 = vmatpush3.msra.mxu0 %v1615_v46 }
 0x718   :  { %v10671_v62 = vpop.eup %10670  ;;  %10007 = vmatprep.subr.mxu0 %v1614_v47 }
 0x719   :  { %v1104_v63 = vmul.f32 %v10671_v62, %v10665_v48  ;;  %v1613_v48 = vld [vmem:[%s12549_s5 + $0x8] sm:$0xff]  ;;  %10008 = vmatpush3.msra.mxu0 %v1614_v47 }
 0x71a   :  { %10009 = vmatprep.subr.mxu0 %v1613_v48 }
 0x71b   :  { %9978 = vmatprep.mubr.msk.f32.mxu1 %vm521_vm2, %v1104_v63  ;;  %10010 = vmatpush3.msra.mxu0 %v1613_v48 }
 0x71c   :  { %9979 = vmatmul.mubr.msk.f32.vlgmr.msra.gmra.mxu1 %vm521_vm2, %v1105_v0  ;;  %10011 = vmatprep.subr.mxu0 %v1612_v49 }
 0x71d   :  { %9982 = vmatpush3.msra.mxu1 %v338_v60  ;;  %10012 = vmatpush3.msra.mxu0 %v1612_v49  ;;  %v9268_v49 = vld [vmem:[%s12555_s27] ss:$0 sm:$0xff] }
 0x73b   :  { %v1381_v1 = vpop.xlane.xlu1 %1380 }
 0x73f   :  { %v1372_v8 = vpop.xlane.xlu0 %1371  ;;  %v1392_v3 = vpop.permute.xlu1 %1391 }
 0x740   :  { %v1374_v4 = vsub.f32 %v1364_v54, %v1372_v8  ;;  %9993 = vmatprep.subr.mxu1 %v1392_v3  ;;  %v9261_v8 = vld [vmem:[%s12552_s21] ss:$0 sm:$0xff] }
 0x742   :  { %v1377_v6 = vmul.f32 1.442695, %v1374_v4 }
 0x744   :  { %10672 = vpow2.f32 %v1377_v6 }
 0x745   :  { %10674 = vrcp.f32 %v1381_v1 }
 0x751   :  { %v10673_v7 = vpop.eup %10672 }
 0x752   :  { %v1382_v9 = vsel %vm521_vm2, %v10673_v7, 0.0  ;;  %v10675_v11 = vpop.eup %10674 }
 0x753   :  { %1383 = vadd.xlane.f32.xlu0 %v1382_v9  ;;  %v1387_v15 = vmul.f32 %v10675_v11, %v10667_v53  ;;  %v1621_v53 = vld [vmem:[%s12550_s26 + $0x20] sm:$0xff]  ;;  %v1619_v9 = vld [vmem:[%s12550_s26 + $0x10] sm:$0xff]  ;;  %v1618_v11 = vld [vmem:[%s12550_s26 + $0x8] sm:$0xff] }
 0x769   :  { %1389 = vrot.lane.b32.xlu0 %v11496_v10, %s11242_s23 }
 0x7dc   :  { %v1384_v12 = vpop.xlane.xlu0 %1383  ;;  %v9980_v13 = vpop.f32.mrf.mxu1 }
 0x7dd   :  { %10676 = vrcp.f32 %v1384_v12  ;;  %v1617_v12 = vld [vmem:[%s12550_s26] sm:$0xff] }
 0x7de   :  { %v1184_v14 = vpop.f32.mrf.mxu1 }
 0x7df   :  { %9983 = vmatprep.mubr.msk.f32.mxu1 %vm437_vm1, %v1184_v14 }
 0x7e0   :  { %v1390_v16 = vpop.permute.xlu0 %1389  ;;  %9984 = vmatmul.mubr.msk.f32.vlgmr.msra.gmra.mxu1 %vm437_vm1, %v9980_v13  ;;  %v9262_v13 = vld [vmem:[%s12553_s12] ss:$0 sm:$0xff] }
 0x7e1   :  { %9994 = vmatpush3.msra.mxu1 %v1392_v3  ;;  %9997 = vmatprep.mubr.msk.f32.mxu1 %vm521_vm2, %v1387_v15 }
 0x7e2   :  { %9995 = vmatprep.subr.mxu1 %v1390_v16 }
 0x7e3   :  { %9996 = vmatpush3.msra.mxu1 %v1390_v16 }
 0x7e4   :  { %10000 = vmatprep.subr.mxu1 %v339_v20 }
 0x7ea   :  { %v10677_v18 = vpop.eup %10676 }
 0x7eb   :  { %v1388_v10 = vmul.f32 %v10677_v18, %v10673_v7  ;;  %v1620_v7 = vld [vmem:[%s12550_s26 + $0x18] sm:$0xff] }
 0x7ed   :  { %9998 = vmatmul.mubr.msk.f32.vlgmr.msra.gmra.mxu1 %vm521_vm2, %v1388_v10 }
 0x7ee   :  { %10001 = vmatpush3.msra.mxu1 %v339_v20 }
 0x7ef   :  { %10016 = vmatprep.subr.mxu1 %v1624_v50 }
 0x8a0   :  { %v9985_v21 = vpop.f32.mrf.mxu1 }
 0x8a1   :  { %v1275_v22 = vadd.f32 %v9985_v21, %v11588_v26  ;;  %v9265_v21 = vld [vmem:[%s12554_s4] ss:$0 sm:$0xff] }
 0x8a2   :  { %v1265_v23 = vpop.f32.mrf.mxu1 }
 0x8a3   :  { %v1274_v24 = vadd.f32 %v1265_v23, %v11590_v28 }
 0x8ad   :  { %v9999_v25 = vpop.f32.mrf.mxu1 }
 0x8af   :  { %v1467_v27 = vpop.f32.mrf.mxu1 }
 0x8b0   :  { %10002 = vmatprep.mubr.msk.f32.mxu1 %vm437_vm1, %v1467_v27 }
 0x8b1   :  { %10003 = vmatmul.mubr.msk.f32.vlgmr.msra.gmra.mxu1 %vm437_vm1, %v9999_v25 }
 0x8b2   :  { %10017 = vmatpush3.msra.mxu1 %v1624_v50 }
 0x8b3   :  { %10018 = vmatprep.subr.mxu1 %v1623_v51 }
 0x8b4   :  { %10019 = vmatpush3.msra.mxu1 %v1623_v51 }
 0x8b5   :  { %10020 = vmatprep.subr.mxu1 %v1622_v52 }
 0x8b6   :  { %10021 = vmatpush3.msra.mxu1 %v1622_v52 }
 0x8b7   :  { %10022 = vmatprep.subr.mxu1 %v1621_v53 }
 0x8b8   :  { %10023 = vmatpush3.msra.mxu1 %v1621_v53 }
 0x8b9   :  { %10024 = vmatprep.subr.mxu1 %v1620_v7 }
 0x8ba   :  { %10025 = vmatpush3.msra.mxu1 %v1620_v7 }
 0x8bb   :  { %10026 = vmatprep.subr.mxu1 %v1619_v9 }
 0x8bc   :  { %10027 = vmatpush3.msra.mxu1 %v1619_v9 }
 0x8bd   :  { %10028 = vmatprep.subr.mxu1 %v1618_v11 }
 0x8be   :  { %10029 = vmatpush3.msra.mxu1 %v1618_v11 }
 0x8bf   :  { %10030 = vmatprep.subr.mxu1 %v1617_v12 }
 0x8c0   :  { %10031 = vmatpush3.msra.mxu1 %v1617_v12 }
 0x971   :  { %v10004_v29 = vpop.f32.mrf.mxu1 }
 0x972   :  { %v1558_v30 = vadd.f32 %v10004_v29, %v1275_v22 }
 0x973   :  { %v1548_v31 = vpop.f32.mrf.mxu1 }
 0x974   :  { %v1560_v33 = vadd.f32 %v1558_v30, %v11489_v5  ;;  %v1557_v34 = vadd.f32 %v1548_v31, %v1274_v24 }
 0x976   :  { %v1559_v35 = vadd.f32 %v1557_v34, %v11483_v2  ;;  %v1568_v36 = vadd.f32 %v9259_v32, %v1560_v33 }
 0x978   :  { %v1572_v26 = vsel %vm349_vm0, %v1568_v36, 0.0  ;;  %v1567_v37 = vadd.f32 %v9259_v32, %v1559_v35 }
 0x979   :  { %1573 = vadd.xlane.f32.xlu0 %v1572_v26 }
 0x97a   :  { %v1569_v28 = vsel %vm349_vm0, %v1567_v37, 0.0 }
 0x97b   :  { %1570 = vadd.xlane.f32.xlu1 %v1569_v28 }
 0xa02   :  { %v1574_v38 = vpop.xlane.xlu0 %1573 }
 0xa03   :  { %v1577_v39 = vmul.f32 0.03125, %v1574_v38 }
 0xa04   :  { %v1571_v40 = vpop.xlane.xlu1 %1570 }
 0xa05   :  { %v1579_v41 = vsub.f32 %v1568_v36, %v1577_v39  ;;  %v1576_v5 = vmul.f32 0.03125, %v1571_v40  ;;  %v9273_v40 = vld [vmem:[%s11277_s25 + $0x38] sm:$0xff] }
 0xa06   :  { %10035 = vmatprep.subr.mxu0 %v9273_v40 }
 0xa07   :  { %v1578_v42 = vsub.f32 %v1567_v37, %v1576_v5  ;;  %v1581_v43 = vmul.f32 %v1579_v41, %v1579_v41  ;;  %v9271_v5 = vld [vmem:[%s11277_s25 + $0x28] sm:$0xff] }
 0xa09   :  { %v1585_v2 = vsel %vm349_vm0, %v1581_v43, 0.0  ;;  %v1580_v44 = vmul.f32 %v1578_v42, %v1578_v42 }
 0xa0a   :  { %1586 = vadd.xlane.f32.xlu0 %v1585_v2 }
 0xa0b   :  { %v1582_v45 = vsel %vm349_vm0, %v1580_v44, 0.0 }
 0xa0c   :  { %1583 = vadd.xlane.f32.xlu1 %v1582_v45 }
 0xa93   :  { %v1587_v54 = vpop.xlane.xlu0 %1586 }
 0xa94   :  { %v1589_v55 = vmul.f32 0.03125, %v1587_v54  ;;  %v9269_v54 = vld [vmem:[%s12556_s2] ss:$0 sm:$0xff] }
 0xa95   :  { %v1584_v56 = vpop.xlane.xlu1 %1583 }
 0xa96   :  { %v1591_v57 = vadd.f32 1e-05, %v1589_v55  ;;  %v1588_v58 = vmul.f32 0.03125, %v1584_v56 }
 0xa98   :  { %10678 = vrsqrt.f32 %v1591_v57  ;;  %v1590_v59 = vadd.f32 1e-05, %v1588_v58  ;;  %v9282_v58 = vld [vmem:[%s11282_s29 + $0x1] ss:$0 sm:$0xff]  ;;  %s12559_s29 = sld [smem:[#allocation32_spill]] }
 0xa9a   :  { %10680 = vrsqrt.f32 %v1590_v59 }
 0xaa5   :  { %v10679_v60 = vpop.eup %10678 }
 0xaa6   :  { %v1595_v62 = vmul.f32 %v10679_v60, %v1579_v41  ;;  %v9272_v41 = vld [vmem:[%s11277_s25 + $0x30] sm:$0xff] }
 0xaa7   :  { %v10681_v63 = vpop.eup %10680 }
 0xaa8   :  { %v1594_v0 = vmul.f32 %v10681_v63, %v1578_v42  ;;  %v1603_v1 = vmul.f32 %v9260_v61, %v1595_v62  ;;  %v9270_v42 = vld [vmem:[%s11277_s25 + $0x20] sm:$0xff]  ;;  %s12558_s25 = sld [smem:[#allocation44_spill]] }
 0xaaa   :  { %v1602_v3 = vmul.f32 %v9260_v61, %v1594_v0  ;;  %v1611_v6 = vadd.f32 %v9261_v8, %v1603_v1 }
 0xaac   :  { %v1610_v4 = vadd.f32 %v9261_v8, %v1602_v3 }
 0xaae   :  { %10013 = vmatprep.mubr.msk.f32.mxu0 %vm349_vm0, %v1610_v4 }
 0xaaf   :  { %10014 = vmatmul.mubr.msk.f32.vlgmr.msra.gmra.mxu0 %vm349_vm0, %v1611_v6 }
 0xab0   :  { %10036 = vmatpush3.msra.mxu0 %v9273_v40 }
 0xab1   :  { %10037 = vmatprep.subr.mxu0 %v9272_v41 }
 0xab2   :  { %10038 = vmatpush3.msra.mxu0 %v9272_v41 }
 0xab3   :  { %10039 = vmatprep.subr.mxu0 %v9271_v5 }
 0xab4   :  { %10040 = vmatpush3.msra.mxu0 %v9271_v5 }
 0xab5   :  { %10041 = vmatprep.subr.mxu0 %v9270_v42 }
 0xab6   :  { %10042 = vmatpush3.msra.mxu0 %v9270_v42 }
 0xb6f   :  { %v10015_v14 = vpop.f32.mrf.mxu0 }
 0xb70   :  { %v1712_v15 = vadd.f32 %v10015_v14, %v9262_v13 }
 0xb71   :  { %v1706_v16 = vpop.f32.mrf.mxu0 }
 0xb72   :  { %v1707_v18 = vadd.f32 %v9262_v13, %v1706_v16  ;;  %v1716_v20 = vmax.f32 %v1712_v15, 0.0 }
 0xb74   :  { %v1715_v10 = vmax.f32 %v1707_v18, 0.0 }
 0xb76   :  { %10032 = vmatprep.mubr.msk.f32.mxu1 %vm1723_vm3, %v1715_v10 }
 0xb77   :  { %10033 = vmatmul.mubr.msk.f32.vlgmr.msra.gmra.mxu1 %vm1723_vm3, %v1716_v20 }
 0xc37   :  { %v10034_v22 = vpop.f32.mrf.mxu1 }
 0xc38   :  { %v1802_v23 = vadd.f32 %v10034_v22, %v9265_v21 }
 0xc39   :  { %v1796_v24 = vpop.f32.mrf.mxu1 }
 0xc3a   :  { %v1797_v25 = vadd.f32 %v9265_v21, %v1796_v24  ;;  %v1806_v27 = vadd.f32 %v1802_v23, %v1611_v6 }
 0xc3c   :  { %v1810_v29 = vsel %vm349_vm0, %v1806_v27, 0.0  ;;  %v1805_v30 = vadd.f32 %v1797_v25, %v1610_v4 }
 0xc3d   :  { %1811 = vadd.xlane.f32.xlu0 %v1810_v29 }
 0xc3e   :  { %v1807_v31 = vsel %vm349_vm0, %v1805_v30, 0.0 }
 0xc3f   :  { %1808 = vadd.xlane.f32.xlu1 %v1807_v31 }
 0xcc6   :  { %v1812_v32 = vpop.xlane.xlu0 %1811 }
 0xcc7   :  { %v1814_v33 = vmul.f32 0.03125, %v1812_v32 }
 0xcc8   :  { %v1809_v34 = vpop.xlane.xlu1 %1808 }
 0xcc9   :  { %v1816_v35 = vsub.f32 %v1806_v27, %v1814_v33  ;;  %v1813_v36 = vmul.f32 0.03125, %v1809_v34 }
 0xccb   :  { %v1815_v26 = vsub.f32 %v1805_v30, %v1813_v36  ;;  %v1818_v37 = vmul.f32 %v1816_v35, %v1816_v35 }
 0xccd   :  { %v1822_v28 = vsel %vm349_vm0, %v1818_v37, 0.0  ;;  %v1817_v38 = vmul.f32 %v1815_v26, %v1815_v26 }
 0xcce   :  { %1823 = vadd.xlane.f32.xlu0 %v1822_v28 }
 0xccf   :  { %v1819_v39 = vsel %vm349_vm0, %v1817_v38, 0.0 }
 0xcd0   :  { %1820 = vadd.xlane.f32.xlu1 %v1819_v39 }
 0xd57   :  { %v1824_v43 = vpop.xlane.xlu0 %1823 }
 0xd58   :  { %v1826_v2 = vmul.f32 0.03125, %v1824_v43 }
 0xd59   :  { %v1821_v44 = vpop.xlane.xlu1 %1820 }
 0xd5a   :  { %v1828_v45 = vadd.f32 1e-05, %v1826_v2  ;;  %v1825_v46 = vmul.f32 0.03125, %v1821_v44 }
 0xd5c   :  { %10682 = vrsqrt.f32 %v1828_v45  ;;  %v1827_v47 = vadd.f32 1e-05, %v1825_v46 }
 0xd5e   :  { %10684 = vrsqrt.f32 %v1827_v47 }
 0xd69   :  { %v10683_v48 = vpop.eup %10682 }
 0xd6a   :  { %v1832_v50 = vmul.f32 %v10683_v48, %v1816_v35  ;;  %v9275_v35 = vld [vmem:[%s11287_s3 + $0x20] sm:$0xff] }
 0xd6b   :  { %v10685_v51 = vpop.eup %10684 }
 0xd6c   :  { %v1831_v52 = vmul.f32 %v10685_v51, %v1815_v26  ;;  %v1840_v53 = vmul.f32 %v9268_v49, %v1832_v50 }
 0xd6e   :  { %v1839_v55 = vmul.f32 %v9268_v49, %v1831_v52  ;;  %v11663_v57 = vadd.f32 %v9269_v54, %v1840_v53  ;;  %v9276_v52 = vld [vmem:[%s11287_s3 + $0x28] sm:$0xff] }
 0xd70   :  { %v11661_v56 = vadd.f32 %v9269_v54, %v1839_v55 }
 0xd72   :  { %10043 = vmatprep.mubr.msk.f32.mxu0 %vm349_vm0, %v11661_v56 }
 0xd73   :  { %10044 = vmatmul.mubr.msk.f32.vlgmr.msra.gmra.mxu0 %vm349_vm0, %v11663_v57 }
 0xe33   :  { %v10045_v59 = vpop.f32.mrf.mxu0 }
 0xe34   :  { %v11670_v60 = vadd.f32 %v10045_v59, %v9282_v58 }
 0xe35   :  { %v1945_v61 = vpop.f32.mrf.mxu0 }
 0xe36   :  { %v11672_v62 = vadd.f32 %v9282_v58, %v1945_v61  ;;  %1958 = vrot.lane.b32.xlu1 %v11670_v60, %s11233_s6 }
 0xe38   :  { %1956 = vrot.lane.b32.xlu0 %v11672_v62, %s11233_s6  ;;  %10050 = vmatprep.mubr.msk.f32.mxu0 %vm437_vm1, %v11672_v62 }
 0xea8   :  { %v1959_v63 = vpop.permute.xlu1 %1958 }
 0xea9   :  { %10046 = vmatprep.subr.msk.mxu0 %vm437_vm1, %v1959_v63 }
 0xeaa   :  { %10047 = vmatpush3.xpose.msk.msra.mxu0 %vm437_vm1, %v1959_v63  ;;  %v1957_v0 = vpop.permute.xlu0 %1956 }
 0xeab   :  { %10048 = vmatprep.subr.msk.mxu0 %vm437_vm1, %v1957_v0 }
 0xeae   :  { %10049 = vmatpush3.xpose.msk.msra.mxu0 %vm437_vm1, %v1957_v0 }
 0xeb1   :  { %10051 = vmatmul.mubr.msk.f32.vlgmr.msra.gmra.mxu0 %vm437_vm1, %v11670_v60 }
 0xf71   :  { %v10052_v1 = vpop.f32.mrf.mxu0 }
 0xf72   :  { %v2040_v8 = vadd.f32 %v10052_v1, %v11525_v17 }
 0xf73   :  { %v2034_v3 = vpop.f32.mrf.mxu0 }
 0xf74   :  { %v2035_v4 = vadd.f32 %v2034_v3, %v11528_v19  ;;  %v2046_v6 = vsel %vm521_vm2, %v2040_v8, -inf }
 0xf75   :  { %2047 = vmax.xlane.f32.xlu0 %v2046_v6 }
 0xf76   :  { %v2043_v7 = vsel %vm521_vm2, %v2035_v4, -inf }
 0xf77   :  { %2044 = vmax.xlane.f32.xlu1 %v2043_v7 }
 0xf88   :  { %2067 = vrot.lane.b32.xlu1 %v11670_v60, %s11235_s15 }
 0xf8c   :  { %2158 = vrot.lane.b32.xlu1 %v11670_v60, %s11232_s8 }
 0xf90   :  { %2156 = vrot.lane.b32.xlu1 %v11672_v62, %s11232_s8 }
 0xffe   :  { %v2048_v9 = vpop.xlane.xlu0 %2047 }
 0xfff   :  { %v2050_v11 = vsub.f32 %v2040_v8, %v2048_v9 }
0x1000   :  { %v2045_v12 = vpop.xlane.xlu1 %2044 }
0x1001   :  { %v2053_v13 = vmul.f32 1.442695, %v2050_v11  ;;  %v2049_v14 = vsub.f32 %v2035_v4, %v2045_v12 }
0x1003   :  { %10686 = vpow2.f32 %v2053_v13  ;;  %v2051_v15 = vmul.f32 1.442695, %v2049_v14  ;;  %v10878_v13 = vld [vmem:[%s11262_s13 + $0x8] sm:$0xff] }
0x1004   :  { %v2068_v16 = vpop.permute.xlu1 %2067 }
0x1005   :  { %10688 = vpow2.f32 %v2051_v15  ;;  %10053 = vmatprep.subr.mxu1 %v2068_v16 }
0x1006   :  { %10054 = vmatpush3.msra.mxu1 %v2068_v16  ;;  %v10879_v16 = vld [vmem:[%s11262_s13] sm:$0xff]  ;;  %s12557_s13 = sld [smem:[#allocation43_spill]] }
0x1008   :  { %v2159_v22 = vpop.permute.xlu1 %2158 }
0x100c   :  { %v2157_v23 = vpop.permute.xlu1 %2156 }
0x1010   :  { %v10687_v18 = vpop.eup %10686 }
0x1011   :  { %v2058_v10 = vsel %vm521_vm2, %v10687_v18, 0.0 }
0x1012   :  { %v10689_v20 = vpop.eup %10688  ;;  %2059 = vadd.xlane.f32.xlu0 %v2058_v10 }
0x1013   :  { %v2055_v21 = vsel %vm521_vm2, %v10689_v20, 0.0 }
0x1014   :  { %2056 = vadd.xlane.f32.xlu1 %v2055_v21 }
0x1025   :  { %2154 = vrot.lane.b32.xlu1 %v11670_v60, %s11234_s20 }
0x1028   :  { %2065 = vrot.lane.b32.xlu0 %v11672_v62, %s11235_s15 }
0x102c   :  { %2152 = vrot.lane.b32.xlu0 %v11672_v62, %s11234_s20 }
0x109b   :  { %v2060_v24 = vpop.xlane.xlu0 %2059 }
0x109c   :  { %10690 = vrcp.f32 %v2060_v24 }
0x109d   :  { %v2057_v25 = vpop.xlane.xlu1 %2056 }
0x109e   :  { %10692 = vrcp.f32 %v2057_v25 }
0x109f   :  { %v2066_v27 = vpop.permute.xlu0 %2065 }
0x10a0   :  { %10055 = vmatprep.subr.mxu1 %v2066_v27 }
0x10a1   :  { %10056 = vmatpush3.msra.mxu1 %v2066_v27  ;;  %v2155_v34 = vpop.permute.xlu1 %2154 }
0x10a2   :  { %10060 = vmatprep.subr.msk.mxu1 %vm437_vm1, %v2159_v22 }
0x10a3   :  { %v2153_v33 = vpop.permute.xlu0 %2152 }
0x10a9   :  { %v10691_v29 = vpop.eup %10690 }
0x10aa   :  { %v2064_v32 = vmul.f32 %v10691_v29, %v10687_v18 }
0x10ab   :  { %v10693_v30 = vpop.eup %10692 }
0x10ac   :  { %v2063_v31 = vmul.f32 %v10693_v30, %v10689_v20 }
0x10ae   :  { %10057 = vmatprep.mubr.msk.f32.mxu1 %vm521_vm2, %v2063_v31 }
0x10af   :  { %10058 = vmatmul.mubr.msk.f32.vlgmr.msra.gmra.mxu1 %vm521_vm2, %v2064_v32 }
0x10b0   :  { %10061 = vmatpush3.xpose.msk.msra.mxu1 %vm437_vm1, %v2159_v22  ;;  %10064 = vmatprep.mubr.msk.f32.mxu1 %vm437_vm1, %v2153_v33 }
0x10b1   :  { %10062 = vmatprep.subr.msk.mxu1 %vm437_vm1, %v2157_v23 }
0x10b4   :  { %10063 = vmatpush3.xpose.msk.msra.mxu1 %vm437_vm1, %v2157_v23 }
0x10b5   :  { %10079 = vmatprep.subr.mxu1 %v9275_v35 }
0x10b7   :  { %10065 = vmatmul.mubr.msk.f32.vlgmr.msra.gmra.mxu1 %vm437_vm1, %v2155_v34 }
0x10b8   :  { %10080 = vmatpush3.msra.mxu1 %v9275_v35 }
0x116f   :  { %v10059_v36 = vpop.f32.mrf.mxu1 }
0x1171   :  { %v2143_v26 = vpop.f32.mrf.mxu1 }
0x1172   :  { %10081 = vmatprep.mubr.msk.f32.mxu1 %vm437_vm1, %v2143_v26 }
0x1173   :  { %10082 = vmatmul.mubr.msk.f32.vlgmr.msra.gmra.mxu1 %vm437_vm1, %v10059_v36 }
0x1177   :  { %v10066_v37 = vpop.f32.mrf.mxu1 }
0x1178   :  { %v2240_v28 = vadd.f32 %v10066_v37, %v11525_v17 }
0x1179   :  { %v2234_v38 = vpop.f32.mrf.mxu1 }
0x117a   :  { %v2235_v39 = vadd.f32 %v2234_v38, %v11528_v19  ;;  %v2246_v40 = vsel %vm521_vm2, %v2240_v28, -inf }
0x117b   :  { %2247 = vmax.xlane.f32.xlu1 %v2246_v40 }
0x117c   :  { %v2243_v41 = vsel %vm521_vm2, %v2235_v39, -inf }
0x117d   :  { %2244 = vmax.xlane.f32.xlu0 %v2243_v41 }
0x118c   :  { %2267 = vrot.lane.b32.xlu1 %v11670_v60, %s11236_s16 }
0x1190   :  { %2520 = vrot.lane.b32.xlu1 %v11670_v60, %s11237_s30 }
0x1194   :  { %2518 = vrot.lane.b32.xlu1 %v11672_v62, %s11237_s30 }
0x1198   :  { %2516 = vrot.lane.b32.xlu1 %v11670_v60, %s11238_s19 }
0x119c   :  { %2801 = vrot.lane.b32.xlu1 %v11672_v62, %s11239_s9 }
0x11a0   :  { %2799 = vrot.lane.b32.xlu1 %v11670_v60, %s11240_s18 }
0x1204   :  { %v2248_v17 = vpop.xlane.xlu1 %2247 }
0x1205   :  { %v2250_v19 = vsub.f32 %v2240_v28, %v2248_v17 }
0x1206   :  { %v2245_v5 = vpop.xlane.xlu0 %2244 }
0x1207   :  { %v2253_v42 = vmul.f32 1.442695, %v2250_v19  ;;  %v2249_v43 = vsub.f32 %v2235_v39, %v2245_v5 }
0x1208   :  { %v2268_v2 = vpop.permute.xlu1 %2267 }
0x1209   :  { %10694 = vpow2.f32 %v2253_v42  ;;  %v2251_v44 = vmul.f32 1.442695, %v2249_v43  ;;  %10067 = vmatprep.subr.mxu0 %v2268_v2  ;;  %v9277_v43 = vld [vmem:[%s11287_s3 + $0x30] sm:$0xff] }
0x120a   :  { %10068 = vmatpush3.msra.mxu0 %v2268_v2 }
0x120b   :  { %10696 = vpow2.f32 %v2251_v44 }
0x120c   :  { %v2521_v59 = vpop.permute.xlu1 %2520 }
0x1210   :  { %v2519_v0 = vpop.permute.xlu1 %2518 }
0x1214   :  { %v2517_v3 = vpop.permute.xlu1 %2516 }
0x1216   :  { %v10695_v45 = vpop.eup %10694 }
0x1217   :  { %v2258_v46 = vsel %vm521_vm2, %v10695_v45, 0.0 }
0x1218   :  { %v10697_v47 = vpop.eup %10696  ;;  %2259 = vadd.xlane.f32.xlu0 %v2258_v46  ;;  %v2802_v6 = vpop.permute.xlu1 %2801 }
0x1219   :  { %v2255_v48 = vsel %vm521_vm2, %v10697_v47, 0.0 }
0x121c   :  { %2256 = vadd.xlane.f32.xlu0 %v2255_v48  ;;  %v2800_v7 = vpop.permute.xlu1 %2799 }
0x1232   :  { %2265 = vrot.lane.b32.xlu0 %v11672_v62, %s11236_s16 }
0x1236   :  { %2514 = vrot.lane.b32.xlu0 %v11672_v62, %s11238_s19 }
0x123a   :  { %2803 = vrot.lane.b32.xlu0 %v11670_v60, %s11239_s9 }
0x123e   :  { %2797 = vrot.lane.b32.xlu0 %v11672_v62, %s11240_s18 }
0x12a1   :  { %v2260_v49 = vpop.xlane.xlu0 %2259 }
0x12a2   :  { %10698 = vrcp.f32 %v2260_v49 }
0x12a5   :  { %v2257_v50 = vpop.xlane.xlu0 %2256 }
0x12a6   :  { %10700 = vrcp.f32 %v2257_v50 }
0x12a9   :  { %v2266_v51 = vpop.permute.xlu0 %2265 }
0x12aa   :  { %10069 = vmatprep.subr.mxu0 %v2266_v51 }
0x12ab   :  { %10070 = vmatpush3.msra.mxu0 %v2266_v51 }
0x12ac   :  { %10074 = vmatprep.subr.mxu0 %v9276_v52 }
0x12ad   :  { %v2515_v61 = vpop.permute.xlu0 %2514 }
0x12af   :  { %v10699_v53 = vpop.eup %10698 }
0x12b0   :  { %v2264_v58 = vmul.f32 %v10699_v53, %v10695_v45  ;;  %v10083_v53 = vpop.f32.mrf.mxu1 }
0x12b1   :  { %v2804_v8 = vpop.permute.xlu0 %2803 }
0x12b3   :  { %v10701_v54 = vpop.eup %10700 }
0x12b4   :  { %v2263_v55 = vmul.f32 %v10701_v54, %v10697_v47  ;;  %v2505_v54 = vpop.f32.mrf.mxu1 }
0x12b5   :  { %v2798_v4 = vpop.permute.xlu0 %2797 }
0x12b6   :  { %10071 = vmatprep.mubr.msk.f32.mxu0 %vm521_vm2, %v2263_v55 }
0x12b7   :  { %10072 = vmatmul.mubr.msk.f32.vlgmr.msra.gmra.mxu0 %vm521_vm2, %v2264_v58 }
0x12b8   :  { %10075 = vmatpush3.msra.mxu0 %v9276_v52 }
0x12b9   :  { %10084 = vmatprep.subr.msk.mxu0 %vm437_vm1, %v2521_v59 }
0x1377   :  { %v10073_v63 = vpop.f32.mrf.mxu0 }
0x1379   :  { %v2343_v1 = vpop.f32.mrf.mxu0 }
0x137a   :  { %10076 = vmatprep.mubr.msk.f32.mxu0 %vm437_vm1, %v2343_v1 }
0x137b   :  { %10077 = vmatmul.mubr.msk.f32.vlgmr.msra.gmra.mxu0 %vm437_vm1, %v10073_v63 }
0x137c   :  { %10085 = vmatpush3.xpose.msk.msra.mxu0 %vm437_vm1, %v2521_v59  ;;  %10088 = vmatprep.mubr.msk.f32.mxu0 %vm437_vm1, %v2515_v61 }
0x137d   :  { %10086 = vmatprep.subr.msk.mxu0 %vm437_vm1, %v2519_v0 }
0x1380   :  { %10087 = vmatpush3.xpose.msk.msra.mxu0 %vm437_vm1, %v2519_v0 }
0x1381   :  { %10103 = vmatprep.subr.msk.mxu0 %vm437_vm1, %v2804_v8 }
0x1383   :  { %10089 = vmatmul.mubr.msk.f32.vlgmr.msra.gmra.mxu0 %vm437_vm1, %v2517_v3 }
0x1384   :  { %10104 = vmatpush3.xpose.msk.msra.mxu0 %vm437_vm1, %v2804_v8  ;;  %10107 = vmatprep.mubr.msk.f32.mxu0 %vm437_vm1, %v2798_v4  ;;  %v9278_v8 = vld [vmem:[%s11287_s3 + $0x38] sm:$0xff]  ;;  %s12560_s3 = sld [smem:[#allocation45_spill]] }
0x1385   :  { %10105 = vmatprep.subr.msk.mxu0 %vm437_vm1, %v2802_v6 }
0x1388   :  { %10106 = vmatpush3.xpose.msk.msra.mxu0 %vm437_vm1, %v2802_v6 }
0x138b   :  { %10108 = vmatmul.mubr.msk.f32.vlgmr.msra.gmra.mxu0 %vm437_vm1, %v2800_v7 }
0x143b   :  { %v11758_v9 = vpop.f32.mrf.mxu0 }
0x143c   :  { %v2511_v3 = vadd.f32 %v10083_v53, %v11758_v9 }
0x143d   :  { %v11760_v11 = vpop.f32.mrf.mxu0 }
0x143e   :  { %v2506_v6 = vadd.f32 %v2505_v54, %v11760_v11  ;;  %v11814_v54 = vld [vmem:[#allocation5] sm:$0xff] }
0x1443   :  { %v10090_v12 = vpop.f32.mrf.mxu0 }
0x1444   :  { %v2602_v14 = vadd.f32 %v10878_v13, %v10090_v12 }
0x1445   :  { %v2596_v15 = vpop.f32.mrf.mxu0 }
0x1446   :  { %v2597_v18 = vadd.f32 %v10879_v16, %v2596_v15  ;;  %v2608_v10 = vsel %vm521_vm2, %v2602_v14, -inf }
0x1447   :  { %2609 = vmax.xlane.f32.xlu1 %v2608_v10 }
0x1448   :  { %v2605_v20 = vsel %vm521_vm2, %v2597_v18, -inf }
0x1449   :  { %2606 = vmax.xlane.f32.xlu0 %v2605_v20  ;;  %v9317_v20 = vld [vmem:[%s12548_s24 + $0x1] ss:$0 sm:$0xff]  ;;  %s12565_s24 = sld [smem:[#allocation49_spill]] }
0x144b   :  { %v10109_v21 = vpop.f32.mrf.mxu0 }
0x144c   :  { %v2885_v40 = vadd.f32 %v10878_v13, %v10109_v21 }
0x144d   :  { %v2879_v22 = vpop.f32.mrf.mxu0 }
0x144e   :  { %v2880_v23 = vadd.f32 %v10879_v16, %v2879_v22  ;;  %v2891_v17 = vsel %vm521_vm2, %v2885_v40, -inf }
0x1450   :  { %v2888_v24 = vsel %vm521_vm2, %v2880_v23, -inf }
0x1458   :  { %2629 = vrot.lane.b32.xlu1 %v11670_v60, %s11241_s22 }
0x147c   :  { %2889 = vmax.xlane.f32.xlu1 %v2888_v24 }
0x14d0   :  { %v2610_v25 = vpop.xlane.xlu1 %2609 }
0x14d1   :  { %v2612_v27 = vsub.f32 %v2602_v14, %v2610_v25 }
0x14d2   :  { %v2607_v29 = vpop.xlane.xlu0 %2606 }
0x14d3   :  { %v2615_v30 = vmul.f32 1.442695, %v2612_v27  ;;  %v2611_v31 = vsub.f32 %v2597_v18, %v2607_v29 }
0x14d4   :  { %v2630_v32 = vpop.permute.xlu1 %2629 }
0x14d5   :  { %10702 = vpow2.f32 %v2615_v30  ;;  %v2613_v33 = vmul.f32 1.442695, %v2611_v31  ;;  %10091 = vmatprep.subr.mxu1 %v2630_v32 }
0x14d6   :  { %10092 = vmatpush3.msra.mxu1 %v2630_v32 }
0x14d7   :  { %10704 = vpow2.f32 %v2613_v33 }
0x14e2   :  { %v10703_v34 = vpop.eup %10702 }
0x14e3   :  { %v2620_v35 = vsel %vm521_vm2, %v10703_v34, 0.0 }
0x14e4   :  { %v10705_v36 = vpop.eup %10704  ;;  %2621 = vadd.xlane.f32.xlu0 %v2620_v35 }
0x14e5   :  { %v2617_v26 = vsel %vm521_vm2, %v10705_v36, 0.0 }
0x14e8   :  { %2618 = vadd.xlane.f32.xlu0 %v2617_v26  ;;  %v9322_v26 = vld [vmem:[%s12549_s5 + $0x30] sm:$0xff] }
0x14fe   :  { %2627 = vrot.lane.b32.xlu0 %v11672_v62, %s11241_s22 }
0x1505   :  { %v2890_v37 = vpop.xlane.xlu1 %2889 }
0x1506   :  { %v2894_v28 = vsub.f32 %v2880_v23, %v2890_v37  ;;  %v9321_v37 = vld [vmem:[%s12549_s5 + $0x28] sm:$0xff] }
0x1508   :  { %v2896_v38 = vmul.f32 1.442695, %v2894_v28  ;;  %v9320_v28 = vld [vmem:[%s12549_s5 + $0x20] sm:$0xff] }
0x150a   :  { %10706 = vpow2.f32 %v2896_v38  ;;  %v3379_v38 = vld [vmem:[%s12557_s13 + $0x18] sm:$0xff] }
0x1517   :  { %v10707_v39 = vpop.eup %10706 }
0x1518   :  { %v2900_v41 = vsel %vm521_vm2, %v10707_v39, 0.0 }
0x1519   :  { %2901 = vadd.xlane.f32.xlu1 %v2900_v41  ;;  %v9330_v41 = vld [vmem:[%s12550_s26 + $0x68] sm:$0xff] }
0x151d   :  { %2892 = vmax.xlane.f32.xlu0 %v2891_v17  ;;  %v9329_v17 = vld [vmem:[%s12550_s26 + $0x60] sm:$0xff] }
0x152a   :  { %2912 = vrot.lane.b32.xlu1 %v11670_v60, %s11242_s23 }
0x156d   :  { %v2622_v19 = vpop.xlane.xlu0 %2621 }
0x156e   :  { %10708 = vrcp.f32 %v2622_v19 }
0x1571   :  { %v2619_v5 = vpop.xlane.xlu0 %2618 }
0x1572   :  { %10710 = vrcp.f32 %v2619_v5 }
0x1575   :  { %v2628_v42 = vpop.permute.xlu0 %2627 }
0x1576   :  { %10093 = vmatprep.subr.mxu1 %v2628_v42 }
0x1577   :  { %10094 = vmatpush3.msra.mxu1 %v2628_v42 }
0x1578   :  { %10098 = vmatprep.subr.mxu1 %v9277_v43 }
0x157b   :  { %v10709_v2 = vpop.eup %10708 }
0x157c   :  { %v2626_v46 = vmul.f32 %v10709_v2, %v10703_v34 }
0x157f   :  { %v10711_v44 = vpop.eup %10710 }
0x1580   :  { %v2625_v45 = vmul.f32 %v10711_v44, %v10705_v36  ;;  %v9323_v36 = vld [vmem:[%s12549_s5 + $0x38] sm:$0xff] }
0x1581   :  { %10122 = vmatprep.subr.mxu0 %v9323_v36 }
0x1582   :  { %10095 = vmatprep.mubr.msk.f32.mxu1 %vm521_vm2, %v2625_v45  ;;  %10123 = vmatpush3.msra.mxu0 %v9323_v36 }
0x1583   :  { %10096 = vmatmul.mubr.msk.f32.vlgmr.msra.gmra.mxu1 %vm521_vm2, %v2626_v46  ;;  %10124 = vmatprep.subr.mxu0 %v9322_v26  ;;  %v9318_v46 = vld [vmem:[%s12551_s1 + $0x1] ss:$0 sm:$0xff] }
0x1584   :  { %10099 = vmatpush3.msra.mxu1 %v9277_v43  ;;  %10125 = vmatpush3.msra.mxu0 %v9322_v26 }
0x1585   :  { %10126 = vmatprep.subr.mxu0 %v9321_v37 }
0x1586   :  { %10127 = vmatpush3.msra.mxu0 %v9321_v37 }
0x1587   :  { %10128 = vmatprep.subr.mxu0 %v9320_v28 }
0x1588   :  { %10129 = vmatpush3.msra.mxu0 %v9320_v28 }
0x1589   :  { %10152 = vmatprep.subr.mxu0 %v3379_v38 }
0x15a2   :  { %v2902_v47 = vpop.xlane.xlu1 %2901 }
0x15a6   :  { %v2913_v60 = vpop.permute.xlu1 %2912  ;;  %v2893_v48 = vpop.xlane.xlu0 %2892 }
0x15a7   :  { %v2895_v49 = vsub.f32 %v2885_v40, %v2893_v48  ;;  %10110 = vmatprep.subr.mxu1 %v2913_v60  ;;  %v9331_v40 = vld [vmem:[%s12550_s26 + $0x70] sm:$0xff] }
0x15a9   :  { %v2898_v50 = vmul.f32 1.442695, %v2895_v49 }
0x15ab   :  { %10712 = vpow2.f32 %v2898_v50  ;;  %v9319_v50 = vld [vmem:[%s12552_s21 + $0x1] ss:$0 sm:$0xff] }
0x15ac   :  { %10714 = vrcp.f32 %v2902_v47 }
0x15b8   :  { %v10713_v51 = vpop.eup %10712 }
0x15b9   :  { %v2903_v52 = vsel %vm521_vm2, %v10713_v51, 0.0  ;;  %v10715_v55 = vpop.eup %10714 }
0x15ba   :  { %2904 = vadd.xlane.f32.xlu0 %v2903_v52  ;;  %v2908_v63 = vmul.f32 %v10715_v55, %v10707_v39  ;;  %v9332_v39 = vld [vmem:[%s12550_s26 + $0x78] sm:$0xff]  ;;  %v3378_v55 = vld [vmem:[%s12557_s13 + $0x10] sm:$0xff] }
0x15d0   :  { %2910 = vrot.lane.b32.xlu0 %v11672_v62, %s11242_s23 }
0x1643   :  { %v10097_v58 = vpop.f32.mrf.mxu1  ;;  %v2905_v59 = vpop.xlane.xlu0 %2904 }
0x1644   :  { %10716 = vrcp.f32 %v2905_v59  ;;  %v3376_v59 = vld [vmem:[%s12557_s13] sm:$0xff] }
0x1645   :  { %v2705_v61 = vpop.f32.mrf.mxu1 }
0x1646   :  { %10100 = vmatprep.mubr.msk.f32.mxu1 %vm437_vm1, %v2705_v61  ;;  %v11825_v61 = vld [vmem:[#allocation5 + $0x8] sm:$0xff] }
0x1647   :  { %10101 = vmatmul.mubr.msk.f32.vlgmr.msra.gmra.mxu1 %vm437_vm1, %v10097_v58  ;;  %v2911_v0 = vpop.permute.xlu0 %2910  ;;  %v3377_v58 = vld [vmem:[%s12557_s13 + $0x8] sm:$0xff] }
0x1648   :  { %10111 = vmatpush3.msra.mxu1 %v2913_v60  ;;  %10114 = vmatprep.mubr.msk.f32.mxu1 %vm521_vm2, %v2908_v63  ;;  %v9328_v63 = vld [vmem:[%s12550_s26 + $0x58] sm:$0xff] }
0x1649   :  { %10112 = vmatprep.subr.mxu1 %v2911_v0 }
0x164a   :  { %10113 = vmatpush3.msra.mxu1 %v2911_v0  ;;  %v9327_v0 = vld [vmem:[%s12550_s26 + $0x50] sm:$0xff] }
0x164b   :  { %10117 = vmatprep.subr.mxu1 %v9278_v8 }
0x1651   :  { %v10717_v62 = vpop.eup %10716 }
0x1652   :  { %v2909_v1 = vmul.f32 %v10717_v62, %v10713_v51  ;;  %v9326_v62 = vld [vmem:[%s12550_s26 + $0x48] sm:$0xff] }
0x1654   :  { %10115 = vmatmul.mubr.msk.f32.vlgmr.msra.gmra.mxu1 %vm521_vm2, %v2909_v1  ;;  %v9325_v1 = vld [vmem:[%s12550_s26 + $0x40] sm:$0xff] }
0x1655   :  { %10118 = vmatpush3.msra.mxu1 %v9278_v8  ;;  %v9336_v8 = vld [vmem:[%s12553_s12 + $0x1] ss:$0 sm:$0xff] }
0x1656   :  { %10133 = vmatprep.subr.mxu1 %v9332_v39 }
0x1707   :  { %v10102_v4 = vpop.f32.mrf.mxu1 }
0x1708   :  { %v2796_v7 = vadd.f32 %v10102_v4, %v2511_v3 }
0x1709   :  { %v2786_v12 = vpop.f32.mrf.mxu1 }
0x170a   :  { %v2795_v13 = vadd.f32 %v2786_v12, %v2506_v6 }
0x1714   :  { %v10116_v14 = vpop.f32.mrf.mxu1 }
0x1716   :  { %v2988_v15 = vpop.f32.mrf.mxu1 }
0x1717   :  { %10119 = vmatprep.mubr.msk.f32.mxu1 %vm437_vm1, %v2988_v15 }
0x1718   :  { %10120 = vmatmul.mubr.msk.f32.vlgmr.msra.gmra.mxu1 %vm437_vm1, %v10116_v14  ;;  %v9344_v14 = vld [vmem:[%s12558_s25] ss:$0 sm:$0xff] }
0x1719   :  { %10134 = vmatpush3.msra.mxu1 %v9332_v39 }
0x171a   :  { %10135 = vmatprep.subr.mxu1 %v9331_v40 }
0x171b   :  { %10136 = vmatpush3.msra.mxu1 %v9331_v40 }
0x171c   :  { %10137 = vmatprep.subr.mxu1 %v9330_v41 }
0x171d   :  { %10138 = vmatpush3.msra.mxu1 %v9330_v41 }
0x171e   :  { %10139 = vmatprep.subr.mxu1 %v9329_v17 }
0x171f   :  { %10140 = vmatpush3.msra.mxu1 %v9329_v17 }
0x1720   :  { %10141 = vmatprep.subr.mxu1 %v9328_v63 }
0x1721   :  { %10142 = vmatpush3.msra.mxu1 %v9328_v63 }
0x1722   :  { %10143 = vmatprep.subr.mxu1 %v9327_v0 }
0x1723   :  { %10144 = vmatpush3.msra.mxu1 %v9327_v0 }
0x1724   :  { %10145 = vmatprep.subr.mxu1 %v9326_v62 }
0x1725   :  { %10146 = vmatpush3.msra.mxu1 %v9326_v62 }
0x1726   :  { %10147 = vmatprep.subr.mxu1 %v9325_v1 }
0x1727   :  { %10148 = vmatpush3.msra.mxu1 %v9325_v1 }
0x17d8   :  { %v10121_v16 = vpop.f32.mrf.mxu1 }
0x17d9   :  { %v3079_v18 = vadd.f32 %v10121_v16, %v2796_v7 }
0x17da   :  { %v3069_v10 = vpop.f32.mrf.mxu1 }
0x17db   :  { %v3081_v21 = vadd.f32 %v3079_v18, %v11663_v57  ;;  %v3078_v22 = vadd.f32 %v3069_v10, %v2795_v13 }
0x17dd   :  { %v3080_v9 = vadd.f32 %v3078_v22, %v11661_v56  ;;  %v3089_v23 = vadd.f32 %v9317_v20, %v3081_v21  ;;  %v11854_v22 = vld [vmem:[%s12554_s4 + $0x1] ss:$0 sm:$0xff] }
0x17df   :  { %v3093_v11 = vsel %vm349_vm0, %v3089_v23, 0.0  ;;  %v3088_v24 = vadd.f32 %v9317_v20, %v3080_v9 }
0x17e0   :  { %3094 = vadd.xlane.f32.xlu0 %v3093_v11  ;;  %v11860_v11 = vld [vmem:[%s12559_s29 + $0x8] sm:$0xff] }
0x17e1   :  { %v3090_v25 = vsel %vm349_vm0, %v3088_v24, 0.0 }
0x17e2   :  { %3091 = vadd.xlane.f32.xlu1 %v3090_v25  ;;  %v11863_v25 = vld [vmem:[%s12559_s29] sm:$0xff] }
0x1869   :  { %v3095_v27 = vpop.xlane.xlu0 %3094 }
0x186a   :  { %v3097_v29 = vmul.f32 0.03125, %v3095_v27 }
0x186b   :  { %v3092_v30 = vpop.xlane.xlu1 %3091 }
0x186c   :  { %v3099_v31 = vsub.f32 %v3089_v23, %v3097_v29  ;;  %v3096_v57 = vmul.f32 0.03125, %v3092_v30 }
0x186e   :  { %v3098_v32 = vsub.f32 %v3088_v24, %v3096_v57  ;;  %v3101_v33 = vmul.f32 %v3099_v31, %v3099_v31 }
0x1870   :  { %v3105_v56 = vsel %vm349_vm0, %v3101_v33, 0.0  ;;  %v3100_v34 = vmul.f32 %v3098_v32, %v3098_v32 }
0x1871   :  { %3106 = vadd.xlane.f32.xlu0 %v3105_v56 }
0x1872   :  { %v3102_v35 = vsel %vm349_vm0, %v3100_v34, 0.0 }
0x1873   :  { %3103 = vadd.xlane.f32.xlu1 %v3102_v35 }
0x18fa   :  { %v3107_v19 = vpop.xlane.xlu0 %3106 }
0x18fb   :  { %v3109_v5 = vmul.f32 0.03125, %v3107_v19 }
0x18fc   :  { %v3104_v42 = vpop.xlane.xlu1 %3103 }
0x18fd   :  { %v3111_v43 = vadd.f32 1e-05, %v3109_v5  ;;  %v3108_v2 = vmul.f32 0.03125, %v3104_v42 }
0x18ff   :  { %10718 = vrsqrt.f32 %v3111_v43  ;;  %v3110_v44 = vadd.f32 1e-05, %v3108_v2 }
0x1901   :  { %10720 = vrsqrt.f32 %v3110_v44 }
0x190c   :  { %v10719_v45 = vpop.eup %10718 }
0x190d   :  { %v3115_v47 = vmul.f32 %v10719_v45, %v3099_v31 }
0x190e   :  { %v10721_v60 = vpop.eup %10720 }
0x190f   :  { %v3114_v48 = vmul.f32 %v10721_v60, %v3098_v32  ;;  %v3123_v49 = vmul.f32 %v9318_v46, %v3115_v47  ;;  %v3381_v47 = vld [vmem:[%s12560_s3] sm:$0xff] }
0x1911   :  { %v3122_v51 = vmul.f32 %v9318_v46, %v3114_v48  ;;  %v11812_v53 = vadd.f32 %v9319_v50, %v3123_v49 }
0x1913   :  { %v11810_v52 = vadd.f32 %v9319_v50, %v3122_v51 }
0x1915   :  { %10130 = vmatprep.mubr.msk.f32.mxu0 %vm349_vm0, %v11810_v52 }
0x1916   :  { %10131 = vmatmul.mubr.msk.f32.vlgmr.msra.gmra.mxu0 %vm349_vm0, %v11812_v53 }
0x1917   :  { %10153 = vmatpush3.msra.mxu0 %v3379_v38  ;;  %10160 = vmatprep.mubr.msk.f32.mxu0 %vm349_vm0, %v11814_v54 }
0x1918   :  { %10154 = vmatprep.subr.mxu0 %v3378_v55 }
0x1919   :  { %10155 = vmatpush3.msra.mxu0 %v3378_v55 }
0x191a   :  { %10156 = vmatprep.subr.mxu0 %v3377_v58 }
0x191b   :  { %10157 = vmatpush3.msra.mxu0 %v3377_v58 }
0x191c   :  { %10158 = vmatprep.subr.mxu0 %v3376_v59 }
0x191d   :  { %10159 = vmatpush3.msra.mxu0 %v3376_v59 }
0x191e   :  { %10161 = vmatmul.mubr.msk.f32.vlgmr.msra.gmra.mxu0 %vm349_vm0, %v11825_v61 }
0x19d6   :  { %v10132_v3 = vpop.f32.mrf.mxu0 }
0x19d7   :  { %v3238_v4 = vadd.f32 %v10132_v3, %v9336_v8 }
0x19d8   :  { %v3232_v6 = vpop.f32.mrf.mxu0 }
0x19d9   :  { %v3233_v7 = vadd.f32 %v9336_v8, %v3232_v6  ;;  %v3242_v13 = vmax.f32 %v3238_v4, 0.0 }
0x19db   :  { %v3241_v12 = vmax.f32 %v3233_v7, 0.0 }
0x19dd   :  { %10149 = vmatprep.mubr.msk.f32.mxu1 %vm1723_vm3, %v3241_v12 }
0x19de   :  { %v10162_v15 = vpop.f32.mrf.mxu0  ;;  %10150 = vmatmul.mubr.msk.f32.vlgmr.msra.gmra.mxu1 %vm1723_vm3, %v3242_v13 }
0x19df   :  { %v11837_v16 = vadd.f32 %v10162_v15, %v9344_v14 }
0x19e0   :  { %v3466_v18 = vpop.f32.mrf.mxu0 }
0x19e1   :  { %v11839_v10 = vadd.f32 %v9344_v14, %v3466_v18  ;;  %3479 = vrot.lane.b32.xlu1 %v11837_v16, %s11233_s6 }
0x19e3   :  { %3477 = vrot.lane.b32.xlu0 %v11839_v10, %s11233_s6  ;;  %10167 = vmatprep.mubr.msk.f32.mxu0 %vm437_vm1, %v11839_v10 }
0x1a53   :  { %v3480_v20 = vpop.permute.xlu1 %3479 }
0x1a54   :  { %10163 = vmatprep.subr.msk.mxu0 %vm437_vm1, %v3480_v20 }
0x1a55   :  { %10164 = vmatpush3.xpose.msk.msra.mxu0 %vm437_vm1, %v3480_v20  ;;  %v3478_v21 = vpop.permute.xlu0 %3477 }
0x1a56   :  { %10165 = vmatprep.subr.msk.mxu0 %vm437_vm1, %v3478_v21 }
0x1a59   :  { %10166 = vmatpush3.xpose.msk.msra.mxu0 %vm437_vm1, %v3478_v21  ;;  %v3382_v21 = vld [vmem:[%s12560_s3 + $0x8] sm:$0xff] }
0x1a5c   :  { %10168 = vmatmul.mubr.msk.f32.vlgmr.msra.gmra.mxu0 %vm437_vm1, %v11837_v16 }
0x1a9e   :  { %v10151_v9 = vpop.f32.mrf.mxu1 }
0x1a9f   :  { %v11857_v23 = vadd.f32 %v10151_v9, %v11854_v22 }
0x1aa0   :  { %v11892_v60 = vpop.f32.mrf.mxu1 }
0x1b1c   :  { %v10169_v24 = vpop.f32.mrf.mxu0 }
0x1b1d   :  { %v3561_v27 = vadd.f32 %v10169_v24, %v11860_v11 }
0x1b1e   :  { %v3555_v29 = vpop.f32.mrf.mxu0 }
0x1b1f   :  { %v3556_v30 = vadd.f32 %v3555_v29, %v11863_v25  ;;  %v3567_v31 = vsel %vm521_vm2, %v3561_v27, -inf }
0x1b20   :  { %3568 = vmax.xlane.f32.xlu0 %v3567_v31 }
0x1b21   :  { %v3564_v57 = vsel %vm521_vm2, %v3556_v30, -inf }
0x1b22   :  { %3565 = vmax.xlane.f32.xlu1 %v3564_v57 }
0x1b33   :  { %3588 = vrot.lane.b32.xlu1 %v11837_v16, %s11235_s15 }
0x1b37   :  { %3679 = vrot.lane.b32.xlu1 %v11837_v16, %s11232_s8 }
0x1b3b   :  { %3677 = vrot.lane.b32.xlu1 %v11839_v10, %s11232_s8 }
0x1ba9   :  { %v3569_v32 = vpop.xlane.xlu0 %3568 }
0x1baa   :  { %v3571_v33 = vsub.f32 %v3561_v27, %v3569_v32 }
0x1bab   :  { %v3566_v56 = vpop.xlane.xlu1 %3565 }
0x1bac   :  { %v3574_v34 = vmul.f32 1.442695, %v3571_v33  ;;  %v3570_v35 = vsub.f32 %v3556_v30, %v3566_v56 }
0x1bae   :  { %10722 = vpow2.f32 %v3574_v34  ;;  %v3572_v36 = vmul.f32 1.442695, %v3570_v35 }
0x1baf   :  { %v3589_v26 = vpop.permute.xlu1 %3588 }
0x1bb0   :  { %10724 = vpow2.f32 %v3572_v36  ;;  %10170 = vmatprep.subr.mxu1 %v3589_v26 }
0x1bb1   :  { %10171 = vmatpush3.msra.mxu1 %v3589_v26 }
0x1bb3   :  { %v3680_v40 = vpop.permute.xlu1 %3679 }
0x1bb7   :  { %v3678_v41 = vpop.permute.xlu1 %3677 }
0x1bbb   :  { %v10723_v37 = vpop.eup %10722 }
0x1bbc   :  { %v3579_v28 = vsel %vm521_vm2, %v10723_v37, 0.0 }
0x1bbd   :  { %v10725_v38 = vpop.eup %10724  ;;  %3580 = vadd.xlane.f32.xlu0 %v3579_v28 }
0x1bbe   :  { %v3576_v39 = vsel %vm521_vm2, %v10725_v38, 0.0 }
0x1bbf   :  { %3577 = vadd.xlane.f32.xlu1 %v3576_v39 }
0x1bd0   :  { %3675 = vrot.lane.b32.xlu1 %v11837_v16, %s11234_s20 }
0x1bd3   :  { %3586 = vrot.lane.b32.xlu0 %v11839_v10, %s11235_s15 }
0x1bd7   :  { %3673 = vrot.lane.b32.xlu0 %v11839_v10, %s11234_s20 }
0x1c46   :  { %v3581_v17 = vpop.xlane.xlu0 %3580 }
0x1c47   :  { %10726 = vrcp.f32 %v3581_v17 }
0x1c48   :  { %v3578_v19 = vpop.xlane.xlu1 %3577 }
0x1c49   :  { %10728 = vrcp.f32 %v3578_v19 }
0x1c4a   :  { %v3587_v5 = vpop.permute.xlu0 %3586 }
0x1c4b   :  { %10172 = vmatprep.subr.mxu1 %v3587_v5 }
0x1c4c   :  { %10173 = vmatpush3.msra.mxu1 %v3587_v5  ;;  %v3676_v46 = vpop.permute.xlu1 %3675 }
0x1c4d   :  { %10177 = vmatprep.subr.msk.mxu1 %vm437_vm1, %v3680_v40 }
0x1c4e   :  { %v3674_v45 = vpop.permute.xlu0 %3673 }
0x1c54   :  { %v10727_v42 = vpop.eup %10726 }
0x1c55   :  { %v3585_v44 = vmul.f32 %v10727_v42, %v10723_v37 }
0x1c56   :  { %v10729_v43 = vpop.eup %10728 }
0x1c57   :  { %v3584_v2 = vmul.f32 %v10729_v43, %v10725_v38 }
0x1c59   :  { %10174 = vmatprep.mubr.msk.f32.mxu1 %vm521_vm2, %v3584_v2 }
0x1c5a   :  { %10175 = vmatmul.mubr.msk.f32.vlgmr.msra.gmra.mxu1 %vm521_vm2, %v3585_v44 }
0x1c5b   :  { %10178 = vmatpush3.xpose.msk.msra.mxu1 %vm437_vm1, %v3680_v40  ;;  %10181 = vmatprep.mubr.msk.f32.mxu1 %vm437_vm1, %v3674_v45 }
0x1c5c   :  { %10179 = vmatprep.subr.msk.mxu1 %vm437_vm1, %v3678_v41 }
0x1c5f   :  { %10180 = vmatpush3.xpose.msk.msra.mxu1 %vm437_vm1, %v3678_v41 }
0x1c60   :  { %10196 = vmatprep.subr.mxu1 %v3381_v47 }
0x1c62   :  { %10182 = vmatmul.mubr.msk.f32.vlgmr.msra.gmra.mxu1 %vm437_vm1, %v3676_v46 }
0x1c63   :  { %10197 = vmatpush3.msra.mxu1 %v3381_v47 }
0x1d1a   :  { %v10176_v48 = vpop.f32.mrf.mxu1 }
0x1d1c   :  { %v3664_v49 = vpop.f32.mrf.mxu1 }
0x1d1d   :  { %10198 = vmatprep.mubr.msk.f32.mxu1 %vm437_vm1, %v3664_v49 }
0x1d1e   :  { %10199 = vmatmul.mubr.msk.f32.vlgmr.msra.gmra.mxu1 %vm437_vm1, %v10176_v48 }
0x1d22   :  { %v10183_v50 = vpop.f32.mrf.mxu1 }
0x1d23   :  { %v3761_v51 = vadd.f32 %v10183_v50, %v11860_v11 }
0x1d24   :  { %v3755_v55 = vpop.f32.mrf.mxu1 }
0x1d25   :  { %v3756_v58 = vadd.f32 %v3755_v55, %v11863_v25  ;;  %v3767_v59 = vsel %vm521_vm2, %v3761_v51, -inf }
0x1d26   :  { %3768 = vmax.xlane.f32.xlu1 %v3767_v59 }
0x1d27   :  { %v3764_v63 = vsel %vm521_vm2, %v3756_v58, -inf }
0x1d28   :  { %3765 = vmax.xlane.f32.xlu0 %v3764_v63 }
0x1d37   :  { %3788 = vrot.lane.b32.xlu1 %v11837_v16, %s11236_s16 }
0x1d3b   :  { %4041 = vrot.lane.b32.xlu1 %v11837_v16, %s11237_s30 }
0x1d3f   :  { %4039 = vrot.lane.b32.xlu1 %v11839_v10, %s11237_s30 }
0x1d43   :  { %4037 = vrot.lane.b32.xlu1 %v11837_v16, %s11238_s19 }
0x1d47   :  { %4322 = vrot.lane.b32.xlu1 %v11839_v10, %s11239_s9 }
0x1d4b   :  { %4320 = vrot.lane.b32.xlu1 %v11837_v16, %s11240_s18 }
0x1daf   :  { %v3769_v0 = vpop.xlane.xlu1 %3768 }
0x1db0   :  { %v3771_v62 = vsub.f32 %v3761_v51, %v3769_v0 }
0x1db1   :  { %v3766_v1 = vpop.xlane.xlu0 %3765 }
0x1db2   :  { %v3774_v8 = vmul.f32 1.442695, %v3771_v62  ;;  %v3770_v3 = vsub.f32 %v3756_v58, %v3766_v1 }
0x1db3   :  { %v3789_v4 = vpop.permute.xlu1 %3788 }
0x1db4   :  { %10730 = vpow2.f32 %v3774_v8  ;;  %v3772_v6 = vmul.f32 1.442695, %v3770_v3  ;;  %10184 = vmatprep.subr.mxu0 %v3789_v4 }
0x1db5   :  { %10185 = vmatpush3.msra.mxu0 %v3789_v4  ;;  %v3322_v4 = vadd.f32 %v11854_v22, %v11892_v60 }
0x1db6   :  { %10732 = vpow2.f32 %v3772_v6 }
0x1db7   :  { %v4042_v30 = vpop.permute.xlu1 %4041  ;;  %v11963_v6 = vadd.f32 %v3322_v4, %v11810_v52 }
0x1dbb   :  { %v4040_v32 = vpop.permute.xlu1 %4039 }
0x1dbf   :  { %v4038_v34 = vpop.permute.xlu1 %4037 }
0x1dc1   :  { %v10731_v7 = vpop.eup %10730 }
0x1dc2   :  { %v3779_v12 = vsel %vm521_vm2, %v10731_v7, 0.0 }
0x1dc3   :  { %v10733_v13 = vpop.eup %10732  ;;  %3780 = vadd.xlane.f32.xlu0 %v3779_v12  ;;  %v4323_v36 = vpop.permute.xlu1 %4322 }
0x1dc4   :  { %v3776_v14 = vsel %vm521_vm2, %v10733_v13, 0.0 }
0x1dc7   :  { %3777 = vadd.xlane.f32.xlu0 %v3776_v14  ;;  %v4321_v26 = vpop.permute.xlu1 %4320  ;;  %v3383_v14 = vld [vmem:[%s12560_s3 + $0x10] sm:$0xff] }
0x1ddd   :  { %3786 = vrot.lane.b32.xlu0 %v11839_v10, %s11236_s16 }
0x1de1   :  { %4035 = vrot.lane.b32.xlu0 %v11839_v10, %s11238_s19 }
0x1de5   :  { %4324 = vrot.lane.b32.xlu0 %v11837_v16, %s11239_s9 }
0x1de9   :  { %4318 = vrot.lane.b32.xlu0 %v11839_v10, %s11240_s18 }
0x1e4c   :  { %v3781_v15 = vpop.xlane.xlu0 %3780 }
0x1e4d   :  { %10734 = vrcp.f32 %v3781_v15 }
0x1e50   :  { %v3778_v18 = vpop.xlane.xlu0 %3777 }
0x1e51   :  { %10736 = vrcp.f32 %v3778_v18 }
0x1e54   :  { %v3787_v20 = vpop.permute.xlu0 %3786 }
0x1e55   :  { %10186 = vmatprep.subr.mxu0 %v3787_v20 }
0x1e56   :  { %10187 = vmatpush3.msra.mxu0 %v3787_v20 }
0x1e57   :  { %10191 = vmatprep.subr.mxu0 %v3382_v21 }
0x1e58   :  { %v4036_v31 = vpop.permute.xlu0 %4035 }
0x1e5a   :  { %v10735_v9 = vpop.eup %10734 }
0x1e5b   :  { %v3785_v29 = vmul.f32 %v10735_v9, %v10731_v7  ;;  %v3332_v7 = vsel %vm349_vm0, %v11963_v6, 0.0 }
0x1e5c   :  { %v4325_v56 = vpop.permute.xlu0 %4324 }
0x1e5e   :  { %v10737_v24 = vpop.eup %10736 }
0x1e5f   :  { %v3784_v27 = vmul.f32 %v10737_v24, %v10733_v13 }
0x1e60   :  { %v4319_v35 = vpop.permute.xlu0 %4318 }
0x1e61   :  { %10188 = vmatprep.mubr.msk.f32.mxu0 %vm521_vm2, %v3784_v27 }
0x1e62   :  { %10189 = vmatmul.mubr.msk.f32.vlgmr.msra.gmra.mxu0 %vm521_vm2, %v3785_v29  ;;  %v3331_v29 = vadd.f32 %v11857_v23, %v11812_v53 }
0x1e63   :  { %10192 = vmatpush3.msra.mxu0 %v3382_v21 }
0x1e64   :  { %10201 = vmatprep.subr.msk.mxu0 %vm437_vm1, %v4042_v30 }
0x1f22   :  { %v10190_v57 = vpop.f32.mrf.mxu0 }
0x1f24   :  { %v3864_v33 = vpop.f32.mrf.mxu0 }
0x1f25   :  { %10193 = vmatprep.mubr.msk.f32.mxu0 %vm437_vm1, %v3864_v33 }
0x1f26   :  { %10194 = vmatmul.mubr.msk.f32.vlgmr.msra.gmra.mxu0 %vm437_vm1, %v10190_v57 }
0x1f27   :  { %10202 = vmatpush3.xpose.msk.msra.mxu0 %vm437_vm1, %v4042_v30  ;;  %10205 = vmatprep.mubr.msk.f32.mxu0 %vm437_vm1, %v4036_v31  ;;  %v3335_v30 = vsel %vm349_vm0, %v3331_v29, 0.0  ;;  %v10200_v31 = vpop.f32.mrf.mxu1 }
0x1f28   :  { %10203 = vmatprep.subr.msk.mxu0 %vm437_vm1, %v4040_v32 }
0x1f29   :  { %v4026_v57 = vpop.f32.mrf.mxu1 }
0x1f2b   :  { %10204 = vmatpush3.xpose.msk.msra.mxu0 %vm437_vm1, %v4040_v32 }
0x1f2c   :  { %10220 = vmatprep.subr.msk.mxu0 %vm437_vm1, %v4325_v56 }
0x1f2e   :  { %10206 = vmatmul.mubr.msk.f32.vlgmr.msra.gmra.mxu0 %vm437_vm1, %v4038_v34 }
0x1f2f   :  { %10221 = vmatpush3.xpose.msk.msra.mxu0 %vm437_vm1, %v4325_v56  ;;  %10224 = vmatprep.mubr.msk.f32.mxu0 %vm437_vm1, %v4319_v35 }
0x1f30   :  { %10222 = vmatprep.subr.msk.mxu0 %vm437_vm1, %v4323_v36 }
0x1f33   :  { %10223 = vmatpush3.xpose.msk.msra.mxu0 %vm437_vm1, %v4323_v36  ;;  %v3384_v36 = vld [vmem:[%s12560_s3 + $0x18] sm:$0xff] }
0x1f36   :  { %10225 = vmatmul.mubr.msk.f32.vlgmr.msra.gmra.mxu0 %vm437_vm1, %v4321_v26 }
0x1fe6   :  { %v11939_v37 = vpop.f32.mrf.mxu0 }
0x1fe7   :  { %v4032_v26 = vadd.f32 %v10200_v31, %v11939_v37 }
0x1fe8   :  { %v11941_v28 = vpop.f32.mrf.mxu0 }
0x1fee   :  { %v10207_v38 = vpop.f32.mrf.mxu0 }
0x1fef   :  { %v4123_v39 = vadd.f32 %v10207_v38, %v11860_v11 }
0x1ff0   :  { %v4117_v40 = vpop.f32.mrf.mxu0 }
0x1ff1   :  { %v4118_v41 = vadd.f32 %v4117_v40, %v11863_v25  ;;  %v4129_v17 = vsel %vm521_vm2, %v4123_v39, -inf }
0x1ff2   :  { %4130 = vmax.xlane.f32.xlu1 %v4129_v17 }
0x1ff3   :  { %v4126_v19 = vsel %vm521_vm2, %v4118_v41, -inf }
0x1ff4   :  { %4127 = vmax.xlane.f32.xlu0 %v4126_v19 }
0x1ff6   :  { %v10226_v5 = vpop.f32.mrf.mxu0 }
0x1ff7   :  { %v4406_v1 = vadd.f32 %v10226_v5, %v11860_v11 }
0x1ff8   :  { %v4400_v42 = vpop.f32.mrf.mxu0 }
0x1ff9   :  { %v4401_v43 = vadd.f32 %v4400_v42, %v11863_v25  ;;  %v4412_v3 = vsel %vm521_vm2, %v4406_v1, -inf  ;;  %v4656_v42 = vld [vmem:[%s12561_s7 + $0x18] sm:$0xff] }
0x1ffa   :  { %10239 = vmatprep.subr.mxu0 %v4656_v42 }
0x1ffb   :  { %v4409_v2 = vsel %vm521_vm2, %v4401_v43, -inf  ;;  %10240 = vmatpush3.msra.mxu0 %v4656_v42 }
0x2003   :  { %4150 = vrot.lane.b32.xlu1 %v11837_v16, %s11241_s22 }
0x2027   :  { %4410 = vmax.xlane.f32.xlu1 %v4409_v2 }
0x207b   :  { %v4131_v44 = vpop.xlane.xlu1 %4130 }
0x207c   :  { %v4133_v45 = vsub.f32 %v4123_v39, %v4131_v44  ;;  %v4027_v39 = vadd.f32 %v4026_v57, %v11941_v28  ;;  %v9343_v57 = vld [vmem:[%s12556_s2 + $0x1] ss:$0 sm:$0xff] }
0x207d   :  { %v4128_v46 = vpop.xlane.xlu0 %4127 }
0x207e   :  { %v4136_v47 = vmul.f32 1.442695, %v4133_v45  ;;  %v4132_v48 = vsub.f32 %v4118_v41, %v4128_v46 }
0x207f   :  { %v4151_v49 = vpop.permute.xlu1 %4150 }
0x2080   :  { %10738 = vpow2.f32 %v4136_v47  ;;  %v4134_v50 = vmul.f32 1.442695, %v4132_v48  ;;  %10208 = vmatprep.subr.mxu1 %v4151_v49  ;;  %v9379_v47 = vld [vmem:[%s12562_s10] ss:$0 sm:$0xff] }
0x2081   :  { %10209 = vmatpush3.msra.mxu1 %v4151_v49 }
0x2082   :  { %10740 = vpow2.f32 %v4134_v50 }
0x208d   :  { %v10739_v51 = vpop.eup %10738 }
0x208e   :  { %v4141_v55 = vsel %vm521_vm2, %v10739_v51, 0.0 }
0x208f   :  { %v10741_v58 = vpop.eup %10740  ;;  %4142 = vadd.xlane.f32.xlu0 %v4141_v55 }
0x2090   :  { %v4138_v25 = vsel %vm521_vm2, %v10741_v58, 0.0 }
0x2093   :  { %4139 = vadd.xlane.f32.xlu0 %v4138_v25 }
0x20a9   :  { %4148 = vrot.lane.b32.xlu0 %v11839_v10, %s11241_s22 }
0x20b0   :  { %v4411_v59 = vpop.xlane.xlu1 %4410 }
0x20b1   :  { %v4415_v63 = vsub.f32 %v4401_v43, %v4411_v59 }
0x20b3   :  { %v4417_v0 = vmul.f32 1.442695, %v4415_v63 }
0x20b5   :  { %10742 = vpow2.f32 %v4417_v0 }
0x20c2   :  { %v10743_v62 = vpop.eup %10742 }
0x20c3   :  { %v4421_v8 = vsel %vm521_vm2, %v10743_v62, 0.0 }
0x20c4   :  { %4422 = vadd.xlane.f32.xlu1 %v4421_v8  ;;  %v4655_v8 = vld [vmem:[%s12561_s7 + $0x10] sm:$0xff] }
0x20c5   :  { %10241 = vmatprep.subr.mxu0 %v4655_v8 }
0x20c6   :  { %10242 = vmatpush3.msra.mxu0 %v4655_v8 }
0x20c8   :  { %4413 = vmax.xlane.f32.xlu0 %v4412_v3  ;;  %v4653_v3 = vld [vmem:[%s12561_s7] sm:$0xff] }
0x20d5   :  { %4433 = vrot.lane.b32.xlu1 %v11837_v16, %s11242_s23 }
0x20f9   :  { %3333 = vadd.xlane.f32.xlu1 %v3332_v7 }
0x2118   :  { %v4143_v11 = vpop.xlane.xlu0 %4142 }
0x2119   :  { %10744 = vrcp.f32 %v4143_v11 }
0x211c   :  { %v4140_v12 = vpop.xlane.xlu0 %4139 }
0x211d   :  { %10746 = vrcp.f32 %v4140_v12 }
0x2120   :  { %v4149_v13 = vpop.permute.xlu0 %4148 }
0x2121   :  { %10210 = vmatprep.subr.mxu1 %v4149_v13 }
0x2122   :  { %10211 = vmatpush3.msra.mxu1 %v4149_v13 }
0x2123   :  { %10215 = vmatprep.subr.mxu1 %v3383_v14 }
0x2126   :  { %v10745_v16 = vpop.eup %10744 }
0x2127   :  { %v4147_v22 = vmul.f32 %v10745_v16, %v10739_v51 }
0x212a   :  { %v10747_v15 = vpop.eup %10746 }
0x212b   :  { %v4146_v18 = vmul.f32 %v10747_v15, %v10741_v58 }
0x212d   :  { %10212 = vmatprep.mubr.msk.f32.mxu1 %vm521_vm2, %v4146_v18 }
0x212e   :  { %10213 = vmatmul.mubr.msk.f32.vlgmr.msra.gmra.mxu1 %vm521_vm2, %v4147_v22 }
0x212f   :  { %10216 = vmatpush3.msra.mxu1 %v3383_v14 }
0x214d   :  { %v4423_v52 = vpop.xlane.xlu1 %4422 }
0x2151   :  { %v4434_v60 = vpop.permute.xlu1 %4433  ;;  %v4414_v20 = vpop.xlane.xlu0 %4413 }
0x2152   :  { %v4416_v21 = vsub.f32 %v4406_v1, %v4414_v20  ;;  %10227 = vmatprep.subr.mxu1 %v4434_v60 }
0x2154   :  { %v4419_v9 = vmul.f32 1.442695, %v4416_v21 }
0x2156   :  { %10748 = vpow2.f32 %v4419_v9 }
0x2157   :  { %10750 = vrcp.f32 %v4423_v52 }
0x2163   :  { %v10749_v24 = vpop.eup %10748 }
0x2164   :  { %v4424_v27 = vsel %vm521_vm2, %v10749_v24, 0.0  ;;  %v10751_v32 = vpop.eup %10750 }
0x2165   :  { %4425 = vadd.xlane.f32.xlu0 %v4424_v27  ;;  %v4429_v35 = vmul.f32 %v10751_v32, %v10743_v62 }
0x217b   :  { %4431 = vrot.lane.b32.xlu0 %v11839_v10, %s11242_s23 }
0x2182   :  { %v3334_v2 = vpop.xlane.xlu1 %3333 }
0x2183   :  { %v3338_v45 = vmul.f32 0.03125, %v3334_v2 }
0x2185   :  { %v3340_v51 = vsub.f32 %v11963_v6, %v3338_v45 }
0x2187   :  { %v3342_v62 = vmul.f32 %v3340_v51, %v3340_v51 }
0x2189   :  { %v3344_v1 = vsel %vm349_vm0, %v3342_v62, 0.0  ;;  %v12046_v62 = vld [vmem:[%s12563_s11] sm:$0xff] }
0x219a   :  { %3336 = vadd.xlane.f32.xlu0 %v3335_v30 }
0x21ee   :  { %v10214_v33 = vpop.f32.mrf.mxu1  ;;  %v4426_v56 = vpop.xlane.xlu0 %4425 }
0x21ef   :  { %10752 = vrcp.f32 %v4426_v56 }
0x21f0   :  { %v4226_v34 = vpop.f32.mrf.mxu1 }
0x21f1   :  { %10217 = vmatprep.mubr.msk.f32.mxu1 %vm437_vm1, %v4226_v34 }
0x21f2   :  { %10218 = vmatmul.mubr.msk.f32.vlgmr.msra.gmra.mxu1 %vm437_vm1, %v10214_v33  ;;  %v4432_v10 = vpop.permute.xlu0 %4431 }
0x21f3   :  { %10228 = vmatpush3.msra.mxu1 %v4434_v60  ;;  %10231 = vmatprep.mubr.msk.f32.mxu1 %vm521_vm2, %v4429_v35 }
0x21f4   :  { %10229 = vmatprep.subr.mxu1 %v4432_v10 }
0x21f5   :  { %10230 = vmatpush3.msra.mxu1 %v4432_v10  ;;  %v9382_v10 = vld [vmem:[#allocation10] ss:$0 sm:$0xff] }
0x21f6   :  { %10234 = vmatprep.subr.mxu1 %v3384_v36 }
0x21fc   :  { %v10753_v53 = vpop.eup %10752 }
0x21fd   :  { %v4430_v23 = vmul.f32 %v10753_v53, %v10749_v24 }
0x21ff   :  { %10232 = vmatmul.mubr.msk.f32.vlgmr.msra.gmra.mxu1 %vm521_vm2, %v4430_v23 }
0x2200   :  { %10235 = vmatpush3.msra.mxu1 %v3384_v36 }
0x2223   :  { %v3337_v43 = vpop.xlane.xlu0 %3336 }
0x2224   :  { %v3339_v44 = vmul.f32 0.03125, %v3337_v43 }
0x2226   :  { %v3341_v48 = vsub.f32 %v3331_v29, %v3339_v44  ;;  %v9342_v29 = vld [vmem:[%s12555_s27 + $0x1] ss:$0 sm:$0xff] }
0x2228   :  { %v3343_v63 = vmul.f32 %v3341_v48, %v3341_v48 }
0x22b2   :  { %v10219_v38 = vpop.f32.mrf.mxu1 }
0x22b3   :  { %v4317_v40 = vadd.f32 %v10219_v38, %v4032_v26 }
0x22b4   :  { %v4307_v41 = vpop.f32.mrf.mxu1 }
0x22b5   :  { %v4316_v17 = vadd.f32 %v4307_v41, %v4027_v39 }
0x22bf   :  { %v10233_v19 = vpop.f32.mrf.mxu1 }
0x22c1   :  { %v4509_v5 = vpop.f32.mrf.mxu1 }
0x22c2   :  { %10236 = vmatprep.mubr.msk.f32.mxu1 %vm437_vm1, %v4509_v5  ;;  %v9380_v5 = vld [vmem:[#allocation7] ss:$0 sm:$0xff] }
0x22c3   :  { %10237 = vmatmul.mubr.msk.f32.vlgmr.msra.gmra.mxu1 %vm437_vm1, %v10233_v19 }
0x2383   :  { %v10238_v37 = vpop.f32.mrf.mxu1 }
0x2384   :  { %v4600_v46 = vadd.f32 %v10238_v37, %v4317_v40  ;;  %v9381_v37 = vld [vmem:[#allocation8] ss:$0 sm:$0xff] }
0x2385   :  { %v4590_v28 = vpop.f32.mrf.mxu1 }
0x2386   :  { %v4602_v49 = vadd.f32 %v4600_v46, %v11825_v61  ;;  %v4599_v50 = vadd.f32 %v4590_v28, %v4316_v17  ;;  %v3347_v61 = vsel %vm349_vm0, %v3343_v63, 0.0  ;;  %v12043_v63 = vld [vmem:[%s12563_s11 + $0x8] sm:$0xff] }
0x2388   :  { %v4601_v55 = vadd.f32 %v4599_v50, %v11814_v54  ;;  %v4610_v58 = vadd.f32 %v9379_v47, %v4602_v49  ;;  %v4654_v54 = vld [vmem:[%s12561_s7 + $0x8] sm:$0xff] }
0x2389   :  { %10243 = vmatprep.subr.mxu0 %v4654_v54 }
0x238a   :  { %v4614_v25 = vsel %vm349_vm0, %v4610_v58, 0.0  ;;  %v4609_v59 = vadd.f32 %v9379_v47, %v4601_v55  ;;  %10244 = vmatpush3.msra.mxu0 %v4654_v54 }
0x238b   :  { %4615 = vadd.xlane.f32.xlu0 %v4614_v25  ;;  %10245 = vmatprep.subr.mxu0 %v4653_v3 }
0x238c   :  { %v4611_v0 = vsel %vm349_vm0, %v4609_v59, 0.0  ;;  %10246 = vmatpush3.msra.mxu0 %v4653_v3 }
0x238d   :  { %4612 = vadd.xlane.f32.xlu1 %v4611_v0 }
0x238f   :  { %3348 = vadd.xlane.f32.xlu0 %v3347_v61 }
0x2391   :  { %3345 = vadd.xlane.f32.xlu1 %v3344_v1 }
0x23a2   :  { %4762 = vrot.lane.b32.xlu1 %v4656_v42, %s11233_s6 }
0x23a6   :  { %4758 = vrot.lane.b32.xlu1 %v4654_v54, %s11233_s6 }
0x2414   :  { %v4616_v4 = vpop.xlane.xlu0 %4615 }
0x2415   :  { %v4618_v6 = vmul.f32 0.03125, %v4616_v4 }
0x2416   :  { %v4613_v7 = vpop.xlane.xlu1 %4612 }
0x2417   :  { %v4620_v11 = vsub.f32 %v4610_v58, %v4618_v6  ;;  %v4617_v12 = vmul.f32 0.03125, %v4613_v7 }
0x2418   :  { %v3349_v13 = vpop.xlane.xlu0 %3348 }
0x2419   :  { %v4619_v14 = vsub.f32 %v4609_v59, %v4617_v12  ;;  %v3351_v16 = vmul.f32 0.03125, %v3349_v13  ;;  %v4622_v15 = vmul.f32 %v4620_v11, %v4620_v11 }
0x241a   :  { %v3346_v18 = vpop.xlane.xlu1 %3345 }
0x241b   :  { %v3353_v22 = vadd.f32 1e-05, %v3351_v16  ;;  %v3350_v52 = vmul.f32 0.03125, %v3346_v18  ;;  %v4626_v60 = vsel %vm349_vm0, %v4622_v15, 0.0  ;;  %v4621_v20 = vmul.f32 %v4619_v14, %v4619_v14 }
0x241c   :  { %4627 = vadd.xlane.f32.xlu0 %v4626_v60 }
0x241d   :  { %10754 = vrsqrt.f32 %v3353_v22  ;;  %v3352_v21 = vadd.f32 1e-05, %v3350_v52  ;;  %v4623_v9 = vsel %vm349_vm0, %v4621_v20, 0.0 }
0x241e   :  { %4624 = vadd.xlane.f32.xlu1 %v4623_v9  ;;  %v4763_v24 = vpop.permute.xlu1 %4762 }
0x241f   :  { %10756 = vrsqrt.f32 %v3352_v21  ;;  %10250 = vmatprep.subr.mxu1 %v4763_v24 }
0x2420   :  { %10251 = vmatpush3.msra.mxu1 %v4763_v24 }
0x2422   :  { %v4759_v53 = vpop.permute.xlu1 %4758 }
0x242a   :  { %v10755_v27 = vpop.eup %10754 }
0x242b   :  { %v3357_v30 = vmul.f32 %v10755_v27, %v3341_v48 }
0x242c   :  { %v10757_v31 = vpop.eup %10756 }
0x242d   :  { %v3356_v32 = vmul.f32 %v10757_v31, %v3340_v51  ;;  %v3365_v33 = vmul.f32 %v9342_v29, %v3357_v30 }
0x242f   :  { %v3364_v56 = vmul.f32 %v9342_v29, %v3356_v32  ;;  %v12003_v34 = vadd.f32 %v9343_v57, %v3365_v33  ;;  %4756 = vrot.lane.b32.xlu1 %v4653_v3, %s11233_s6  ;;  %v4658_v32 = vld [vmem:[%s12564_s17] sm:$0xff] }
0x2431   :  { %v12006_v35 = vadd.f32 %v9343_v57, %v3364_v56 }
0x2432   :  { %4760 = vrot.lane.b32.xlu0 %v4655_v8, %s11233_s6 }
0x2433   :  { %10258 = vmatprep.mubr.msk.f32.mxu1 %vm349_vm0, %v12006_v35 }
0x2436   :  { %4768 = vrot.lane.b32.xlu0 %v9382_v10, %s11233_s6 }
0x24a5   :  { %v4628_v23 = vpop.xlane.xlu0 %4627 }
0x24a6   :  { %v4630_v36 = vmul.f32 0.03125, %v4628_v23 }
0x24a7   :  { %v4625_v26 = vpop.xlane.xlu1 %4624 }
0x24a8   :  { %v4632_v38 = vadd.f32 1e-05, %v4630_v36  ;;  %v4629_v39 = vmul.f32 0.03125, %v4625_v26 }
0x24a9   :  { %v4761_v40 = vpop.permute.xlu0 %4760 }
0x24aa   :  { %10758 = vrsqrt.f32 %v4632_v38  ;;  %v4631_v41 = vadd.f32 1e-05, %v4629_v39  ;;  %10252 = vmatprep.subr.mxu1 %v4761_v40 }
0x24ab   :  { %10253 = vmatpush3.msra.mxu1 %v4761_v40  ;;  %v4757_v17 = vpop.permute.xlu1 %4756 }
0x24ac   :  { %10760 = vrsqrt.f32 %v4631_v41  ;;  %10254 = vmatprep.subr.mxu1 %v4759_v53 }
0x24ad   :  { %10255 = vmatpush3.msra.mxu1 %v4759_v53  ;;  %v4769_v47 = vpop.permute.xlu0 %4768 }
0x24ae   :  { %10256 = vmatprep.subr.mxu1 %v4757_v17 }
0x24af   :  { %10257 = vmatpush3.msra.mxu1 %v4757_v17 }
0x24b0   :  { %10259 = vmatmul.mubr.msk.f32.vlgmr.msra.gmra.mxu1 %vm349_vm0, %v12003_v34 }
0x24b7   :  { %v10759_v19 = vpop.eup %10758 }
0x24b8   :  { %v4636_v42 = vmul.f32 %v10759_v19, %v4620_v11 }
0x24b9   :  { %v10761_v43 = vpop.eup %10760 }
0x24ba   :  { %v4635_v2 = vmul.f32 %v10761_v43, %v4619_v14  ;;  %v4644_v44 = vmul.f32 %v9380_v5, %v4636_v42 }
0x24bc   :  { %v4643_v45 = vmul.f32 %v9380_v5, %v4635_v2  ;;  %v12016_v28 = vadd.f32 %v9381_v37, %v4644_v44 }
0x24be   :  { %v12014_v46 = vadd.f32 %v9381_v37, %v4643_v45 }
0x24c0   :  { %10247 = vmatprep.mubr.msk.f32.mxu0 %vm349_vm0, %v12014_v46 }
0x24c1   :  { %10248 = vmatmul.mubr.msk.f32.vlgmr.msra.gmra.mxu0 %vm349_vm0, %v12016_v28 }
0x2570   :  { %v10260_v48 = vpop.f32.mrf.mxu1 }
0x2571   :  { %v12022_v49 = vadd.f32 %v10260_v48, %v4769_v47 }
0x2572   :  { %v4843_v50 = vpop.f32.mrf.mxu1 }
0x2573   :  { %v12024_v51 = vadd.f32 %v4843_v50, %v4769_v47  ;;  %10261 = vmatprep.subr.msk.mxu0 %vm437_vm1, %v12022_v49  ;;  %v4659_v50 = vld [vmem:[%s12564_s17 + $0x8] sm:$0xff] }
0x2574   :  { %10262 = vmatpush3.xpose.msk.msra.mxu0 %vm437_vm1, %v12022_v49 }
0x2575   :  { %10263 = vmatprep.subr.msk.mxu0 %vm437_vm1, %v12024_v51 }
0x2578   :  { %10264 = vmatpush3.xpose.msk.msra.mxu0 %vm437_vm1, %v12024_v51 }
0x2581   :  { %v10249_v55 = vpop.f32.mrf.mxu0 }
0x2582   :  { %v12036_v59 = vadd.f32 %v10249_v55, %v9382_v10 }
0x2583   :  { %v4743_v58 = vpop.f32.mrf.mxu0 }
0x2584   :  { %v12034_v25 = vadd.f32 %v9382_v10, %v4743_v58 }
0x2586   :  { %10265 = vmatprep.mubr.msk.f32.mxu0 %vm437_vm1, %v12034_v25 }
0x2587   :  { %10266 = vmatmul.mubr.msk.f32.vlgmr.msra.gmra.mxu0 %vm437_vm1, %v12036_v59 }
0x2647   :  { %v10267_v0 = vpop.f32.mrf.mxu0 }
0x2648   :  { %v4936_v61 = vadd.f32 %v10267_v0, %v12043_v63 }
0x2649   :  { %v4930_v1 = vpop.f32.mrf.mxu0 }
0x264a   :  { %v4931_v54 = vadd.f32 %v4930_v1, %v12046_v62  ;;  %v4942_v8 = vsel %vm521_vm2, %v4936_v61, -inf }
0x264b   :  { %4943 = vmax.xlane.f32.xlu0 %v4942_v8 }
0x264c   :  { %v4939_v3 = vsel %vm521_vm2, %v4931_v54, -inf }
0x264d   :  { %4940 = vmax.xlane.f32.xlu1 %v4939_v3 }
0x26d4   :  { %v4944_v4 = vpop.xlane.xlu0 %4943 }
0x26d5   :  { %v4946_v6 = vsub.f32 %v4936_v61, %v4944_v4 }
0x26d6   :  { %v4941_v7 = vpop.xlane.xlu1 %4940 }
0x26d7   :  { %v4949_v11 = vmul.f32 1.442695, %v4946_v6  ;;  %v4945_v12 = vsub.f32 %v4931_v54, %v4941_v7 }
0x26d9   :  { %10762 = vpow2.f32 %v4949_v11  ;;  %v4947_v13 = vmul.f32 1.442695, %v4945_v12 }
0x26db   :  { %10764 = vpow2.f32 %v4947_v13 }
0x26e6   :  { %v10763_v14 = vpop.eup %10762 }
0x26e7   :  { %v4954_v16 = vsel %vm521_vm2, %v10763_v14, 0.0 }
0x26e8   :  { %v10765_v15 = vpop.eup %10764  ;;  %4955 = vadd.xlane.f32.xlu1 %v4954_v16 }
0x26e9   :  { %v4951_v18 = vsel %vm521_vm2, %v10765_v15, 0.0 }
0x26ea   :  { %4952 = vadd.xlane.f32.xlu0 %v4951_v18 }
0x26f9   :  { %4961 = vrot.lane.b32.xlu1 %v12024_v51, %s11233_s6 }
0x26fd   :  { %5054 = vrot.lane.b32.xlu1 %v12022_v49, %s11234_s20 }
0x2700   :  { %4963 = vrot.lane.b32.xlu0 %v12022_v49, %s11233_s6 }
0x2701   :  { %5048 = vrot.lane.b32.xlu1 %v12034_v25, %s11234_s20 }
0x2704   :  { %5052 = vrot.lane.b32.xlu0 %v12024_v51, %s11234_s20 }
0x2708   :  { %5050 = vrot.lane.b32.xlu0 %v12036_v59, %s11234_s20 }
0x2771   :  { %v4956_v22 = vpop.xlane.xlu1 %4955 }
0x2772   :  { %10766 = vrcp.f32 %v4956_v22 }
0x2773   :  { %v4953_v52 = vpop.xlane.xlu0 %4952 }
0x2774   :  { %10768 = vrcp.f32 %v4953_v52 }
0x2775   :  { %v4962_v60 = vpop.permute.xlu1 %4961 }
0x2777   :  { %v4964_v20 = vpop.permute.xlu0 %4963 }
0x2778   :  { %10268 = vmatprep.subr.mxu1 %v4964_v20 }
0x2779   :  { %10269 = vmatpush3.msra.mxu1 %v4964_v20  ;;  %v5055_v21 = vpop.permute.xlu1 %5054 }
0x277a   :  { %10270 = vmatprep.subr.mxu1 %v4962_v60 }
0x277b   :  { %10271 = vmatpush3.msra.mxu1 %v4962_v60  ;;  %v5053_v31 = vpop.permute.xlu0 %5052 }
0x277c   :  { %10275 = vmatprep.subr.msk.mxu1 %vm437_vm1, %v5055_v21 }
0x277d   :  { %v5049_v30 = vpop.permute.xlu1 %5048 }
0x277f   :  { %v10767_v9 = vpop.eup %10766  ;;  %v5051_v57 = vpop.permute.xlu0 %5050 }
0x2780   :  { %v4960_v29 = vmul.f32 %v10767_v9, %v10763_v14 }
0x2781   :  { %v10769_v24 = vpop.eup %10768 }
0x2782   :  { %v4959_v27 = vmul.f32 %v10769_v24, %v10765_v15 }
0x2784   :  { %10272 = vmatprep.mubr.msk.f32.mxu1 %vm521_vm2, %v4959_v27 }
0x2785   :  { %10273 = vmatmul.mubr.msk.f32.vlgmr.msra.gmra.mxu1 %vm521_vm2, %v4960_v29 }
0x2786   :  { %10276 = vmatpush3.xpose.msk.msra.mxu1 %vm437_vm1, %v5055_v21  ;;  %10279 = vmatprep.mubr.msk.f32.mxu1 %vm437_vm1, %v5049_v30 }
0x2787   :  { %10277 = vmatprep.subr.msk.mxu1 %vm437_vm1, %v5053_v31 }
0x278a   :  { %10278 = vmatpush3.xpose.msk.msra.mxu1 %vm437_vm1, %v5053_v31 }
0x278b   :  { %10294 = vmatprep.subr.mxu1 %v4658_v32 }
0x278d   :  { %10280 = vmatmul.mubr.msk.f32.vlgmr.msra.gmra.mxu1 %vm437_vm1, %v5051_v57 }
0x278e   :  { %10295 = vmatpush3.msra.mxu1 %v4658_v32 }
0x2845   :  { %v10274_v33 = vpop.f32.mrf.mxu1 }
0x2847   :  { %v5039_v56 = vpop.f32.mrf.mxu1 }
0x2848   :  { %10296 = vmatprep.mubr.msk.f32.mxu1 %vm437_vm1, %v5039_v56 }
0x2849   :  { %10297 = vmatmul.mubr.msk.f32.vlgmr.msra.gmra.mxu1 %vm437_vm1, %v10274_v33 }
0x284d   :  { %v10281_v10 = vpop.f32.mrf.mxu1 }
0x284e   :  { %v5136_v53 = vadd.f32 %v10281_v10, %v12043_v63 }
0x284f   :  { %v5130_v23 = vpop.f32.mrf.mxu1 }
0x2850   :  { %v5131_v36 = vadd.f32 %v5130_v23, %v12046_v62  ;;  %v5142_v26 = vsel %vm521_vm2, %v5136_v53, -inf }
0x2851   :  { %5143 = vmax.xlane.f32.xlu0 %v5142_v26 }
0x2852   :  { %v5139_v38 = vsel %vm521_vm2, %v5131_v36, -inf }
0x2853   :  { %5140 = vmax.xlane.f32.xlu1 %v5139_v38 }
0x28da   :  { %v5144_v39 = vpop.xlane.xlu0 %5143 }
0x28db   :  { %v5146_v40 = vsub.f32 %v5136_v53, %v5144_v39 }
0x28dc   :  { %v5141_v41 = vpop.xlane.xlu1 %5140 }
0x28dd   :  { %v5149_v17 = vmul.f32 1.442695, %v5146_v40  ;;  %v5145_v19 = vsub.f32 %v5131_v36, %v5141_v41 }
0x28df   :  { %10770 = vpow2.f32 %v5149_v17  ;;  %v5147_v5 = vmul.f32 1.442695, %v5145_v19 }
0x28e1   :  { %10772 = vpow2.f32 %v5147_v5 }
0x28ec   :  { %v10771_v42 = vpop.eup %10770 }
0x28ed   :  { %v5154_v43 = vsel %vm521_vm2, %v10771_v42, 0.0 }
0x28ee   :  { %v10773_v2 = vpop.eup %10772  ;;  %5155 = vadd.xlane.f32.xlu1 %v5154_v43 }
0x28ef   :  { %v5151_v44 = vsel %vm521_vm2, %v10773_v2, 0.0 }
0x28f0   :  { %5152 = vadd.xlane.f32.xlu0 %v5151_v44 }
0x28ff   :  { %5161 = vrot.lane.b32.xlu1 %v12024_v51, %s11232_s8 }
0x2903   :  { %5416 = vrot.lane.b32.xlu1 %v12022_v49, %s11238_s19 }
0x2906   :  { %5163 = vrot.lane.b32.xlu0 %v12022_v49, %s11232_s8 }
0x2907   :  { %5410 = vrot.lane.b32.xlu1 %v12034_v25, %s11238_s19 }
0x290a   :  { %5414 = vrot.lane.b32.xlu0 %v12024_v51, %s11238_s19 }
0x290b   :  { %5699 = vrot.lane.b32.xlu1 %v12022_v49, %s11240_s18 }
0x290e   :  { %5412 = vrot.lane.b32.xlu0 %v12036_v59, %s11238_s19 }
0x290f   :  { %5693 = vrot.lane.b32.xlu1 %v12034_v25, %s11240_s18 }
0x2912   :  { %5697 = vrot.lane.b32.xlu0 %v12024_v51, %s11240_s18 }
0x2916   :  { %5695 = vrot.lane.b32.xlu0 %v12036_v59, %s11240_s18 }
0x2977   :  { %v5156_v37 = vpop.xlane.xlu1 %5155 }
0x2978   :  { %10774 = vrcp.f32 %v5156_v37 }
0x2979   :  { %v5153_v45 = vpop.xlane.xlu0 %5152 }
0x297a   :  { %10776 = vrcp.f32 %v5153_v45 }
0x297b   :  { %v5162_v48 = vpop.permute.xlu1 %5161 }
0x297d   :  { %v5164_v47 = vpop.permute.xlu0 %5163 }
0x297e   :  { %10282 = vmatprep.subr.mxu0 %v5164_v47 }
0x297f   :  { %10283 = vmatpush3.msra.mxu0 %v5164_v47  ;;  %v5417_v59 = vpop.permute.xlu1 %5416 }
0x2980   :  { %10284 = vmatprep.subr.mxu0 %v5162_v48 }
0x2981   :  { %10285 = vmatpush3.msra.mxu0 %v5162_v48  ;;  %v5415_v54 = vpop.permute.xlu0 %5414  ;;  %v4660_v48 = vld [vmem:[%s12564_s17 + $0x10] sm:$0xff] }
0x2982   :  { %10289 = vmatprep.subr.mxu0 %v4659_v50 }
0x2983   :  { %v5411_v61 = vpop.permute.xlu1 %5410 }
0x2985   :  { %v10775_v55 = vpop.eup %10774  ;;  %v5413_v4 = vpop.permute.xlu0 %5412 }
0x2986   :  { %v5160_v0 = vmul.f32 %v10775_v55, %v10771_v42 }
0x2987   :  { %v10777_v58 = vpop.eup %10776  ;;  %v5700_v3 = vpop.permute.xlu1 %5699 }
0x2988   :  { %v5159_v25 = vmul.f32 %v10777_v58, %v10773_v2 }
0x2989   :  { %v5698_v7 = vpop.permute.xlu0 %5697 }
0x298a   :  { %10286 = vmatprep.mubr.msk.f32.mxu0 %vm521_vm2, %v5159_v25 }
0x298b   :  { %10287 = vmatmul.mubr.msk.f32.vlgmr.msra.gmra.mxu0 %vm521_vm2, %v5160_v0  ;;  %v5694_v6 = vpop.permute.xlu1 %5693 }
0x298c   :  { %10290 = vmatpush3.msra.mxu0 %v4659_v50  ;;  %v10298_v50 = vpop.f32.mrf.mxu1 }
0x298d   :  { %10299 = vmatprep.subr.msk.mxu0 %vm437_vm1, %v5417_v59  ;;  %v5696_v11 = vpop.permute.xlu0 %5695 }
0x298e   :  { %v5401_v55 = vpop.f32.mrf.mxu1 }
0x2a4b   :  { %v10288_v1 = vpop.f32.mrf.mxu0 }
0x2a4d   :  { %v5239_v8 = vpop.f32.mrf.mxu0 }
0x2a4e   :  { %10291 = vmatprep.mubr.msk.f32.mxu0 %vm437_vm1, %v5239_v8 }
0x2a4f   :  { %10292 = vmatmul.mubr.msk.f32.vlgmr.msra.gmra.mxu0 %vm437_vm1, %v10288_v1 }
0x2a50   :  { %10300 = vmatpush3.xpose.msk.msra.mxu0 %vm437_vm1, %v5417_v59  ;;  %10303 = vmatprep.mubr.msk.f32.mxu0 %vm437_vm1, %v5411_v61 }
0x2a51   :  { %10301 = vmatprep.subr.msk.mxu0 %vm437_vm1, %v5415_v54 }
0x2a54   :  { %10302 = vmatpush3.xpose.msk.msra.mxu0 %vm437_vm1, %v5415_v54 }
0x2a55   :  { %10318 = vmatprep.subr.msk.mxu0 %vm437_vm1, %v5700_v3 }
0x2a57   :  { %10304 = vmatmul.mubr.msk.f32.vlgmr.msra.gmra.mxu0 %vm437_vm1, %v5413_v4 }
0x2a58   :  { %10319 = vmatpush3.xpose.msk.msra.mxu0 %vm437_vm1, %v5700_v3  ;;  %10322 = vmatprep.mubr.msk.f32.mxu0 %vm437_vm1, %v5694_v6  ;;  %v4661_v3 = vld [vmem:[%s12564_s17 + $0x18] sm:$0xff] }
0x2a59   :  { %10320 = vmatprep.subr.msk.mxu0 %vm437_vm1, %v5698_v7 }
0x2a5c   :  { %10321 = vmatpush3.xpose.msk.msra.mxu0 %vm437_vm1, %v5698_v7 }
0x2a5f   :  { %10323 = vmatmul.mubr.msk.f32.vlgmr.msra.gmra.mxu0 %vm437_vm1, %v5696_v11 }
0x2b0f   :  { %v12120_v12 = vpop.f32.mrf.mxu0 }
0x2b10   :  { %v5407_v4 = vadd.f32 %v10298_v50, %v12120_v12  ;;  %v9421_v50 = vld [vmem:[#allocation14] ss:$0 sm:$0xff] }
0x2b11   :  { %v12122_v13 = vpop.f32.mrf.mxu0 }
0x2b12   :  { %v5402_v7 = vadd.f32 %v5401_v55, %v12122_v13 }
0x2b17   :  { %v10305_v14 = vpop.f32.mrf.mxu0 }
0x2b18   :  { %v5498_v16 = vadd.f32 %v10305_v14, %v12043_v63 }
0x2b19   :  { %v5492_v15 = vpop.f32.mrf.mxu0 }
0x2b1a   :  { %v5493_v18 = vadd.f32 %v5492_v15, %v12046_v62  ;;  %v5504_v22 = vsel %vm521_vm2, %v5498_v16, -inf }
0x2b1b   :  { %5505 = vmax.xlane.f32.xlu0 %v5504_v22 }
0x2b1c   :  { %v5501_v52 = vsel %vm521_vm2, %v5493_v18, -inf }
0x2b1d   :  { %5502 = vmax.xlane.f32.xlu1 %v5501_v52 }
0x2b1f   :  { %v10324_v32 = vpop.f32.mrf.mxu0 }
0x2b20   :  { %v5781_v10 = vadd.f32 %v10324_v32, %v12043_v63 }
0x2b21   :  { %v5775_v33 = vpop.f32.mrf.mxu0 }
0x2b22   :  { %v5776_v56 = vadd.f32 %v5775_v33, %v12046_v62  ;;  %v5787_v23 = vsel %vm521_vm2, %v5781_v10, -inf }
0x2b24   :  { %v5784_v53 = vsel %vm521_vm2, %v5776_v56, -inf }
0x2ba4   :  { %v5506_v60 = vpop.xlane.xlu0 %5505 }
0x2ba5   :  { %v5508_v20 = vsub.f32 %v5498_v16, %v5506_v60 }
0x2ba6   :  { %v5503_v21 = vpop.xlane.xlu1 %5502 }
0x2ba7   :  { %v5511_v9 = vmul.f32 1.442695, %v5508_v20  ;;  %v5507_v24 = vsub.f32 %v5493_v18, %v5503_v21  ;;  %v9419_v20 = vld [vmem:[#allocation11] ss:$0 sm:$0xff] }
0x2ba9   :  { %10778 = vpow2.f32 %v5511_v9  ;;  %v5509_v27 = vmul.f32 1.442695, %v5507_v24 }
0x2bab   :  { %10780 = vpow2.f32 %v5509_v27 }
0x2bb6   :  { %v10779_v29 = vpop.eup %10778 }
0x2bb7   :  { %v5516_v30 = vsel %vm521_vm2, %v10779_v29, 0.0 }
0x2bb8   :  { %v10781_v31 = vpop.eup %10780  ;;  %5517 = vadd.xlane.f32.xlu1 %v5516_v30 }
0x2bb9   :  { %v5513_v57 = vsel %vm521_vm2, %v10781_v31, 0.0 }
0x2bba   :  { %5514 = vadd.xlane.f32.xlu0 %v5513_v57 }
0x2bc9   :  { %5523 = vrot.lane.b32.xlu1 %v12024_v51, %s11237_s30 }
0x2bd0   :  { %5525 = vrot.lane.b32.xlu0 %v12022_v49, %s11237_s30 }
0x2bed   :  { %5785 = vmax.xlane.f32.xlu1 %v5784_v53 }
0x2bef   :  { %5788 = vmax.xlane.f32.xlu0 %v5787_v23  ;;  %v6031_v23 = vld [vmem:[#allocation16 + $0x18] sm:$0xff] }
0x2bf0   :  { %10337 = vmatprep.subr.mxu0 %v6031_v23 }
0x2bf1   :  { %10338 = vmatpush3.msra.mxu0 %v6031_v23 }
0x2c41   :  { %v5518_v36 = vpop.xlane.xlu1 %5517 }
0x2c42   :  { %10782 = vrcp.f32 %v5518_v36  ;;  %v6030_v36 = vld [vmem:[#allocation16 + $0x10] sm:$0xff] }
0x2c43   :  { %v5515_v26 = vpop.xlane.xlu0 %5514  ;;  %10339 = vmatprep.subr.mxu0 %v6030_v36 }
0x2c44   :  { %10784 = vrcp.f32 %v5515_v26  ;;  %v6029_v26 = vld [vmem:[#allocation16 + $0x8] sm:$0xff]  ;;  %10340 = vmatpush3.msra.mxu0 %v6030_v36 }
0x2c45   :  { %v5524_v39 = vpop.permute.xlu1 %5523  ;;  %10341 = vmatprep.subr.mxu0 %v6029_v26 }
0x2c46   :  { %10342 = vmatpush3.msra.mxu0 %v6029_v26 }
0x2c47   :  { %v5526_v38 = vpop.permute.xlu0 %5525 }
0x2c48   :  { %10306 = vmatprep.subr.mxu1 %v5526_v38 }
0x2c49   :  { %10307 = vmatpush3.msra.mxu1 %v5526_v38  ;;  %v6028_v38 = vld [vmem:[#allocation16] sm:$0xff] }
0x2c4a   :  { %10308 = vmatprep.subr.mxu1 %v5524_v39  ;;  %10343 = vmatprep.subr.mxu0 %v6028_v38 }
0x2c4b   :  { %10309 = vmatpush3.msra.mxu1 %v5524_v39  ;;  %10344 = vmatpush3.msra.mxu0 %v6028_v38  ;;  %v6040_v39 = vld [vmem:[%s12565_s24 + $0x38] sm:$0xff]  ;;  %v9428_v38 = vld [vmem:[#allocation20] ss:$0 sm:$0xff] }
0x2c4c   :  { %10313 = vmatprep.subr.mxu1 %v4660_v48 }
0x2c4f   :  { %v10783_v40 = vpop.eup %10782 }
0x2c50   :  { %v5522_v63 = vmul.f32 %v10783_v40, %v10779_v29  ;;  %v6039_v40 = vld [vmem:[%s12565_s24 + $0x30] sm:$0xff] }
0x2c51   :  { %v10785_v62 = vpop.eup %10784 }
0x2c52   :  { %v5521_v41 = vmul.f32 %v10785_v62, %v10781_v31  ;;  %v6038_v62 = vld [vmem:[%s12565_s24 + $0x28] sm:$0xff] }
0x2c54   :  { %10310 = vmatprep.mubr.msk.f32.mxu1 %vm521_vm2, %v5521_v41  ;;  %v6037_v41 = vld [vmem:[%s12565_s24 + $0x20] sm:$0xff] }
0x2c55   :  { %10311 = vmatmul.mubr.msk.f32.vlgmr.msra.gmra.mxu1 %vm521_vm2, %v5522_v63 }
0x2c56   :  { %10314 = vmatpush3.msra.mxu1 %v4660_v48 }
0x2c76   :  { %v5786_v17 = vpop.xlane.xlu1 %5785 }
0x2c77   :  { %v5790_v19 = vsub.f32 %v5776_v56, %v5786_v17 }
0x2c78   :  { %v5789_v5 = vpop.xlane.xlu0 %5788 }
0x2c79   :  { %v5792_v42 = vmul.f32 1.442695, %v5790_v19  ;;  %v5791_v43 = vsub.f32 %v5781_v10, %v5789_v5 }
0x2c7b   :  { %10786 = vpow2.f32 %v5792_v42  ;;  %v5794_v2 = vmul.f32 1.442695, %v5791_v43 }
0x2c7d   :  { %10788 = vpow2.f32 %v5794_v2 }
0x2c88   :  { %v10787_v44 = vpop.eup %10786 }
0x2c89   :  { %v5796_v37 = vsel %vm521_vm2, %v10787_v44, 0.0 }
0x2c8a   :  { %v10789_v45 = vpop.eup %10788  ;;  %5797 = vadd.xlane.f32.xlu0 %v5796_v37 }
0x2c8b   :  { %v5799_v47 = vsel %vm521_vm2, %v10789_v45, 0.0 }
0x2c8c   :  { %5800 = vadd.xlane.f32.xlu1 %v5799_v47 }
0x2c9d   :  { %5806 = vrot.lane.b32.xlu1 %v12024_v51, %s11239_s9 }
0x2ca0   :  { %5808 = vrot.lane.b32.xlu0 %v12022_v49, %s11239_s9 }
0x2d13   :  { %v5798_v58 = vpop.xlane.xlu0 %5797 }
0x2d14   :  { %10790 = vrcp.f32 %v5798_v58 }
0x2d15   :  { %v10312_v25 = vpop.f32.mrf.mxu1  ;;  %v5801_v0 = vpop.xlane.xlu1 %5800 }
0x2d16   :  { %10792 = vrcp.f32 %v5801_v0  ;;  %v6036_v0 = vld [vmem:[%s12565_s24 + $0x18] sm:$0xff] }
0x2d17   :  { %v5601_v59 = vpop.f32.mrf.mxu1  ;;  %v5809_v61 = vpop.permute.xlu0 %5808 }
0x2d18   :  { %10315 = vmatprep.mubr.msk.f32.mxu1 %vm437_vm1, %v5601_v59  ;;  %10325 = vmatprep.subr.mxu1 %v5809_v61  ;;  %v6035_v59 = vld [vmem:[%s12565_s24 + $0x10] sm:$0xff] }
0x2d19   :  { %10316 = vmatmul.mubr.msk.f32.vlgmr.msra.gmra.mxu1 %vm437_vm1, %v10312_v25  ;;  %v5807_v1 = vpop.permute.xlu1 %5806 }
0x2d1a   :  { %10326 = vmatpush3.msra.mxu1 %v5809_v61  ;;  %v6034_v61 = vld [vmem:[%s12565_s24 + $0x8] sm:$0xff] }
0x2d1b   :  { %10327 = vmatprep.subr.mxu1 %v5807_v1 }
0x2d1c   :  { %10328 = vmatpush3.msra.mxu1 %v5807_v1  ;;  %v6033_v1 = vld [vmem:[%s12565_s24] sm:$0xff] }
0x2d1d   :  { %10332 = vmatprep.subr.mxu1 %v4661_v3 }
0x2d21   :  { %v10791_v49 = vpop.eup %10790 }
0x2d22   :  { %v5804_v51 = vmul.f32 %v10791_v49, %v10787_v44  ;;  %v9420_v44 = vld [vmem:[#allocation13] ss:$0 sm:$0xff]  ;;  %v9422_v49 = vld [vmem:[#allocation17] ss:$0 sm:$0xff] }
0x2d23   :  { %v10793_v54 = vpop.eup %10792 }
0x2d24   :  { %10329 = vmatprep.mubr.msk.f32.mxu1 %vm521_vm2, %v5804_v51  ;;  %v5805_v8 = vmul.f32 %v10793_v54, %v10789_v45 }
0x2d26   :  { %10330 = vmatmul.mubr.msk.f32.vlgmr.msra.gmra.mxu1 %vm521_vm2, %v5805_v8 }
0x2d27   :  { %10333 = vmatpush3.msra.mxu1 %v4661_v3 }
0x2d28   :  { %10348 = vmatprep.subr.mxu1 %v6040_v39 }
0x2dd9   :  { %v10317_v6 = vpop.f32.mrf.mxu1 }
0x2dda   :  { %v5692_v11 = vadd.f32 %v10317_v6, %v5407_v4 }
0x2ddb   :  { %v5682_v14 = vpop.f32.mrf.mxu1 }
0x2ddc   :  { %v5691_v16 = vadd.f32 %v5682_v14, %v5402_v7  ;;  %v9425_v7 = vld [vmem:[#allocation19] ss:$0 sm:$0xff] }
0x2de6   :  { %v10331_v15 = vpop.f32.mrf.mxu1 }
0x2de8   :  { %v5884_v18 = vpop.f32.mrf.mxu1 }
0x2de9   :  { %10334 = vmatprep.mubr.msk.f32.mxu1 %vm437_vm1, %v5884_v18 }
0x2dea   :  { %10335 = vmatmul.mubr.msk.f32.vlgmr.msra.gmra.mxu1 %vm437_vm1, %v10331_v15 }
0x2deb   :  { %10349 = vmatpush3.msra.mxu1 %v6040_v39 }
0x2dec   :  { %10350 = vmatprep.subr.mxu1 %v6039_v40 }
0x2ded   :  { %10351 = vmatpush3.msra.mxu1 %v6039_v40 }
0x2dee   :  { %10352 = vmatprep.subr.mxu1 %v6038_v62 }
0x2def   :  { %10353 = vmatpush3.msra.mxu1 %v6038_v62 }
0x2df0   :  { %10354 = vmatprep.subr.mxu1 %v6037_v41 }
0x2df1   :  { %10355 = vmatpush3.msra.mxu1 %v6037_v41 }
0x2df2   :  { %10356 = vmatprep.subr.mxu1 %v6036_v0 }
0x2df3   :  { %10357 = vmatpush3.msra.mxu1 %v6036_v0 }
0x2df4   :  { %10358 = vmatprep.subr.mxu1 %v6035_v59 }
0x2df5   :  { %10359 = vmatpush3.msra.mxu1 %v6035_v59 }
0x2df6   :  { %10360 = vmatprep.subr.mxu1 %v6034_v61 }
0x2df7   :  { %10361 = vmatpush3.msra.mxu1 %v6034_v61 }
0x2df8   :  { %10362 = vmatprep.subr.mxu1 %v6033_v1 }
0x2df9   :  { %10363 = vmatpush3.msra.mxu1 %v6033_v1 }
0x2eaa   :  { %v10336_v22 = vpop.f32.mrf.mxu1 }
0x2eab   :  { %v5975_v52 = vadd.f32 %v10336_v22, %v5692_v11 }
0x2eac   :  { %v5965_v60 = vpop.f32.mrf.mxu1 }
0x2ead   :  { %v5977_v21 = vadd.f32 %v5975_v52, %v12016_v28  ;;  %v5974_v9 = vadd.f32 %v5965_v60, %v5691_v16 }
0x2eaf   :  { %v5976_v12 = vadd.f32 %v5974_v9, %v12014_v46  ;;  %v5985_v24 = vadd.f32 %v9419_v20, %v5977_v21 }
0x2eb1   :  { %v5989_v13 = vsel %vm349_vm0, %v5985_v24, 0.0  ;;  %v5984_v27 = vadd.f32 %v9419_v20, %v5976_v12 }
0x2eb2   :  { %5990 = vadd.xlane.f32.xlu0 %v5989_v13 }
0x2eb3   :  { %v5986_v29 = vsel %vm349_vm0, %v5984_v27, 0.0 }
0x2eb4   :  { %5987 = vadd.xlane.f32.xlu1 %v5986_v29 }
0x2f3b   :  { %v5991_v30 = vpop.xlane.xlu0 %5990 }
0x2f3c   :  { %v5993_v31 = vmul.f32 0.03125, %v5991_v30 }
0x2f3d   :  { %v5988_v57 = vpop.xlane.xlu1 %5987 }
0x2f3e   :  { %v5995_v32 = vsub.f32 %v5985_v24, %v5993_v31  ;;  %v5992_v33 = vmul.f32 0.03125, %v5988_v57  ;;  %v9433_v57 = vld [vmem:[%s12557_s13 + $0x38] sm:$0xff] }
0x2f3f   :  { %10367 = vmatprep.subr.mxu0 %v9433_v57 }
0x2f40   :  { %v5994_v56 = vsub.f32 %v5984_v27, %v5992_v33  ;;  %v5997_v10 = vmul.f32 %v5995_v32, %v5995_v32  ;;  %v9431_v33 = vld [vmem:[%s12557_s13 + $0x28] sm:$0xff] }
0x2f42   :  { %v6001_v28 = vsel %vm349_vm0, %v5997_v10, 0.0  ;;  %v5996_v53 = vmul.f32 %v5994_v56, %v5994_v56 }
0x2f43   :  { %6002 = vadd.xlane.f32.xlu1 %v6001_v28 }
0x2f44   :  { %v5998_v46 = vsel %vm349_vm0, %v5996_v53, 0.0 }
0x2f45   :  { %5999 = vadd.xlane.f32.xlu0 %v5998_v46 }
0x2fcc   :  { %v6003_v63 = vpop.xlane.xlu1 %6002 }
0x2fcd   :  { %v6005_v17 = vmul.f32 0.03125, %v6003_v63  ;;  %v9429_v63 = vld [vmem:[#allocation22] ss:$0 sm:$0xff] }
0x2fce   :  { %v6000_v19 = vpop.xlane.xlu0 %5999 }
0x2fcf   :  { %v6007_v5 = vadd.f32 1e-05, %v6005_v17  ;;  %v6004_v42 = vmul.f32 0.03125, %v6000_v19 }
0x2fd1   :  { %10794 = vrsqrt.f32 %v6007_v5  ;;  %v6006_v43 = vadd.f32 1e-05, %v6004_v42  ;;  %v9440_v42 = vld [vmem:[%s12558_s25 + $0x1] ss:$0 sm:$0xff] }
0x2fd3   :  { %10796 = vrsqrt.f32 %v6006_v43 }
0x2fde   :  { %v10795_v2 = vpop.eup %10794 }
0x2fdf   :  { %v6011_v37 = vmul.f32 %v10795_v2, %v5995_v32  ;;  %v9432_v32 = vld [vmem:[%s12557_s13 + $0x30] sm:$0xff] }
0x2fe0   :  { %v10797_v45 = vpop.eup %10796 }
0x2fe1   :  { %v6010_v47 = vmul.f32 %v10797_v45, %v5994_v56  ;;  %v6019_v48 = vmul.f32 %v9420_v44, %v6011_v37  ;;  %v9430_v56 = vld [vmem:[%s12557_s13 + $0x20] sm:$0xff] }
0x2fe3   :  { %v6018_v55 = vmul.f32 %v9420_v44, %v6010_v47  ;;  %v6027_v25 = vadd.f32 %v9421_v50, %v6019_v48 }
0x2fe5   :  { %v6026_v58 = vadd.f32 %v9421_v50, %v6018_v55  ;;  %v12208_v50 = vld [vmem:[%s12559_s29 + $0x8] sm:$0xff] }
0x2fe7   :  { %10345 = vmatprep.mubr.msk.f32.mxu0 %vm349_vm0, %v6026_v58 }
0x2fe8   :  { %10346 = vmatmul.mubr.msk.f32.vlgmr.msra.gmra.mxu0 %vm349_vm0, %v6027_v25 }
0x2fe9   :  { %10368 = vmatpush3.msra.mxu0 %v9433_v57 }
0x2fea   :  { %10369 = vmatprep.subr.mxu0 %v9432_v32 }
0x2feb   :  { %10370 = vmatpush3.msra.mxu0 %v9432_v32 }
0x2fec   :  { %10371 = vmatprep.subr.mxu0 %v9431_v33 }
0x2fed   :  { %10372 = vmatpush3.msra.mxu0 %v9431_v33 }
0x2fee   :  { %10373 = vmatprep.subr.mxu0 %v9430_v56 }
0x2fef   :  { %10374 = vmatpush3.msra.mxu0 %v9430_v56 }
0x30a8   :  { %v10347_v51 = vpop.f32.mrf.mxu0 }
0x30a9   :  { %v6128_v54 = vadd.f32 %v10347_v51, %v9422_v49 }
0x30aa   :  { %v6122_v8 = vpop.f32.mrf.mxu0 }
0x30ab   :  { %v6123_v3 = vadd.f32 %v9422_v49, %v6122_v8  ;;  %v6132_v6 = vmax.f32 %v6128_v54, 0.0 }
0x30ad   :  { %v6131_v4 = vmax.f32 %v6123_v3, 0.0 }
0x30af   :  { %10364 = vmatprep.mubr.msk.f32.mxu1 %vm1723_vm3, %v6131_v4 }
0x30b0   :  { %10365 = vmatmul.mubr.msk.f32.vlgmr.msra.gmra.mxu1 %vm1723_vm3, %v6132_v6 }
0x3170   :  { %v10366_v11 = vpop.f32.mrf.mxu1 }
0x3171   :  { %v6217_v14 = vadd.f32 %v10366_v11, %v9425_v7 }
0x3172   :  { %v6211_v16 = vpop.f32.mrf.mxu1 }
0x3173   :  { %v6221_v15 = vadd.f32 %v6217_v14, %v6027_v25  ;;  %v6212_v18 = vadd.f32 %v9425_v7, %v6211_v16  ;;  %v12212_v25 = vld [vmem:[%s12559_s29] sm:$0xff] }
0x3175   :  { %v6220_v22 = vadd.f32 %v6212_v18, %v6026_v58  ;;  %v6225_v52 = vsel %vm349_vm0, %v6221_v15, 0.0 }
0x3176   :  { %6226 = vadd.xlane.f32.xlu1 %v6225_v52 }
0x3177   :  { %v6222_v60 = vsel %vm349_vm0, %v6220_v22, 0.0 }
0x3178   :  { %6223 = vadd.xlane.f32.xlu0 %v6222_v60 }
0x31ff   :  { %v6227_v20 = vpop.xlane.xlu1 %6226 }
0x3200   :  { %v6229_v21 = vmul.f32 0.03125, %v6227_v20 }
0x3201   :  { %v6224_v9 = vpop.xlane.xlu0 %6223 }
0x3202   :  { %v6231_v12 = vsub.f32 %v6221_v15, %v6229_v21  ;;  %v6228_v24 = vmul.f32 0.03125, %v6224_v9 }
0x3204   :  { %v6230_v13 = vsub.f32 %v6220_v22, %v6228_v24  ;;  %v6233_v27 = vmul.f32 %v6231_v12, %v6231_v12 }
0x3206   :  { %v6237_v29 = vsel %vm349_vm0, %v6233_v27, 0.0  ;;  %v6232_v30 = vmul.f32 %v6230_v13, %v6230_v13 }
0x3207   :  { %6238 = vadd.xlane.f32.xlu1 %v6237_v29 }
0x3208   :  { %v6234_v31 = vsel %vm349_vm0, %v6232_v30, 0.0 }
0x3209   :  { %6235 = vadd.xlane.f32.xlu0 %v6234_v31 }
0x3290   :  { %v6239_v10 = vpop.xlane.xlu1 %6238 }
0x3291   :  { %v6241_v28 = vmul.f32 0.03125, %v6239_v10 }
0x3292   :  { %v6236_v53 = vpop.xlane.xlu0 %6235 }
0x3293   :  { %v6243_v46 = vadd.f32 1e-05, %v6241_v28  ;;  %v6240_v23 = vmul.f32 0.03125, %v6236_v53 }
0x3295   :  { %10798 = vrsqrt.f32 %v6243_v46  ;;  %v6242_v36 = vadd.f32 1e-05, %v6240_v23 }
0x3297   :  { %10800 = vrsqrt.f32 %v6242_v36 }
0x32a2   :  { %v10799_v26 = vpop.eup %10798 }
0x32a3   :  { %v6247_v39 = vmul.f32 %v10799_v26, %v6231_v12 }
0x32a4   :  { %v10801_v40 = vpop.eup %10800 }
0x32a5   :  { %v6246_v62 = vmul.f32 %v10801_v40, %v6230_v13  ;;  %v6255_v41 = vmul.f32 %v9428_v38, %v6247_v39  ;;  %v9435_v13 = vld [vmem:[%s12560_s3 + $0x20] sm:$0xff] }
0x32a7   :  { %v6254_v17 = vmul.f32 %v9428_v38, %v6246_v62  ;;  %v12184_v5 = vadd.f32 %v9429_v63, %v6255_v41 }
0x32a9   :  { %v12182_v19 = vadd.f32 %v9429_v63, %v6254_v17 }
0x32ab   :  { %10375 = vmatprep.mubr.msk.f32.mxu0 %vm349_vm0, %v12182_v19 }
0x32ac   :  { %10376 = vmatmul.mubr.msk.f32.vlgmr.msra.gmra.mxu0 %vm349_vm0, %v12184_v5 }
0x336c   :  { %v10377_v43 = vpop.f32.mrf.mxu0 }
0x336d   :  { %v12191_v2 = vadd.f32 %v10377_v43, %v9440_v42 }
0x336e   :  { %v6360_v44 = vpop.f32.mrf.mxu0 }
0x336f   :  { %v12193_v37 = vadd.f32 %v9440_v42, %v6360_v44  ;;  %6373 = vrot.lane.b32.xlu0 %v12191_v2, %s11233_s6  ;;  %v9436_v42 = vld [vmem:[%s12560_s3 + $0x28] sm:$0xff] }
0x3371   :  { %6371 = vrot.lane.b32.xlu1 %v12193_v37, %s11233_s6  ;;  %10382 = vmatprep.mubr.msk.f32.mxu0 %vm437_vm1, %v12193_v37 }
0x33e1   :  { %v6374_v45 = vpop.permute.xlu0 %6373 }
0x33e2   :  { %10378 = vmatprep.subr.msk.mxu0 %vm437_vm1, %v6374_v45 }
0x33e3   :  { %10379 = vmatpush3.xpose.msk.msra.mxu0 %vm437_vm1, %v6374_v45  ;;  %v6372_v47 = vpop.permute.xlu1 %6371 }
0x33e4   :  { %10380 = vmatprep.subr.msk.mxu0 %vm437_vm1, %v6372_v47 }
0x33e7   :  { %10381 = vmatpush3.xpose.msk.msra.mxu0 %vm437_vm1, %v6372_v47 }
0x33ea   :  { %10383 = vmatmul.mubr.msk.f32.vlgmr.msra.gmra.mxu0 %vm437_vm1, %v12191_v2 }
0x34aa   :  { %v10384_v48 = vpop.f32.mrf.mxu0 }
0x34ab   :  { %v6455_v55 = vadd.f32 %v12208_v50, %v10384_v48 }
0x34ac   :  { %v6449_v58 = vpop.f32.mrf.mxu0 }
0x34ad   :  { %v6450_v0 = vadd.f32 %v12212_v25, %v6449_v58  ;;  %v6461_v59 = vsel %vm521_vm2, %v6455_v55, -inf }
0x34ae   :  { %6462 = vmax.xlane.f32.xlu0 %v6461_v59 }
0x34af   :  { %v6458_v61 = vsel %vm521_vm2, %v6450_v0, -inf }
0x34b0   :  { %6459 = vmax.xlane.f32.xlu1 %v6458_v61 }
0x3537   :  { %v6463_v1 = vpop.xlane.xlu0 %6462 }
0x3538   :  { %v6465_v49 = vsub.f32 %v6455_v55, %v6463_v1 }
0x3539   :  { %v6460_v51 = vpop.xlane.xlu1 %6459 }
0x353a   :  { %v6468_v54 = vmul.f32 1.442695, %v6465_v49  ;;  %v6464_v8 = vsub.f32 %v6450_v0, %v6460_v51 }
0x353c   :  { %10802 = vpow2.f32 %v6468_v54  ;;  %v6466_v3 = vmul.f32 1.442695, %v6464_v8 }
0x353e   :  { %10804 = vpow2.f32 %v6466_v3 }
0x3549   :  { %v10803_v4 = vpop.eup %10802 }
0x354a   :  { %v6473_v6 = vsel %vm521_vm2, %v10803_v4, 0.0 }
0x354b   :  { %v10805_v7 = vpop.eup %10804  ;;  %6474 = vadd.xlane.f32.xlu1 %v6473_v6 }
0x354c   :  { %v6470_v11 = vsel %vm521_vm2, %v10805_v7, 0.0 }
0x354d   :  { %6471 = vadd.xlane.f32.xlu0 %v6470_v11 }
0x355c   :  { %6480 = vrot.lane.b32.xlu1 %v12193_v37, %s11235_s15 }
0x3560   :  { %6573 = vrot.lane.b32.xlu1 %v12191_v2, %s11232_s8 }
0x3563   :  { %6482 = vrot.lane.b32.xlu0 %v12191_v2, %s11235_s15 }
0x3564   :  { %6567 = vrot.lane.b32.xlu1 %v12193_v37, %s11234_s20 }
0x3567   :  { %6571 = vrot.lane.b32.xlu0 %v12193_v37, %s11232_s8 }
0x356b   :  { %6569 = vrot.lane.b32.xlu0 %v12191_v2, %s11234_s20 }
0x35d4   :  { %v6475_v14 = vpop.xlane.xlu1 %6474 }
0x35d5   :  { %10806 = vrcp.f32 %v6475_v14 }
0x35d6   :  { %v6472_v16 = vpop.xlane.xlu0 %6471 }
0x35d7   :  { %10808 = vrcp.f32 %v6472_v16 }
0x35d8   :  { %v6481_v15 = vpop.permute.xlu1 %6480 }
0x35da   :  { %v6483_v18 = vpop.permute.xlu0 %6482 }
0x35db   :  { %10385 = vmatprep.subr.mxu1 %v6483_v18 }
0x35dc   :  { %10386 = vmatpush3.msra.mxu1 %v6483_v18  ;;  %v6574_v22 = vpop.permute.xlu1 %6573 }
0x35dd   :  { %10387 = vmatprep.subr.mxu1 %v6481_v15 }
0x35de   :  { %10388 = vmatpush3.msra.mxu1 %v6481_v15  ;;  %v6572_v12 = vpop.permute.xlu0 %6571 }
0x35df   :  { %10392 = vmatprep.subr.msk.mxu1 %vm437_vm1, %v6574_v22 }
0x35e0   :  { %v6568_v9 = vpop.permute.xlu1 %6567 }
0x35e2   :  { %v10807_v52 = vpop.eup %10806  ;;  %v6570_v24 = vpop.permute.xlu0 %6569 }
0x35e3   :  { %v6479_v21 = vmul.f32 %v10807_v52, %v10803_v4 }
0x35e4   :  { %v10809_v60 = vpop.eup %10808 }
0x35e5   :  { %v6478_v20 = vmul.f32 %v10809_v60, %v10805_v7 }
0x35e7   :  { %10389 = vmatprep.mubr.msk.f32.mxu1 %vm521_vm2, %v6478_v20 }
0x35e8   :  { %10390 = vmatmul.mubr.msk.f32.vlgmr.msra.gmra.mxu1 %vm521_vm2, %v6479_v21 }
0x35e9   :  { %10393 = vmatpush3.xpose.msk.msra.mxu1 %vm437_vm1, %v6574_v22  ;;  %10396 = vmatprep.mubr.msk.f32.mxu1 %vm437_vm1, %v6568_v9 }
0x35ea   :  { %10394 = vmatprep.subr.msk.mxu1 %vm437_vm1, %v6572_v12 }
0x35ed   :  { %10395 = vmatpush3.xpose.msk.msra.mxu1 %vm437_vm1, %v6572_v12 }
0x35ee   :  { %10411 = vmatprep.subr.mxu1 %v9435_v13 }
0x35f0   :  { %10397 = vmatmul.mubr.msk.f32.vlgmr.msra.gmra.mxu1 %vm437_vm1, %v6570_v24 }
0x35f1   :  { %10412 = vmatpush3.msra.mxu1 %v9435_v13 }
0x36a8   :  { %v10391_v27 = vpop.f32.mrf.mxu1 }
0x36aa   :  { %v6558_v29 = vpop.f32.mrf.mxu1 }
0x36ab   :  { %10413 = vmatprep.mubr.msk.f32.mxu1 %vm437_vm1, %v6558_v29 }
0x36ac   :  { %10414 = vmatmul.mubr.msk.f32.vlgmr.msra.gmra.mxu1 %vm437_vm1, %v10391_v27 }
0x36b0   :  { %v10398_v30 = vpop.f32.mrf.mxu1 }
0x36b1   :  { %v6655_v31 = vadd.f32 %v12208_v50, %v10398_v30 }
0x36b2   :  { %v6649_v57 = vpop.f32.mrf.mxu1 }
0x36b3   :  { %v6650_v32 = vadd.f32 %v12212_v25, %v6649_v57  ;;  %v6661_v33 = vsel %vm521_vm2, %v6655_v31, -inf }
0x36b4   :  { %6662 = vmax.xlane.f32.xlu0 %v6661_v33 }
0x36b5   :  { %v6658_v56 = vsel %vm521_vm2, %v6650_v32, -inf }
0x36b6   :  { %6659 = vmax.xlane.f32.xlu1 %v6658_v56 }
0x373d   :  { %v6663_v10 = vpop.xlane.xlu0 %6662 }
0x373e   :  { %v6665_v28 = vsub.f32 %v6655_v31, %v6663_v10 }
0x373f   :  { %v6660_v53 = vpop.xlane.xlu1 %6659 }
0x3740   :  { %v6668_v46 = vmul.f32 1.442695, %v6665_v28  ;;  %v6664_v23 = vsub.f32 %v6650_v32, %v6660_v53 }
0x3742   :  { %10810 = vpow2.f32 %v6668_v46  ;;  %v6666_v36 = vmul.f32 1.442695, %v6664_v23 }
0x3744   :  { %10812 = vpow2.f32 %v6666_v36 }
0x374f   :  { %v10811_v26 = vpop.eup %10810 }
0x3750   :  { %v6673_v38 = vsel %vm521_vm2, %v10811_v26, 0.0 }
0x3751   :  { %v10813_v39 = vpop.eup %10812  ;;  %6674 = vadd.xlane.f32.xlu1 %v6673_v38 }
0x3752   :  { %v6670_v40 = vsel %vm521_vm2, %v10813_v39, 0.0 }
0x3753   :  { %6671 = vadd.xlane.f32.xlu0 %v6670_v40 }
0x3762   :  { %6680 = vrot.lane.b32.xlu1 %v12193_v37, %s11236_s16 }
0x3766   :  { %6935 = vrot.lane.b32.xlu1 %v12191_v2, %s11237_s30 }
0x3769   :  { %6682 = vrot.lane.b32.xlu0 %v12191_v2, %s11236_s16 }
0x376a   :  { %6929 = vrot.lane.b32.xlu1 %v12193_v37, %s11238_s19 }
0x376d   :  { %6933 = vrot.lane.b32.xlu0 %v12193_v37, %s11237_s30 }
0x376e   :  { %7218 = vrot.lane.b32.xlu1 %v12191_v2, %s11239_s9 }
0x3771   :  { %6931 = vrot.lane.b32.xlu0 %v12191_v2, %s11238_s19 }
0x3772   :  { %7212 = vrot.lane.b32.xlu1 %v12193_v37, %s11240_s18 }
0x3775   :  { %7216 = vrot.lane.b32.xlu0 %v12193_v37, %s11239_s9 }
0x3779   :  { %7214 = vrot.lane.b32.xlu0 %v12191_v2, %s11240_s18 }
0x37da   :  { %v6675_v62 = vpop.xlane.xlu1 %6674 }
0x37db   :  { %10814 = vrcp.f32 %v6675_v62 }
0x37dc   :  { %v6672_v41 = vpop.xlane.xlu0 %6671 }
0x37dd   :  { %10816 = vrcp.f32 %v6672_v41 }
0x37de   :  { %v6681_v17 = vpop.permute.xlu1 %6680 }
0x37e0   :  { %v6683_v63 = vpop.permute.xlu0 %6682 }
0x37e1   :  { %10399 = vmatprep.subr.mxu0 %v6683_v63 }
0x37e2   :  { %10400 = vmatpush3.msra.mxu0 %v6683_v63  ;;  %v6936_v48 = vpop.permute.xlu1 %6935 }
0x37e3   :  { %10401 = vmatprep.subr.mxu0 %v6681_v17 }
0x37e4   :  { %10402 = vmatpush3.msra.mxu0 %v6681_v17  ;;  %v6934_v0 = vpop.permute.xlu0 %6933  ;;  %v9437_v17 = vld [vmem:[%s12560_s3 + $0x30] sm:$0xff] }
0x37e5   :  { %10406 = vmatprep.subr.mxu0 %v9436_v42 }
0x37e6   :  { %v6930_v55 = vpop.permute.xlu1 %6929 }
0x37e8   :  { %v10815_v43 = vpop.eup %10814  ;;  %v6932_v1 = vpop.permute.xlu0 %6931 }
0x37e9   :  { %v6679_v47 = vmul.f32 %v10815_v43, %v10811_v26 }
0x37ea   :  { %v10817_v44 = vpop.eup %10816  ;;  %v7219_v61 = vpop.permute.xlu1 %7218 }
0x37eb   :  { %v6678_v45 = vmul.f32 %v10817_v44, %v10813_v39 }
0x37ec   :  { %v7217_v51 = vpop.permute.xlu0 %7216 }
0x37ed   :  { %10403 = vmatprep.mubr.msk.f32.mxu0 %vm521_vm2, %v6678_v45 }
0x37ee   :  { %10404 = vmatmul.mubr.msk.f32.vlgmr.msra.gmra.mxu0 %vm521_vm2, %v6679_v47  ;;  %v7213_v49 = vpop.permute.xlu1 %7212 }
0x37ef   :  { %10407 = vmatpush3.msra.mxu0 %v9436_v42  ;;  %v10415_v42 = vpop.f32.mrf.mxu1 }
0x37f0   :  { %10416 = vmatprep.subr.msk.mxu0 %vm437_vm1, %v6936_v48  ;;  %v7215_v54 = vpop.permute.xlu0 %7214 }
0x37f1   :  { %v6920_v43 = vpop.f32.mrf.mxu1 }
0x38ae   :  { %v10405_v58 = vpop.f32.mrf.mxu0 }
0x38b0   :  { %v6758_v59 = vpop.f32.mrf.mxu0 }
0x38b1   :  { %10408 = vmatprep.mubr.msk.f32.mxu0 %vm437_vm1, %v6758_v59 }
0x38b2   :  { %10409 = vmatmul.mubr.msk.f32.vlgmr.msra.gmra.mxu0 %vm437_vm1, %v10405_v58 }
0x38b3   :  { %10417 = vmatpush3.xpose.msk.msra.mxu0 %vm437_vm1, %v6936_v48  ;;  %10420 = vmatprep.mubr.msk.f32.mxu0 %vm437_vm1, %v6930_v55 }
0x38b4   :  { %10418 = vmatprep.subr.msk.mxu0 %vm437_vm1, %v6934_v0 }
0x38b7   :  { %10419 = vmatpush3.xpose.msk.msra.mxu0 %vm437_vm1, %v6934_v0 }
0x38b8   :  { %10435 = vmatprep.subr.msk.mxu0 %vm437_vm1, %v7219_v61 }
0x38ba   :  { %10421 = vmatmul.mubr.msk.f32.vlgmr.msra.gmra.mxu0 %vm437_vm1, %v6932_v1 }
0x38bb   :  { %10436 = vmatpush3.xpose.msk.msra.mxu0 %vm437_vm1, %v7219_v61  ;;  %10439 = vmatprep.mubr.msk.f32.mxu0 %vm437_vm1, %v7213_v49  ;;  %v9438_v61 = vld [vmem:[%s12560_s3 + $0x38] sm:$0xff] }
0x38bc   :  { %10437 = vmatprep.subr.msk.mxu0 %vm437_vm1, %v7217_v51 }
0x38bf   :  { %10438 = vmatpush3.xpose.msk.msra.mxu0 %vm437_vm1, %v7217_v51 }
0x38c2   :  { %10440 = vmatmul.mubr.msk.f32.vlgmr.msra.gmra.mxu0 %vm437_vm1, %v7215_v54 }
0x3972   :  { %v12285_v8 = vpop.f32.mrf.mxu0 }
0x3973   :  { %v6926_v1 = vadd.f32 %v10415_v42, %v12285_v8  ;;  %v9480_v8 = vld [vmem:[%s12561_s7 + $0x30] sm:$0xff]  ;;  %v9477_v42 = vld [vmem:[#allocation8 + $0x1] ss:$0 sm:$0xff] }
0x3974   :  { %v12287_v3 = vpop.f32.mrf.mxu0 }
0x3975   :  { %v6921_v51 = vadd.f32 %v6920_v43, %v12287_v3 }
0x397a   :  { %v10422_v4 = vpop.f32.mrf.mxu0 }
0x397b   :  { %v7017_v6 = vadd.f32 %v12208_v50, %v10422_v4 }
0x397c   :  { %v7011_v7 = vpop.f32.mrf.mxu0 }
0x397d   :  { %v7012_v11 = vadd.f32 %v12212_v25, %v7011_v7  ;;  %v7023_v14 = vsel %vm521_vm2, %v7017_v6, -inf }
0x397e   :  { %7024 = vmax.xlane.f32.xlu0 %v7023_v14  ;;  %v9481_v14 = vld [vmem:[%s12561_s7 + $0x38] sm:$0xff] }
0x397f   :  { %v7020_v16 = vsel %vm521_vm2, %v7012_v11, -inf  ;;  %10454 = vmatprep.subr.mxu0 %v9481_v14 }
0x3980   :  { %7021 = vmax.xlane.f32.xlu1 %v7020_v16  ;;  %10455 = vmatpush3.msra.mxu0 %v9481_v14 }
0x3981   :  { %10456 = vmatprep.subr.mxu0 %v9480_v8 }
0x3982   :  { %v10441_v13 = vpop.f32.mrf.mxu0  ;;  %10457 = vmatpush3.msra.mxu0 %v9480_v8 }
0x3983   :  { %v7300_v30 = vadd.f32 %v12208_v50, %v10441_v13 }
0x3984   :  { %v7294_v27 = vpop.f32.mrf.mxu0 }
0x3985   :  { %v7295_v29 = vadd.f32 %v12212_v25, %v7294_v27  ;;  %v7306_v57 = vsel %vm521_vm2, %v7300_v30, -inf }
0x3987   :  { %v7303_v31 = vsel %vm521_vm2, %v7295_v29, -inf }
0x3a07   :  { %v7025_v15 = vpop.xlane.xlu0 %7024 }
0x3a08   :  { %v7027_v18 = vsub.f32 %v7017_v6, %v7025_v15 }
0x3a09   :  { %v7022_v22 = vpop.xlane.xlu1 %7021 }
0x3a0a   :  { %v7030_v52 = vmul.f32 1.442695, %v7027_v18  ;;  %v7026_v60 = vsub.f32 %v7012_v11, %v7022_v22  ;;  %v9475_v18 = vld [vmem:[%s12562_s10 + $0x1] ss:$0 sm:$0xff] }
0x3a0c   :  { %10818 = vpow2.f32 %v7030_v52  ;;  %v7028_v20 = vmul.f32 1.442695, %v7026_v60 }
0x3a0e   :  { %10820 = vpow2.f32 %v7028_v20 }
0x3a19   :  { %v10819_v21 = vpop.eup %10818 }
0x3a1a   :  { %v7035_v9 = vsel %vm521_vm2, %v10819_v21, 0.0 }
0x3a1b   :  { %v10821_v12 = vpop.eup %10820  ;;  %7036 = vadd.xlane.f32.xlu1 %v7035_v9 }
0x3a1c   :  { %v7032_v24 = vsel %vm521_vm2, %v10821_v12, 0.0 }
0x3a1d   :  { %7033 = vadd.xlane.f32.xlu0 %v7032_v24  ;;  %v9478_v24 = vld [vmem:[%s12561_s7 + $0x20] sm:$0xff] }
0x3a2c   :  { %7042 = vrot.lane.b32.xlu1 %v12193_v37, %s11241_s22 }
0x3a33   :  { %7044 = vrot.lane.b32.xlu0 %v12191_v2, %s11241_s22 }
0x3a50   :  { %7304 = vmax.xlane.f32.xlu1 %v7303_v31 }
0x3a52   :  { %7307 = vmax.xlane.f32.xlu0 %v7306_v57 }
0x3aa4   :  { %v7037_v32 = vpop.xlane.xlu1 %7036 }
0x3aa5   :  { %10822 = vrcp.f32 %v7037_v32 }
0x3aa6   :  { %v7034_v33 = vpop.xlane.xlu0 %7033 }
0x3aa7   :  { %10824 = vrcp.f32 %v7034_v33 }
0x3aa8   :  { %v7043_v10 = vpop.permute.xlu1 %7042 }
0x3aaa   :  { %v7045_v56 = vpop.permute.xlu0 %7044 }
0x3aab   :  { %10423 = vmatprep.subr.mxu1 %v7045_v56 }
0x3aac   :  { %10424 = vmatpush3.msra.mxu1 %v7045_v56 }
0x3aad   :  { %10425 = vmatprep.subr.mxu1 %v7043_v10 }
0x3aae   :  { %10426 = vmatpush3.msra.mxu1 %v7043_v10 }
0x3aaf   :  { %10430 = vmatprep.subr.mxu1 %v9437_v17 }
0x3ab2   :  { %v10823_v28 = vpop.eup %10822 }
0x3ab3   :  { %v7041_v50 = vmul.f32 %v10823_v28, %v10819_v21  ;;  %v9486_v28 = vld [vmem:[#allocation10 + $0x1] ss:$0 sm:$0xff] }
0x3ab4   :  { %v10825_v25 = vpop.eup %10824 }
0x3ab5   :  { %v7040_v53 = vmul.f32 %v10825_v25, %v10821_v12  ;;  %v9479_v12 = vld [vmem:[%s12561_s7 + $0x28] sm:$0xff] }
0x3ab6   :  { %10458 = vmatprep.subr.mxu0 %v9479_v12 }
0x3ab7   :  { %10427 = vmatprep.mubr.msk.f32.mxu1 %vm521_vm2, %v7040_v53  ;;  %10459 = vmatpush3.msra.mxu0 %v9479_v12 }
0x3ab8   :  { %10428 = vmatmul.mubr.msk.f32.vlgmr.msra.gmra.mxu1 %vm521_vm2, %v7041_v50  ;;  %10460 = vmatprep.subr.mxu0 %v9478_v24 }
0x3ab9   :  { %10431 = vmatpush3.msra.mxu1 %v9437_v17  ;;  %10461 = vmatpush3.msra.mxu0 %v9478_v24 }
0x3ad9   :  { %v7305_v46 = vpop.xlane.xlu1 %7304 }
0x3ada   :  { %v7309_v23 = vsub.f32 %v7295_v29, %v7305_v46 }
0x3adb   :  { %v7308_v36 = vpop.xlane.xlu0 %7307 }
0x3adc   :  { %v7311_v26 = vmul.f32 1.442695, %v7309_v23  ;;  %v7310_v38 = vsub.f32 %v7300_v30, %v7308_v36 }
0x3ade   :  { %10826 = vpow2.f32 %v7311_v26  ;;  %v7313_v39 = vmul.f32 1.442695, %v7310_v38 }
0x3ae0   :  { %10828 = vpow2.f32 %v7313_v39 }
0x3aeb   :  { %v10827_v40 = vpop.eup %10826 }
0x3aec   :  { %v7315_v62 = vsel %vm521_vm2, %v10827_v40, 0.0 }
0x3aed   :  { %v10829_v41 = vpop.eup %10828  ;;  %7316 = vadd.xlane.f32.xlu0 %v7315_v62 }
0x3aee   :  { %v7318_v63 = vsel %vm521_vm2, %v10829_v41, 0.0 }
0x3aef   :  { %7319 = vadd.xlane.f32.xlu1 %v7318_v63 }
0x3b00   :  { %7325 = vrot.lane.b32.xlu1 %v12193_v37, %s11242_s23 }
0x3b03   :  { %7327 = vrot.lane.b32.xlu0 %v12191_v2, %s11242_s23 }
0x3b76   :  { %v7317_v44 = vpop.xlane.xlu0 %7316 }
0x3b77   :  { %10830 = vrcp.f32 %v7317_v44 }
0x3b78   :  { %v10429_v45 = vpop.f32.mrf.mxu1  ;;  %v7320_v47 = vpop.xlane.xlu1 %7319 }
0x3b79   :  { %10832 = vrcp.f32 %v7320_v47 }
0x3b7a   :  { %v7120_v48 = vpop.f32.mrf.mxu1  ;;  %v7328_v55 = vpop.permute.xlu0 %7327 }
0x3b7b   :  { %10432 = vmatprep.mubr.msk.f32.mxu1 %vm437_vm1, %v7120_v48  ;;  %10442 = vmatprep.subr.mxu1 %v7328_v55 }
0x3b7c   :  { %10433 = vmatmul.mubr.msk.f32.vlgmr.msra.gmra.mxu1 %vm437_vm1, %v10429_v45  ;;  %v7326_v58 = vpop.permute.xlu1 %7325 }
0x3b7d   :  { %10443 = vmatpush3.msra.mxu1 %v7328_v55 }
0x3b7e   :  { %10444 = vmatprep.subr.mxu1 %v7326_v58 }
0x3b7f   :  { %10445 = vmatpush3.msra.mxu1 %v7326_v58 }
0x3b80   :  { %10449 = vmatprep.subr.mxu1 %v9438_v61 }
0x3b84   :  { %v10831_v2 = vpop.eup %10830 }
0x3b85   :  { %v7323_v37 = vmul.f32 %v10831_v2, %v10827_v40  ;;  %v9476_v40 = vld [vmem:[#allocation7 + $0x1] ss:$0 sm:$0xff] }
0x3b86   :  { %v10833_v0 = vpop.eup %10832 }
0x3b87   :  { %10446 = vmatprep.mubr.msk.f32.mxu1 %vm521_vm2, %v7323_v37  ;;  %v7324_v59 = vmul.f32 %v10833_v0, %v10829_v41 }
0x3b89   :  { %10447 = vmatmul.mubr.msk.f32.vlgmr.msra.gmra.mxu1 %vm521_vm2, %v7324_v59 }
0x3b8a   :  { %10450 = vmatpush3.msra.mxu1 %v9438_v61 }
0x3c3c   :  { %v10434_v49 = vpop.f32.mrf.mxu1 }
0x3c3d   :  { %v7211_v54 = vadd.f32 %v10434_v49, %v6926_v1  ;;  %v12370_v1 = vld [vmem:[%s12563_s11 + $0x8] sm:$0xff] }
0x3c3e   :  { %v7201_v4 = vpop.f32.mrf.mxu1 }
0x3c3f   :  { %v7210_v6 = vadd.f32 %v7201_v4, %v6921_v51 }
0x3c49   :  { %v10448_v7 = vpop.f32.mrf.mxu1 }
0x3c4b   :  { %v7403_v11 = vpop.f32.mrf.mxu1 }
0x3c4c   :  { %10451 = vmatprep.mubr.msk.f32.mxu1 %vm437_vm1, %v7403_v11 }
0x3c4d   :  { %10452 = vmatmul.mubr.msk.f32.vlgmr.msra.gmra.mxu1 %vm437_vm1, %v10448_v7 }
0x3c4e   :  { %10473 = vmatprep.mubr.msk.f32.mxu1 %vm349_vm0, %v12006_v35 }
0x3d0d   :  { %v10453_v3 = vpop.f32.mrf.mxu1 }
0x3d0e   :  { %v7494_v16 = vadd.f32 %v10453_v3, %v7211_v54  ;;  %v12374_v54 = vld [vmem:[%s12563_s11] sm:$0xff] }
0x3d0f   :  { %v7484_v15 = vpop.f32.mrf.mxu1 }
0x3d10   :  { %v7496_v22 = vadd.f32 %v7494_v16, %v12184_v5  ;;  %v7493_v52 = vadd.f32 %v7484_v15, %v7210_v6 }
0x3d12   :  { %v7495_v60 = vadd.f32 %v7493_v52, %v12182_v19  ;;  %v7504_v20 = vadd.f32 %v9475_v18, %v7496_v22 }
0x3d14   :  { %v7508_v35 = vsel %vm349_vm0, %v7504_v20, 0.0  ;;  %v7503_v21 = vadd.f32 %v9475_v18, %v7495_v60 }
0x3d15   :  { %7509 = vadd.xlane.f32.xlu0 %v7508_v35 }
0x3d16   :  { %v7505_v9 = vsel %vm349_vm0, %v7503_v21, 0.0 }
0x3d17   :  { %7506 = vadd.xlane.f32.xlu1 %v7505_v9 }
0x3d28   :  { %7660 = vrot.lane.b32.xlu1 %v9480_v8, %s11233_s6 }
0x3d2b   :  { %7662 = vrot.lane.b32.xlu0 %v9481_v14, %s11233_s6 }
0x3d9e   :  { %v7510_v5 = vpop.xlane.xlu0 %7509 }
0x3d9f   :  { %v7512_v19 = vmul.f32 0.03125, %v7510_v5 }
0x3da0   :  { %v7507_v13 = vpop.xlane.xlu1 %7506 }
0x3da1   :  { %v7514_v27 = vsub.f32 %v7504_v20, %v7512_v19  ;;  %v7511_v29 = vmul.f32 0.03125, %v7507_v13 }
0x3da2   :  { %v7663_v30 = vpop.permute.xlu0 %7662 }
0x3da3   :  { %v7513_v31 = vsub.f32 %v7503_v21, %v7511_v29  ;;  %v7516_v57 = vmul.f32 %v7514_v27, %v7514_v27  ;;  %10465 = vmatprep.subr.mxu1 %v7663_v30 }
0x3da4   :  { %10466 = vmatpush3.msra.mxu1 %v7663_v30  ;;  %v7661_v32 = vpop.permute.xlu1 %7660 }
0x3da5   :  { %v7520_v33 = vsel %vm349_vm0, %v7516_v57, 0.0  ;;  %v7515_v56 = vmul.f32 %v7513_v31, %v7513_v31  ;;  %10467 = vmatprep.subr.mxu1 %v7661_v32 }
0x3da6   :  { %7521 = vadd.xlane.f32.xlu1 %v7520_v33  ;;  %10468 = vmatpush3.msra.mxu1 %v7661_v32 }
0x3da7   :  { %v7517_v10 = vsel %vm349_vm0, %v7515_v56, 0.0 }
0x3da8   :  { %7518 = vadd.xlane.f32.xlu0 %v7517_v10 }
0x3db7   :  { %7658 = vrot.lane.b32.xlu1 %v9479_v12, %s11233_s6 }
0x3dbb   :  { %7668 = vrot.lane.b32.xlu1 %v9486_v28, %s11233_s6 }
0x3dbe   :  { %7656 = vrot.lane.b32.xlu0 %v9478_v24, %s11233_s6 }
0x3e2f   :  { %v7522_v25 = vpop.xlane.xlu1 %7521 }
0x3e30   :  { %v7524_v53 = vmul.f32 0.03125, %v7522_v25 }
0x3e31   :  { %v7519_v50 = vpop.xlane.xlu0 %7518 }
0x3e32   :  { %v7526_v46 = vadd.f32 1e-05, %v7524_v53  ;;  %v7523_v23 = vmul.f32 0.03125, %v7519_v50 }
0x3e33   :  { %v7659_v36 = vpop.permute.xlu1 %7658 }
0x3e34   :  { %10834 = vrsqrt.f32 %v7526_v46  ;;  %v7525_v26 = vadd.f32 1e-05, %v7523_v23  ;;  %10469 = vmatprep.subr.mxu1 %v7659_v36 }
0x3e35   :  { %v7657_v38 = vpop.permute.xlu0 %7656  ;;  %10470 = vmatpush3.msra.mxu1 %v7659_v36 }
0x3e36   :  { %10836 = vrsqrt.f32 %v7525_v26  ;;  %10471 = vmatprep.subr.mxu1 %v7657_v38 }
0x3e37   :  { %10472 = vmatpush3.msra.mxu1 %v7657_v38  ;;  %v7669_v47 = vpop.permute.xlu1 %7668 }
0x3e38   :  { %10474 = vmatmul.mubr.msk.f32.vlgmr.msra.gmra.mxu1 %vm349_vm0, %v12003_v34 }
0x3e41   :  { %v10835_v39 = vpop.eup %10834 }
0x3e42   :  { %v7530_v62 = vmul.f32 %v10835_v39, %v7514_v27 }
0x3e43   :  { %v10837_v41 = vpop.eup %10836 }
0x3e44   :  { %v7529_v63 = vmul.f32 %v10837_v41, %v7513_v31  ;;  %v7538_v17 = vmul.f32 %v9476_v40, %v7530_v62  ;;  %v9482_v31 = vld [vmem:[%s12564_s17 + $0x20] sm:$0xff] }
0x3e46   :  { %v7537_v43 = vmul.f32 %v9476_v40, %v7529_v63  ;;  %v12343_v45 = vadd.f32 %v9477_v42, %v7538_v17 }
0x3e48   :  { %v12341_v44 = vadd.f32 %v9477_v42, %v7537_v43 }
0x3e4a   :  { %10462 = vmatprep.mubr.msk.f32.mxu0 %vm349_vm0, %v12341_v44 }
0x3e4b   :  { %10463 = vmatmul.mubr.msk.f32.vlgmr.msra.gmra.mxu0 %vm349_vm0, %v12343_v45 }
0x3ef8   :  { %v10475_v34 = vpop.f32.mrf.mxu1 }
0x3ef9   :  { %v12349_v48 = vadd.f32 %v10475_v34, %v7669_v47 }
0x3efa   :  { %v7737_v55 = vpop.f32.mrf.mxu1 }
0x3efb   :  { %v12351_v58 = vadd.f32 %v7737_v55, %v7669_v47  ;;  %10476 = vmatprep.subr.msk.mxu0 %vm437_vm1, %v12349_v48  ;;  %v9483_v47 = vld [vmem:[%s12564_s17 + $0x28] sm:$0xff] }
0x3efc   :  { %10477 = vmatpush3.xpose.msk.msra.mxu0 %vm437_vm1, %v12349_v48 }
0x3efd   :  { %10478 = vmatprep.subr.msk.mxu0 %vm437_vm1, %v12351_v58 }
0x3f00   :  { %10479 = vmatpush3.xpose.msk.msra.mxu0 %vm437_vm1, %v12351_v58 }
0x3f0b   :  { %v10464_v2 = vpop.f32.mrf.mxu0 }
0x3f0c   :  { %v12363_v59 = vadd.f32 %v10464_v2, %v9486_v28 }
0x3f0d   :  { %v7643_v37 = vpop.f32.mrf.mxu0 }
0x3f0e   :  { %v12361_v0 = vadd.f32 %v9486_v28, %v7643_v37 }
0x3f10   :  { %10480 = vmatprep.mubr.msk.f32.mxu0 %vm437_vm1, %v12361_v0 }
0x3f11   :  { %10481 = vmatmul.mubr.msk.f32.vlgmr.msra.gmra.mxu0 %vm437_vm1, %v12363_v59 }
0x3fd1   :  { %v10482_v61 = vpop.f32.mrf.mxu0 }
0x3fd2   :  { %v7830_v49 = vadd.f32 %v12370_v1, %v10482_v61 }
0x3fd3   :  { %v7824_v51 = vpop.f32.mrf.mxu0 }
0x3fd4   :  { %v7825_v4 = vadd.f32 %v12374_v54, %v7824_v51  ;;  %v7836_v6 = vsel %vm521_vm2, %v7830_v49, -inf }
0x3fd5   :  { %7837 = vmax.xlane.f32.xlu1 %v7836_v6 }
0x3fd6   :  { %v7833_v7 = vsel %vm521_vm2, %v7825_v4, -inf }
0x3fd7   :  { %7834 = vmax.xlane.f32.xlu0 %v7833_v7 }
0x3fe6   :  { %7857 = vrot.lane.b32.xlu1 %v12349_v48, %s11233_s6 }
0x3fea   :  { %7948 = vrot.lane.b32.xlu1 %v12349_v48, %s11234_s20 }
0x3fee   :  { %7946 = vrot.lane.b32.xlu1 %v12351_v58, %s11234_s20 }
0x3ff2   :  { %7944 = vrot.lane.b32.xlu1 %v12363_v59, %s11234_s20 }
0x405e   :  { %v7838_v11 = vpop.xlane.xlu1 %7837 }
0x405f   :  { %v7840_v14 = vsub.f32 %v7830_v49, %v7838_v11 }
0x4060   :  { %v7835_v8 = vpop.xlane.xlu0 %7834 }
0x4061   :  { %v7843_v3 = vmul.f32 1.442695, %v7840_v14  ;;  %v7839_v16 = vsub.f32 %v7825_v4, %v7835_v8 }
0x4062   :  { %v7858_v15 = vpop.permute.xlu1 %7857 }
0x4063   :  { %10838 = vpow2.f32 %v7843_v3  ;;  %v7841_v18 = vmul.f32 1.442695, %v7839_v16  ;;  %10483 = vmatprep.subr.mxu1 %v7858_v15 }
0x4064   :  { %10484 = vmatpush3.msra.mxu1 %v7858_v15 }
0x4065   :  { %10840 = vpow2.f32 %v7841_v18 }
0x4066   :  { %v7949_v12 = vpop.permute.xlu1 %7948 }
0x406a   :  { %v7947_v29 = vpop.permute.xlu1 %7946 }
0x406e   :  { %v7945_v30 = vpop.permute.xlu1 %7944 }
0x4070   :  { %v10839_v22 = vpop.eup %10838 }
0x4071   :  { %v7848_v52 = vsel %vm521_vm2, %v10839_v22, 0.0 }
0x4072   :  { %v10841_v60 = vpop.eup %10840  ;;  %7849 = vadd.xlane.f32.xlu0 %v7848_v52 }
0x4073   :  { %v7845_v20 = vsel %vm521_vm2, %v10841_v60, 0.0 }
0x4076   :  { %7846 = vadd.xlane.f32.xlu0 %v7845_v20 }
0x408c   :  { %7855 = vrot.lane.b32.xlu0 %v12351_v58, %s11233_s6 }
0x4090   :  { %7942 = vrot.lane.b32.xlu0 %v12361_v0, %s11234_s20 }
0x40fb   :  { %v7850_v35 = vpop.xlane.xlu0 %7849 }
0x40fc   :  { %10842 = vrcp.f32 %v7850_v35 }
0x40ff   :  { %v7847_v21 = vpop.xlane.xlu0 %7846 }
0x4100   :  { %10844 = vrcp.f32 %v7847_v21 }
0x4103   :  { %v7856_v9 = vpop.permute.xlu0 %7855 }
0x4104   :  { %10485 = vmatprep.subr.mxu1 %v7856_v9 }
0x4105   :  { %10486 = vmatpush3.msra.mxu1 %v7856_v9 }
0x4106   :  { %10490 = vmatprep.subr.msk.mxu1 %vm437_vm1, %v7949_v12 }
0x4107   :  { %v7943_v27 = vpop.permute.xlu0 %7942 }
0x4109   :  { %v10843_v24 = vpop.eup %10842 }
0x410a   :  { %v7854_v13 = vmul.f32 %v10843_v24, %v10839_v22 }
0x410d   :  { %v10845_v5 = vpop.eup %10844 }
0x410e   :  { %v7853_v19 = vmul.f32 %v10845_v5, %v10841_v60 }
0x4110   :  { %10487 = vmatprep.mubr.msk.f32.mxu1 %vm521_vm2, %v7853_v19 }
0x4111   :  { %10488 = vmatmul.mubr.msk.f32.vlgmr.msra.gmra.mxu1 %vm521_vm2, %v7854_v13 }
0x4112   :  { %10491 = vmatpush3.xpose.msk.msra.mxu1 %vm437_vm1, %v7949_v12  ;;  %10494 = vmatprep.mubr.msk.f32.mxu1 %vm437_vm1, %v7943_v27 }
0x4113   :  { %10492 = vmatprep.subr.msk.mxu1 %vm437_vm1, %v7947_v29 }
0x4116   :  { %10493 = vmatpush3.xpose.msk.msra.mxu1 %vm437_vm1, %v7947_v29 }
0x4117   :  { %10509 = vmatprep.subr.mxu1 %v9482_v31 }
0x4119   :  { %10495 = vmatmul.mubr.msk.f32.vlgmr.msra.gmra.mxu1 %vm437_vm1, %v7945_v30 }
0x411a   :  { %10510 = vmatpush3.msra.mxu1 %v9482_v31 }
0x41d1   :  { %v10489_v57 = vpop.f32.mrf.mxu1 }
0x41d3   :  { %v7933_v32 = vpop.f32.mrf.mxu1 }
0x41d4   :  { %10511 = vmatprep.mubr.msk.f32.mxu1 %vm437_vm1, %v7933_v32 }
0x41d5   :  { %10512 = vmatmul.mubr.msk.f32.vlgmr.msra.gmra.mxu1 %vm437_vm1, %v10489_v57 }
0x41d9   :  { %v10496_v33 = vpop.f32.mrf.mxu1 }
0x41da   :  { %v8030_v56 = vadd.f32 %v12370_v1, %v10496_v33 }
0x41db   :  { %v8024_v10 = vpop.f32.mrf.mxu1 }
0x41dc   :  { %v8025_v28 = vadd.f32 %v12374_v54, %v8024_v10  ;;  %v8036_v25 = vsel %vm521_vm2, %v8030_v56, -inf }
0x41dd   :  { %8037 = vmax.xlane.f32.xlu1 %v8036_v25 }
0x41de   :  { %v8033_v53 = vsel %vm521_vm2, %v8025_v28, -inf }
0x41df   :  { %8034 = vmax.xlane.f32.xlu0 %v8033_v53 }
0x41ee   :  { %8057 = vrot.lane.b32.xlu1 %v12349_v48, %s11232_s8 }
0x41f2   :  { %8310 = vrot.lane.b32.xlu1 %v12349_v48, %s11238_s19 }
0x41f6   :  { %8308 = vrot.lane.b32.xlu1 %v12351_v58, %s11238_s19 }
0x41fa   :  { %8306 = vrot.lane.b32.xlu1 %v12363_v59, %s11238_s19 }
0x41fe   :  { %8591 = vrot.lane.b32.xlu1 %v12351_v58, %s11240_s18 }
0x4202   :  { %8589 = vrot.lane.b32.xlu1 %v12363_v59, %s11240_s18 }
0x4266   :  { %v8038_v50 = vpop.xlane.xlu1 %8037 }
0x4267   :  { %v8040_v46 = vsub.f32 %v8030_v56, %v8038_v50 }
0x4268   :  { %v8035_v23 = vpop.xlane.xlu0 %8034 }
0x4269   :  { %v8043_v36 = vmul.f32 1.442695, %v8040_v46  ;;  %v8039_v26 = vsub.f32 %v8025_v28, %v8035_v23 }
0x426a   :  { %v8058_v38 = vpop.permute.xlu1 %8057 }
0x426b   :  { %10846 = vpow2.f32 %v8043_v36  ;;  %v8041_v39 = vmul.f32 1.442695, %v8039_v26  ;;  %10497 = vmatprep.subr.mxu0 %v8058_v38  ;;  %v9484_v36 = vld [vmem:[%s12564_s17 + $0x30] sm:$0xff] }
0x426c   :  { %10498 = vmatpush3.msra.mxu0 %v8058_v38 }
0x426d   :  { %10848 = vpow2.f32 %v8041_v39 }
0x426e   :  { %v8311_v59 = vpop.permute.xlu1 %8310 }
0x4272   :  { %v8309_v49 = vpop.permute.xlu1 %8308 }
0x4276   :  { %v8307_v6 = vpop.permute.xlu1 %8306 }
0x4278   :  { %v10847_v40 = vpop.eup %10846 }
0x4279   :  { %v8048_v62 = vsel %vm521_vm2, %v10847_v40, 0.0 }
0x427a   :  { %v10849_v41 = vpop.eup %10848  ;;  %8049 = vadd.xlane.f32.xlu0 %v8048_v62  ;;  %v8592_v11 = vpop.permute.xlu1 %8591 }
0x427b   :  { %v8045_v63 = vsel %vm521_vm2, %v10849_v41, 0.0 }
0x427e   :  { %8046 = vadd.xlane.f32.xlu0 %v8045_v63  ;;  %v8590_v14 = vpop.permute.xlu1 %8589 }
0x4294   :  { %8055 = vrot.lane.b32.xlu0 %v12351_v58, %s11232_s8  ;;  %s11243_s8 = smov [#allocation23]  }
0x4295   :  { %s9171_s6 = sshll.u32 %s11243_s8, 4  ;;  %s9172_s6 = int_to_ptr.vmem [resolvable:$true] %s9171_s6 }
0x4296   :  { %s11144_s20 = scalar_lea.vmem %s9172_s6, 256  ;;  %p11149_p10 = scmp.lt.s32.totalorder %s9172_s6, %s9172_s6 }
0x4297   :  { %p11145_p9 = scmp.ne.s32.totalorder %s9172_s6, %s11144_s20  ;;  %p11150_p11 = scmp.lt.s32.totalorder %s11144_s20, %s11144_s20 }
0x4298   :  { %8304 = vrot.lane.b32.xlu0 %v12361_v0, %s11238_s19 }
0x4299   :  { %p11151_p12 = por %p11150_p11, %p11149_p10 }
0x429b   :  { %p11152_p13 = pnand %p11151_p12, %p11145_p9 }
0x429c   :  { %8593 = vrot.lane.b32.xlu0 %v12349_v48, %s11240_s18 }
0x42a0   :  { %8587 = vrot.lane.b32.xlu0 %v12361_v0, %s11240_s18 }
0x4303   :  { %v8050_v17 = vpop.xlane.xlu0 %8049 }
0x4304   :  { %10850 = vrcp.f32 %v8050_v17 }
0x4307   :  { %v8047_v42 = vpop.xlane.xlu0 %8046 }
0x4308   :  { %10852 = vrcp.f32 %v8047_v42 }
0x430b   :  { %v8056_v43 = vpop.permute.xlu0 %8055 }
0x430c   :  { %10499 = vmatprep.subr.mxu0 %v8056_v43 }
0x430d   :  { %10500 = vmatpush3.msra.mxu0 %v8056_v43  ;;  %v10513_v43 = vpop.f32.mrf.mxu1 }
0x430e   :  { %10504 = vmatprep.subr.mxu0 %v9483_v47 }
0x430f   :  { %v8305_v0 = vpop.permute.xlu0 %8304 }
0x4311   :  { %v10851_v34 = vpop.eup %10850 }
0x4312   :  { %v8054_v37 = vmul.f32 %v10851_v34, %v10847_v40 }
0x4313   :  { %v8594_v4 = vpop.permute.xlu0 %8593 }
0x4315   :  { %v10853_v55 = vpop.eup %10852 }
0x4316   :  { %v8053_v2 = vmul.f32 %v10853_v55, %v10849_v41 }
0x4317   :  { %v8588_v7 = vpop.permute.xlu0 %8587 }
0x4318   :  { %10501 = vmatprep.mubr.msk.f32.mxu0 %vm521_vm2, %v8053_v2 }
0x4319   :  { %10502 = vmatmul.mubr.msk.f32.vlgmr.msra.gmra.mxu0 %vm521_vm2, %v8054_v37 }
0x431a   :  { %10505 = vmatpush3.msra.mxu0 %v9483_v47  ;;  %v8295_v47 = vpop.f32.mrf.mxu1 }
0x431b   :  { %10514 = vmatprep.subr.msk.mxu0 %vm437_vm1, %v8311_v59 }
0x43d9   :  { %v10503_v61 = vpop.f32.mrf.mxu0 }
0x43db   :  { %v8133_v51 = vpop.f32.mrf.mxu0 }
0x43dc   :  { %10506 = vmatprep.mubr.msk.f32.mxu0 %vm437_vm1, %v8133_v51 }
0x43dd   :  { %10507 = vmatmul.mubr.msk.f32.vlgmr.msra.gmra.mxu0 %vm437_vm1, %v10503_v61 }
0x43de   :  { %10515 = vmatpush3.xpose.msk.msra.mxu0 %vm437_vm1, %v8311_v59  ;;  %10518 = vmatprep.mubr.msk.f32.mxu0 %vm437_vm1, %v8305_v0 }
0x43df   :  { %10516 = vmatprep.subr.msk.mxu0 %vm437_vm1, %v8309_v49 }
0x43e2   :  { %10517 = vmatpush3.xpose.msk.msra.mxu0 %vm437_vm1, %v8309_v49  ;;  %v9485_v49 = vld [vmem:[%s12564_s17 + $0x38] sm:$0xff] }
0x43e3   :  { %10533 = vmatprep.subr.msk.mxu0 %vm437_vm1, %v8594_v4 }
0x43e5   :  { %10519 = vmatmul.mubr.msk.f32.vlgmr.msra.gmra.mxu0 %vm437_vm1, %v8307_v6 }
0x43e6   :  { %10534 = vmatpush3.xpose.msk.msra.mxu0 %vm437_vm1, %v8594_v4  ;;  %10537 = vmatprep.mubr.msk.f32.mxu0 %vm437_vm1, %v8588_v7 }
0x43e7   :  { %10535 = vmatprep.subr.msk.mxu0 %vm437_vm1, %v8592_v11 }
0x43ea   :  { %10536 = vmatpush3.xpose.msk.msra.mxu0 %vm437_vm1, %v8592_v11 }
0x43ed   :  { %10538 = vmatmul.mubr.msk.f32.vlgmr.msra.gmra.mxu0 %vm437_vm1, %v8590_v14 }
0x449d   :  { %v12447_v8 = vpop.f32.mrf.mxu0 }
0x449e   :  { %v8301_v51 = vadd.f32 %v10513_v43, %v12447_v8  ;;  %v9529_v43 = vld [vmem:[%s12565_s24 + $0x58] sm:$0xff] }
0x449f   :  { %v12449_v3 = vpop.f32.mrf.mxu0 }
0x44a0   :  { %v8296_v6 = vadd.f32 %v8295_v47, %v12449_v3  ;;  %v9528_v47 = vld [vmem:[%s12565_s24 + $0x50] sm:$0xff] }
0x44a5   :  { %v10520_v16 = vpop.f32.mrf.mxu0 }
0x44a6   :  { %v8392_v15 = vadd.f32 %v12370_v1, %v10520_v16 }
0x44a7   :  { %v8386_v18 = vpop.f32.mrf.mxu0 }
0x44a8   :  { %v8387_v22 = vadd.f32 %v12374_v54, %v8386_v18  ;;  %v8398_v52 = vsel %vm521_vm2, %v8392_v15, -inf }
0x44a9   :  { %8399 = vmax.xlane.f32.xlu1 %v8398_v52 }
0x44aa   :  { %v8395_v60 = vsel %vm521_vm2, %v8387_v22, -inf }
0x44ab   :  { %8396 = vmax.xlane.f32.xlu0 %v8395_v60  ;;  %v9523_v60 = vld [vmem:[#allocation11 + $0x1] ss:$0 sm:$0xff] }
0x44ad   :  { %v10539_v20 = vpop.f32.mrf.mxu0 }
0x44ae   :  { %v8675_v28 = vadd.f32 %v12370_v1, %v10539_v20 }
0x44af   :  { %v8669_v35 = vpop.f32.mrf.mxu0 }
0x44b0   :  { %v8670_v21 = vadd.f32 %v12374_v54, %v8669_v35  ;;  %v8681_v53 = vsel %vm521_vm2, %v8675_v28, -inf }
0x44b2   :  { %v8678_v9 = vsel %vm521_vm2, %v8670_v21, -inf }
0x44ba   :  { %8419 = vrot.lane.b32.xlu1 %v12349_v48, %s11237_s30 }
0x44de   :  { %8679 = vmax.xlane.f32.xlu1 %v8678_v9 }
0x4532   :  { %v8400_v12 = vpop.xlane.xlu1 %8399 }
0x4533   :  { %v8402_v24 = vsub.f32 %v8392_v15, %v8400_v12 }
0x4534   :  { %v8397_v5 = vpop.xlane.xlu0 %8396 }
0x4535   :  { %v8405_v19 = vmul.f32 1.442695, %v8402_v24  ;;  %v8401_v13 = vsub.f32 %v8387_v22, %v8397_v5 }
0x4536   :  { %v8420_v27 = vpop.permute.xlu1 %8419 }
0x4537   :  { %10854 = vpow2.f32 %v8405_v19  ;;  %v8403_v29 = vmul.f32 1.442695, %v8401_v13  ;;  %10521 = vmatprep.subr.mxu1 %v8420_v27 }
0x4538   :  { %10522 = vmatpush3.msra.mxu1 %v8420_v27 }
0x4539   :  { %10856 = vpow2.f32 %v8403_v29 }
0x4544   :  { %v10855_v30 = vpop.eup %10854 }
0x4545   :  { %v8410_v31 = vsel %vm521_vm2, %v10855_v30, 0.0 }
0x4546   :  { %v10857_v57 = vpop.eup %10856  ;;  %8411 = vadd.xlane.f32.xlu0 %v8410_v31 }
0x4547   :  { %v8407_v54 = vsel %vm521_vm2, %v10857_v57, 0.0 }
0x454a   :  { %8408 = vadd.xlane.f32.xlu0 %v8407_v54  ;;  %v8925_v54 = vld [vmem:[#allocation16 + $0x30] sm:$0xff] }
0x4560   :  { %8417 = vrot.lane.b32.xlu0 %v12351_v58, %s11237_s30 }
0x4567   :  { %v8680_v32 = vpop.xlane.xlu1 %8679 }
0x4568   :  { %v8684_v33 = vsub.f32 %v8670_v21, %v8680_v32  ;;  %v8924_v32 = vld [vmem:[#allocation16 + $0x28] sm:$0xff] }
0x456a   :  { %v8686_v56 = vmul.f32 1.442695, %v8684_v33  ;;  %v8923_v33 = vld [vmem:[#allocation16 + $0x20] sm:$0xff] }
0x456c   :  { %10858 = vpow2.f32 %v8686_v56  ;;  %v9533_v56 = vld [vmem:[%s12565_s24 + $0x78] sm:$0xff] }
0x4579   :  { %v10859_v10 = vpop.eup %10858 }
0x457a   :  { %v8690_v25 = vsel %vm521_vm2, %v10859_v10, 0.0 }
0x457b   :  { %8691 = vadd.xlane.f32.xlu1 %v8690_v25  ;;  %v9530_v25 = vld [vmem:[%s12565_s24 + $0x60] sm:$0xff] }
0x457f   :  { %8682 = vmax.xlane.f32.xlu0 %v8681_v53 }
0x458c   :  { %8702 = vrot.lane.b32.xlu1 %v12349_v48, %s11239_s9 }
0x45cf   :  { %v8412_v50 = vpop.xlane.xlu0 %8411 }
0x45d0   :  { %10860 = vrcp.f32 %v8412_v50 }
0x45d3   :  { %v8409_v46 = vpop.xlane.xlu0 %8408 }
0x45d4   :  { %10862 = vrcp.f32 %v8409_v46 }
0x45d7   :  { %v8418_v23 = vpop.permute.xlu0 %8417 }
0x45d8   :  { %10523 = vmatprep.subr.mxu1 %v8418_v23 }
0x45d9   :  { %10524 = vmatpush3.msra.mxu1 %v8418_v23 }
0x45da   :  { %10528 = vmatprep.subr.mxu1 %v9484_v36 }
0x45dd   :  { %v10861_v26 = vpop.eup %10860 }
0x45de   :  { %v8416_v39 = vmul.f32 %v10861_v26, %v10855_v30 }
0x45e1   :  { %v10863_v1 = vpop.eup %10862 }
0x45e2   :  { %v8415_v38 = vmul.f32 %v10863_v1, %v10857_v57  ;;  %v8926_v57 = vld [vmem:[#allocation16 + $0x38] sm:$0xff] }
0x45e3   :  { %10552 = vmatprep.subr.mxu0 %v8926_v57 }
0x45e4   :  { %10525 = vmatprep.mubr.msk.f32.mxu1 %vm521_vm2, %v8415_v38  ;;  %10553 = vmatpush3.msra.mxu0 %v8926_v57  ;;  %v9524_v38 = vld [vmem:[#allocation13 + $0x1] ss:$0 sm:$0xff]  ;;  %v9541_v57 = vld [vmem:[#allocation22 + $0x1] ss:$0 sm:$0xff] }
0x45e5   :  { %10526 = vmatmul.mubr.msk.f32.vlgmr.msra.gmra.mxu1 %vm521_vm2, %v8416_v39  ;;  %10554 = vmatprep.subr.mxu0 %v8925_v54 }
0x45e6   :  { %10529 = vmatpush3.msra.mxu1 %v9484_v36  ;;  %10555 = vmatpush3.msra.mxu0 %v8925_v54 }
0x45e7   :  { %10556 = vmatprep.subr.mxu0 %v8924_v32 }
0x45e8   :  { %10557 = vmatpush3.msra.mxu0 %v8924_v32 }
0x45e9   :  { %10558 = vmatprep.subr.mxu0 %v8923_v33 }
0x45ea   :  { %10559 = vmatpush3.msra.mxu0 %v8923_v33 }
0x4604   :  { %v8692_v40 = vpop.xlane.xlu1 %8691 }
0x4608   :  { %v8703_v48 = vpop.permute.xlu1 %8702  ;;  %v8683_v62 = vpop.xlane.xlu0 %8682 }
0x4609   :  { %v8685_v41 = vsub.f32 %v8675_v28, %v8683_v62  ;;  %10540 = vmatprep.subr.mxu1 %v8703_v48  ;;  %v9531_v28 = vld [vmem:[%s12565_s24 + $0x68] sm:$0xff] }
0x460b   :  { %v8688_v63 = vmul.f32 1.442695, %v8685_v41  ;;  %v9525_v41 = vld [vmem:[#allocation14 + $0x1] ss:$0 sm:$0xff] }
0x460d   :  { %10864 = vpow2.f32 %v8688_v63 }
0x460e   :  { %10866 = vrcp.f32 %v8692_v40 }
0x461a   :  { %v10865_v17 = vpop.eup %10864 }
0x461b   :  { %v8693_v42 = vsel %vm521_vm2, %v10865_v17, 0.0  ;;  %v10867_v34 = vpop.eup %10866 }
0x461c   :  { %8694 = vadd.xlane.f32.xlu0 %v8693_v42  ;;  %v8698_v59 = vmul.f32 %v10867_v34, %v10859_v10  ;;  %v9532_v10 = vld [vmem:[%s12565_s24 + $0x70] sm:$0xff]  ;;  %v9527_v34 = vld [vmem:[%s12565_s24 + $0x48] sm:$0xff] }
0x4632   :  { %8700 = vrot.lane.b32.xlu0 %v12351_v58, %s11239_s9 }
0x46a5   :  { %v10527_v55 = vpop.f32.mrf.mxu1  ;;  %v8695_v2 = vpop.xlane.xlu0 %8694 }
0x46a6   :  { %10868 = vrcp.f32 %v8695_v2  ;;  %v9534_v2 = vld [vmem:[#allocation17 + $0x1] ss:$0 sm:$0xff] }
0x46a7   :  { %v8495_v37 = vpop.f32.mrf.mxu1 }
0x46a8   :  { %10530 = vmatprep.mubr.msk.f32.mxu1 %vm437_vm1, %v8495_v37 }
0x46a9   :  { %10531 = vmatmul.mubr.msk.f32.vlgmr.msra.gmra.mxu1 %vm437_vm1, %v10527_v55  ;;  %v8701_v0 = vpop.permute.xlu0 %8700  ;;  %v9526_v55 = vld [vmem:[%s12565_s24 + $0x40] sm:$0xff] }
0x46aa   :  { %10541 = vmatpush3.msra.mxu1 %v8703_v48  ;;  %10544 = vmatprep.mubr.msk.f32.mxu1 %vm521_vm2, %v8698_v59 }
0x46ab   :  { %10542 = vmatprep.subr.mxu1 %v8701_v0 }
0x46ac   :  { %10543 = vmatpush3.msra.mxu1 %v8701_v0 }
0x46ad   :  { %10547 = vmatprep.subr.mxu1 %v9485_v49 }
0x46b3   :  { %v10869_v58 = vpop.eup %10868 }
0x46b4   :  { %v8699_v61 = vmul.f32 %v10869_v58, %v10865_v17 }
0x46b6   :  { %10545 = vmatmul.mubr.msk.f32.vlgmr.msra.gmra.mxu1 %vm521_vm2, %v8699_v61 }
0x46b7   :  { %10548 = vmatpush3.msra.mxu1 %v9485_v49 }
0x46b8   :  { %10563 = vmatprep.subr.mxu1 %v9533_v56 }
0x4769   :  { %v10532_v4 = vpop.f32.mrf.mxu1 }
0x476a   :  { %v8586_v7 = vadd.f32 %v10532_v4, %v8301_v51  ;;  %v9537_v51 = vld [vmem:[#allocation19 + $0x1] ss:$0 sm:$0xff] }
0x476b   :  { %v8576_v11 = vpop.f32.mrf.mxu1 }
0x476c   :  { %v8585_v14 = vadd.f32 %v8576_v11, %v8296_v6 }
0x4776   :  { %v10546_v16 = vpop.f32.mrf.mxu1 }
0x4778   :  { %v8778_v15 = vpop.f32.mrf.mxu1 }
0x4779   :  { %10549 = vmatprep.mubr.msk.f32.mxu1 %vm437_vm1, %v8778_v15 }
0x477a   :  { %10550 = vmatmul.mubr.msk.f32.vlgmr.msra.gmra.mxu1 %vm437_vm1, %v10546_v16 }
0x477b   :  { %10564 = vmatpush3.msra.mxu1 %v9533_v56 }
0x477c   :  { %10565 = vmatprep.subr.mxu1 %v9532_v10 }
0x477d   :  { %10566 = vmatpush3.msra.mxu1 %v9532_v10 }
0x477e   :  { %10567 = vmatprep.subr.mxu1 %v9531_v28 }
0x477f   :  { %10568 = vmatpush3.msra.mxu1 %v9531_v28 }
0x4780   :  { %10569 = vmatprep.subr.mxu1 %v9530_v25 }
0x4781   :  { %10570 = vmatpush3.msra.mxu1 %v9530_v25 }
0x4782   :  { %10571 = vmatprep.subr.mxu1 %v9529_v43 }
0x4783   :  { %10572 = vmatpush3.msra.mxu1 %v9529_v43 }
0x4784   :  { %10573 = vmatprep.subr.mxu1 %v9528_v47 }
0x4785   :  { %10574 = vmatpush3.msra.mxu1 %v9528_v47 }
0x4786   :  { %10575 = vmatprep.subr.mxu1 %v9527_v34 }
0x4787   :  { %10576 = vmatpush3.msra.mxu1 %v9527_v34 }
0x4788   :  { %10577 = vmatprep.subr.mxu1 %v9526_v55 }
0x4789   :  { %10578 = vmatpush3.msra.mxu1 %v9526_v55 }
0x483a   :  { %v10551_v18 = vpop.f32.mrf.mxu1 }
0x483b   :  { %v8869_v22 = vadd.f32 %v10551_v18, %v8586_v7 }
0x483c   :  { %v8859_v52 = vpop.f32.mrf.mxu1 }
0x483d   :  { %v8871_v20 = vadd.f32 %v8869_v22, %v12343_v45  ;;  %v8868_v35 = vadd.f32 %v8859_v52, %v8585_v14 }
0x483f   :  { %v8870_v8 = vadd.f32 %v8868_v35, %v12341_v44  ;;  %v8879_v21 = vadd.f32 %v9523_v60, %v8871_v20 }
0x4841   :  { %v8883_v3 = vsel %vm349_vm0, %v8879_v21, 0.0  ;;  %v8878_v9 = vadd.f32 %v9523_v60, %v8870_v8 }
0x4842   :  { %8884 = vadd.xlane.f32.xlu0 %v8883_v3 }
0x4843   :  { %v8880_v12 = vsel %vm349_vm0, %v8878_v9, 0.0 }
0x4844   :  { %8881 = vadd.xlane.f32.xlu1 %v8880_v12 }
0x48cb   :  { %v8885_v24 = vpop.xlane.xlu0 %8884 }
0x48cc   :  { %v8887_v5 = vmul.f32 0.03125, %v8885_v24 }
0x48cd   :  { %v8882_v19 = vpop.xlane.xlu1 %8881 }
0x48ce   :  { %v8889_v13 = vsub.f32 %v8879_v21, %v8887_v5  ;;  %v8886_v27 = vmul.f32 0.03125, %v8882_v19 }
0x48d0   :  { %v8888_v29 = vsub.f32 %v8878_v9, %v8886_v27  ;;  %v8891_v30 = vmul.f32 %v8889_v13, %v8889_v13 }
0x48d2   :  { %v8895_v45 = vsel %vm349_vm0, %v8891_v30, 0.0  ;;  %v8890_v31 = vmul.f32 %v8888_v29, %v8888_v29 }
0x48d3   :  { %8896 = vadd.xlane.f32.xlu0 %v8895_v45  ;;  %v9540_v45 = vld [vmem:[#allocation20 + $0x1] ss:$0 sm:$0xff] }
0x48d4   :  { %v8892_v44 = vsel %vm349_vm0, %v8890_v31, 0.0 }
0x48d5   :  { %8893 = vadd.xlane.f32.xlu1 %v8892_v44 }
0x495c   :  { %v8897_v53 = vpop.xlane.xlu0 %8896 }
0x495d   :  { %v8899_v50 = vmul.f32 0.03125, %v8897_v53 }
0x495e   :  { %v8894_v46 = vpop.xlane.xlu1 %8893 }
0x495f   :  { %v8901_v23 = vadd.f32 1e-05, %v8899_v50  ;;  %v8898_v36 = vmul.f32 0.03125, %v8894_v46 }
0x4961   :  { %10870 = vrsqrt.f32 %v8901_v23  ;;  %v8900_v26 = vadd.f32 1e-05, %v8898_v36 }
0x4963   :  { %10872 = vrsqrt.f32 %v8900_v26 }
0x496e   :  { %v10871_v1 = vpop.eup %10870 }
0x496f   :  { %v8905_v39 = vmul.f32 %v10871_v1, %v8889_v13 }
0x4970   :  { %v10873_v40 = vpop.eup %10872 }
0x4971   :  { %v8904_v48 = vmul.f32 %v10873_v40, %v8888_v29  ;;  %v8913_v62 = vmul.f32 %v9524_v38, %v8905_v39 }
0x4973   :  { %v8912_v63 = vmul.f32 %v9524_v38, %v8904_v48  ;;  %v8921_v42 = vadd.f32 %v9525_v41, %v8913_v62 }
0x4975   :  { %v8920_v17 = vadd.f32 %v9525_v41, %v8912_v63 }
0x4977   :  { %10560 = vmatprep.mubr.msk.f32.mxu0 %vm349_vm0, %v8920_v17 }
0x4978   :  { %10561 = vmatmul.mubr.msk.f32.vlgmr.msra.gmra.mxu0 %vm349_vm0, %v8921_v42 }
0x4a38   :  { %v10562_v37 = vpop.f32.mrf.mxu0 }
0x4a39   :  { %v9028_v59 = vadd.f32 %v10562_v37, %v9534_v2 }
0x4a3a   :  { %v9022_v0 = vpop.f32.mrf.mxu0 }
0x4a3b   :  { %v9023_v58 = vadd.f32 %v9534_v2, %v9022_v0  ;;  %v9032_v49 = vmax.f32 %v9028_v59, 0.0 }
0x4a3d   :  { %v9031_v61 = vmax.f32 %v9023_v58, 0.0 }
0x4a3f   :  { %10579 = vmatprep.mubr.msk.f32.mxu1 %vm1723_vm3, %v9031_v61 }
0x4a40   :  { %10580 = vmatmul.mubr.msk.f32.vlgmr.msra.gmra.mxu1 %vm1723_vm3, %v9032_v49 }
0x4b00   :  { %v10581_v4 = vpop.f32.mrf.mxu1 }
0x4b01   :  { %v9117_v6 = vadd.f32 %v10581_v4, %v9537_v51 }
0x4b02   :  { %v9111_v7 = vpop.f32.mrf.mxu1 }
0x4b03   :  { %v9121_v11 = vadd.f32 %v9117_v6, %v8921_v42  ;;  %v9112_v14 = vadd.f32 %v9537_v51, %v9111_v7 }
0x4b05   :  { %v9120_v16 = vadd.f32 %v9112_v14, %v8920_v17  ;;  %v9125_v15 = vsel %vm349_vm0, %v9121_v11, 0.0 }
0x4b06   :  { %9126 = vadd.xlane.f32.xlu0 %v9125_v15 }
0x4b07   :  { %v9122_v18 = vsel %vm349_vm0, %v9120_v16, 0.0 }
0x4b08   :  { %9123 = vadd.xlane.f32.xlu1 %v9122_v18 }
0x4b8f   :  { %v9127_v22 = vpop.xlane.xlu0 %9126 }
0x4b90   :  { %v9129_v52 = vmul.f32 0.03125, %v9127_v22 }
0x4b91   :  { %v9124_v60 = vpop.xlane.xlu1 %9123 }
0x4b92   :  { %v9131_v20 = vsub.f32 %v9121_v11, %v9129_v52  ;;  %v9128_v35 = vmul.f32 0.03125, %v9124_v60 }
0x4b94   :  { %v9130_v8 = vsub.f32 %v9120_v16, %v9128_v35  ;;  %v9133_v21 = vmul.f32 %v9131_v20, %v9131_v20 }
0x4b96   :  { %v9137_v3 = vsel %vm349_vm0, %v9133_v21, 0.0  ;;  %v9132_v9 = vmul.f32 %v9130_v8, %v9130_v8 }
0x4b97   :  { %9138 = vadd.xlane.f32.xlu0 %v9137_v3 }
0x4b98   :  { %v9134_v12 = vsel %vm349_vm0, %v9132_v9, 0.0 }
0x4b99   :  { %9135 = vadd.xlane.f32.xlu1 %v9134_v12 }
0x4c20   :  { %v9139_v24 = vpop.xlane.xlu0 %9138 }
0x4c21   :  { %v9141_v5 = vmul.f32 0.03125, %v9139_v24 }
0x4c22   :  { %v9136_v19 = vpop.xlane.xlu1 %9135 }
0x4c23   :  { %v9143_v13 = vadd.f32 1e-05, %v9141_v5  ;;  %v9140_v27 = vmul.f32 0.03125, %v9136_v19 }
0x4c25   :  { %10874 = vrsqrt.f32 %v9143_v13  ;;  %v9142_v29 = vadd.f32 1e-05, %v9140_v27 }
0x4c27   :  { %10876 = vrsqrt.f32 %v9142_v29 }
0x4c32   :  { %v10875_v30 = vpop.eup %10874 }
0x4c33   :  { %v9147_v31 = vmul.f32 %v10875_v30, %v9131_v20 }
0x4c34   :  { %v10877_v44 = vpop.eup %10876 }
0x4c35   :  { %v9146_v54 = vmul.f32 %v10877_v44, %v9130_v8  ;;  %v9155_v32 = vmul.f32 %v9540_v45, %v9147_v31 }
0x4c37   :  { %v9154_v33 = vmul.f32 %v9540_v45, %v9146_v54  ;;  %v9163_v56 = vadd.f32 %v9541_v57, %v9155_v32 }
0x4c39   :  { %v9162_v10 = vadd.f32 %v9541_v57, %v9154_v33  ;;  %9165 = vst.msk [vmem:[#allocation23 + $0x8] sm:$0xff] %vm349_vm0, %v9163_v56 }
0x4c3b   :  { %9164 = vst.msk [vmem:[#allocation23] sm:$0xff] %vm349_vm0, %v9162_v10 }
0x4c3c   :  { %11155 = shalt.err (!%p11152_p13)
}
0x4c3d   :  { %9177 = dma.vmem_to_hbm [thread:$0]  %s9172_s6, 256, %s11427_s14, [#allocation4], %s11216_s0, %s11216_s0, %s11217_s28  }
0x4c3e   :  { %11178 = dma.done.wait [#allocation4], 256  }
0x4c3f   :  { %11179 = vsyncadd [#allocation4], 4294967040 }
0x4c40   :  { %9181 = vsyncpa [#allocation3], 1 }
0x4c41   :  { %9182 = vsyncpa [#allocation6], 1 }
0x4c42   :  { %9183 = vsyncpa [#allocation9], 1 }
0x4c43   :  { %9184 = vsyncpa [#allocation12], 1 }
0x4c44   :  { %9185 = vsyncpa [#allocation15], 1 }
0x4c45   :  { %9186 = vsyncpa [#allocation18], 1 }
0x4c46   :  { %9187 = vsyncpa [#allocation21], 1 }
0x4c47   :  { %9188 = vsyncpa [#allocation4], 1 }

</bundles_post_ra>
